<compile_context>
chip_gen: v7x
topology: tpu7x:2x2x1
jax: 0.10.0
libtpu: 0.0.40
codegen_flags: <defaults>
</compile_context>

<pallas_src>
import functools

import jax
import jax.numpy as jnp
from jax.experimental import pallas as pl
from jax.experimental.pallas import tpu as pltpu


LANE = 128                    # lane width: all channel dims padded to this
N_FILTS = 5
N_LAYERS = 5
HALO = (N_FILTS - 1) // 2     # 2
GAP = 8                       # zero rows between sequences (>= HALO, mult of 8)
PBUF_LEAD = 8                 # zero halo rows before the activation region
PBUF_TRAIL = 8                # zero halo rows after the activation region


def _round_up(x, m):
    return (x + m - 1) // m * m


def _pad_last(x, target):
    pad = target - x.shape[-1]
    if pad <= 0:
        return x
    cfg = [(0, 0)] * (x.ndim - 1) + [(0, pad)]
    return jnp.pad(x, cfg)


# ----------------------------------------------------------------------------
# Fused Predictor kernel — the whole batch and all layers in one grid step
# ----------------------------------------------------------------------------
def _predictor_kernel(maxlen_ref,            # SMEM scalar prefetch: (1,) int32
                      x_ref,                 # (R, LANE) flattened, gapped input
                      wf_ref, bf_ref,        # fused pre+post linear
                      cw_ref, cb_ref,        # (NL,K,LANE,LANE), (NL,1,LANE)
                      o_ref,                 # (2, R, LANE): [out1, out2]
                      pbuf,                  # (PBUF_LEAD+R+PBUF_TRAIL, LANE)
                      *, B, S):
    R = B * S
    max_len = maxlen_ref[0]

    # ---- fused pre + (identity encoder) + post linear: ONE MXU matmul -----
    out1 = jnp.dot(x_ref[...], wf_ref[...],
                   preferred_element_type=jnp.float32) + bf_ref[...]

    # ---- per-row validity mask (batch-padded Conv1d semantics) ------------
    # Row r belongs to sequence r // S at in-sequence position r % S.  Rows
    # at positions >= max_len are zeroed between layers, acting both as the
    # conv's implicit zero padding and as the inter-sequence halo.
    row = jax.lax.broadcasted_iota(jnp.int32, (R, 1), 0)
    mask = row < max_len                              # sequence 0
    for b in range(1, B):                             # small static unroll
        base = b * S
        mask = mask | ((row >= base) & (row < base + max_len))

    # ---- postnet: 5 x (tap-accumulate conv + folded BN [+ tanh]) ----------
    # Only the halo rows are zeroed (once); the activation region is fully
    # overwritten every layer.
    pbuf[0:PBUF_LEAD, :] = jnp.zeros((PBUF_LEAD, LANE), jnp.float32)
    pbuf[PBUF_LEAD + R:, :] = jnp.zeros((PBUF_TRAIL, LANE), jnp.float32)

    act = jnp.where(mask, out1, 0.0)
    for layer in range(N_LAYERS):
        pbuf[PBUF_LEAD:PBUF_LEAD + R, :] = act        # aligned, lane-dense
        # conv as 5 accumulating matmuls over shifted slices (no im2col buf);
        # the center tap reuses `act` directly (no reload).
        acc = jnp.dot(act, cw_ref[layer, HALO],
                      preferred_element_type=jnp.float32)
        for k in range(N_FILTS):
            if k == HALO:
                continue
            start = PBUF_LEAD - HALO + k
            acc = acc + jnp.dot(pbuf[start:start + R, :], cw_ref[layer, k],
                                preferred_element_type=jnp.float32)
        y = acc + cb_ref[layer]                       # folded BN shift (eval)
        if layer < N_LAYERS - 1:
            y = jnp.tanh(y)
        # dropout: identity in eval mode
        act = jnp.where(mask, y, 0.0)

    # ---- stacked outputs (single output block, fused residual add) --------
    o_ref[0] = out1
    o_ref[1] = out1 + act


def _fused_forward(x_flat, max_len_arr, params, *, B, S):
    """x_flat: (B*S, LANE) -> (2, B*S, LANE) stacked [out1, out2]."""
    R = B * S
    kernel = functools.partial(_predictor_kernel, B=B, S=S)

    grid_spec = pltpu.PrefetchScalarGridSpec(
        num_scalar_prefetch=1,
        # Whole batch in one grid step.  For very large B*S, tile this row
        # dimension over a grid (halo-carrying) and mark it "parallel" so
        # v7x's 2 TensorCores split it; VMEM here is ~3.6 MB, far under the
        # 32 MiB scoped default on all generations.
        grid=(1,),
        in_specs=[
            pl.BlockSpec((R, LANE), lambda i, ml: (0, 0)),             # x
            pl.BlockSpec((LANE, LANE), lambda i, ml: (0, 0)),          # w_fold
            pl.BlockSpec((1, LANE), lambda i, ml: (0, 0)),             # b_fold
            pl.BlockSpec((N_LAYERS, N_FILTS, LANE, LANE),
                         lambda i, ml: (0, 0, 0, 0)),                  # conv_w
            pl.BlockSpec((N_LAYERS, 1, LANE), lambda i, ml: (0, 0, 0)),  # shift
        ],
        out_specs=pl.BlockSpec((2, R, LANE), lambda i, ml: (0, 0, 0)),
        scratch_shapes=[
            pltpu.VMEM((PBUF_LEAD + R + PBUF_TRAIL, LANE), jnp.float32),
        ],
    )

    return pl.pallas_call(
        kernel,
        out_shape=jax.ShapeDtypeStruct((2, R, LANE), jnp.float32),
        grid_spec=grid_spec,
        compiler_params=pltpu.CompilerParams(
            dimension_semantics=("arbitrary",)),
    )(max_len_arr, x_flat,
      params["w_fold"], params["b_fold"],
      params["conv_w"], params["conv_shift"])


# ----------------------------------------------------------------------------
# Parameter construction (deterministic, synthetic); padding + folds done ONCE
# ----------------------------------------------------------------------------
def init_params(key, *, input_feature_size, output_size, speaker_size,
                speaker_embedding_size, hidden_size):
    keys = jax.random.split(key, 16)
    input_size = input_feature_size + speaker_embedding_size
    # TODO(synk): channel dims assumed <= 128 (one lane tile); tile the
    # channel axis inside the kernel for larger hidden sizes.
    assert max(input_size, hidden_size, output_size) <= LANE
    eps = 1e-5

    speaker_emb = 0.1 * jax.random.normal(
        keys[0], (speaker_size, speaker_embedding_size), jnp.float32)
    pre_w = 0.1 * jax.random.normal(keys[1], (input_size, hidden_size), jnp.float32)
    pre_b = 0.01 * jax.random.normal(keys[2], (hidden_size,), jnp.float32)
    post_w = 0.1 * jax.random.normal(keys[3], (hidden_size, output_size), jnp.float32)
    post_b = 0.01 * jax.random.normal(keys[4], (output_size,), jnp.float32)

    ref_conv_w, ref_scale, ref_shift = [], [], []
    conv_w_folded, conv_shift_p = [], []
    for layer in range(N_LAYERS):
        ichans = output_size if layer == 0 else hidden_size
        ochans = output_size if layer == N_LAYERS - 1 else hidden_size
        # NOTE: synthetic weights generated directly in (k, in, out) layout;
        # a real PyTorch Conv1d checkpoint is (out, in, k) and must be
        # permuted before the padding/fold below.
        w = 0.1 * jax.random.normal(
            keys[5 + layer], (N_FILTS, ichans, ochans), jnp.float32)
        # BatchNorm1d eval-mode defaults folded to per-channel scale/shift.
        gamma = jnp.ones((ochans,), jnp.float32)
        beta = jnp.zeros((ochans,), jnp.float32)
        mean = jnp.zeros((ochans,), jnp.float32)
        var = jnp.ones((ochans,), jnp.float32)
        scale = gamma / jnp.sqrt(var + eps)
        shift = beta - mean * scale
        ref_conv_w.append(w)
        ref_scale.append(scale)
        ref_shift.append(shift)
        # fold BN scale into the conv weights; pad channels to 128 lanes.
        w_p = jnp.zeros((N_FILTS, LANE, LANE), jnp.float32)
        w_p = w_p.at[:, :ichans, :ochans].set(w * scale)
        conv_w_folded.append(w_p)
        conv_shift_p.append(_pad_last(shift, LANE).reshape(1, LANE))

    pre_w_p = jnp.zeros((LANE, LANE), jnp.float32).at[:input_size, :hidden_size].set(pre_w)
    post_w_p = jnp.zeros((LANE, LANE), jnp.float32).at[:hidden_size, :output_size].set(post_w)
    pre_b_p = _pad_last(pre_b, LANE).reshape(1, LANE)
    post_b_p = _pad_last(post_b, LANE).reshape(1, LANE)
    # Fold pre+post Linear into one matmul (valid while encoder == identity).
    w_fold = jnp.dot(pre_w_p, post_w_p)
    b_fold = jnp.dot(pre_b_p, post_w_p) + post_b_p

    return {
        "speaker_emb": speaker_emb,
        # kernel (padded / folded) parameters
        "w_fold": w_fold,                         # (LANE, LANE)
        "b_fold": b_fold,                         # (1, LANE)
        "conv_w": jnp.stack(conv_w_folded),       # (NL, K, LANE, LANE)
        "conv_shift": jnp.stack(conv_shift_p),    # (NL, 1, LANE)
        # unfolded parameters (pure-JAX reference)
        "ref_pre_w": pre_w, "ref_pre_b": pre_b,
        "ref_post_w": post_w, "ref_post_b": post_b,
        "ref_conv_w": ref_conv_w,
        "ref_conv_scale": ref_scale,
        "ref_conv_shift": ref_shift,
        "input_size": input_size,
        "hidden_size": hidden_size,
        "output_size": output_size,
    }


# ----------------------------------------------------------------------------
# Input assembly (shared by kernel path and pure-JAX reference)
# ----------------------------------------------------------------------------
def _assemble_inputs(params, f0_list, phoneme_list, speaker_id, length_bucket):
    lengths = [int(f.shape[0]) for f in f0_list]
    max_len = max(lengths)
    B = len(f0_list)
    # Per-sequence slab: bucketed, 8-sublane-aligned length plus GAP zero rows
    # so consecutive sequences never see each other through the conv halo.
    S = _round_up(max(max_len, length_bucket), 8) + GAP

    f0_dim = f0_list[0].shape[1]
    ph_dim = phoneme_list[0].shape[1]

    slabs = []
    for i in range(B):
        slab = jnp.zeros((S, LANE), jnp.float32)
        slab = slab.at[:lengths[i], :f0_dim].set(f0_list[i])
        slab = slab.at[:lengths[i], f0_dim:f0_dim + ph_dim].set(phoneme_list[i])
        slabs.append(slab)
    x = jnp.stack(slabs)                                   # (B, S, LANE)

    if speaker_id is not None:
        spk = params["speaker_emb"][speaker_id]            # (B, E)
        e = spk.shape[-1]
        off = f0_dim + ph_dim
        x = x.at[:, :, off:off + e].set(
            jnp.broadcast_to(spk[:, None, :], (B, S, e)))

    return x, lengths, max_len, S


# ----------------------------------------------------------------------------
# Predictor forward (glue in plain JAX, whole model in ONE Pallas call)
# ----------------------------------------------------------------------------
def predictor_forward(params, f0_list, phoneme_list, speaker_id, *,
                      length_bucket=32):
    x, lengths, max_len, S = _assemble_inputs(
        params, f0_list, phoneme_list, speaker_id, length_bucket)
    B = x.shape[0]

    x_flat = x.reshape(B * S, LANE)                        # metadata-only reshape
    max_len_arr = jnp.asarray([max_len], jnp.int32)
    out = _fused_forward(x_flat, max_len_arr, params, B=B, S=S)
    out = out.reshape(2, B, S, LANE)

    osz = params["output_size"]
    out1_list = [out[0, i, :lengths[i], :osz] for i in range(B)]
    out2_list = [out[1, i, :lengths[i], :osz] for i in range(B)]
    return out1_list, out2_list


# ----------------------------------------------------------------------------
# Pure-JAX reference (unfolded params, same math) for correctness checking
# ----------------------------------------------------------------------------
def _reference_forward(params, f0_list, phoneme_list, speaker_id, *,
                       length_bucket=32):
    x, lengths, max_len, S = _assemble_inputs(
        params, f0_list, phoneme_list, speaker_id, length_bucket)
    B = x.shape[0]
    isz = params["input_size"]

    h = jnp.einsum("bld,dh->blh", x[..., :isz], params["ref_pre_w"]) + params["ref_pre_b"]
    # encoder: identity
    out1 = jnp.einsum("blh,ho->blo", h, params["ref_post_w"]) + params["ref_post_b"]

    row_mask = (jnp.arange(S)[None, :, None] < max_len)
    act = jnp.where(row_mask, out1, 0.0)
    for layer in range(N_LAYERS):
        w = params["ref_conv_w"][layer]                    # (K, in, out)
        pad = jnp.pad(act, ((0, 0), (HALO, HALO), (0, 0)))
        y = sum(jnp.einsum("bld,do->blo", pad[:, k:k + S, :], w[k])
                for k in range(N_FILTS))
        y = y * params["ref_conv_scale"][layer] + params["ref_conv_shift"][layer]
        if layer < N_LAYERS - 1:
            y = jnp.tanh(y)
        act = jnp.where(row_mask, y, 0.0)
    out2 = out1 + act

    out1_list = [out1[i, :lengths[i]] for i in range(B)]
    out2_list = [out2[i, :lengths[i]] for i in range(B)]
    return out1_list, out2_list


# ----------------------------------------------------------------------------
if __name__ == "__main__":
    key = jax.random.PRNGKey(0)

    # Small, module-consistent sizes
    f0_dim = 1
    phoneme_dim = 7
    input_feature_size = f0_dim + phoneme_dim     # 8
    speaker_size = 4
    speaker_embedding_size = 8
    hidden_size = 32
    output_size = 8                               # odim for Postnet

    params = init_params(
        key,
        input_feature_size=input_feature_size,
        output_size=output_size,
        speaker_size=speaker_size,
        speaker_embedding_size=speaker_embedding_size,
        hidden_size=hidden_size,
    )

    # Variable-length batch of 2 sequences (lengths 8 and 6)
    k1, k2, k3, k4 = jax.random.split(jax.random.PRNGKey(1), 4)
    f0_list = [
        jax.random.normal(k1, (8, f0_dim), jnp.float32),
        jax.random.normal(k2, (6, f0_dim), jnp.float32),
    ]
    phoneme_list = [
        jax.random.normal(k3, (8, phoneme_dim), jnp.float32),
        jax.random.normal(k4, (6, phoneme_dim), jnp.float32),
    ]
    speaker_id = jnp.array([1, 3], jnp.int32)

    out1_list, out2_list = predictor_forward(params, f0_list, phoneme_list, speaker_id)
    for o in out1_list + out2_list:
        jax.block_until_ready(o)

    assert out1_list[0].shape == (8, output_size)
    assert out1_list[1].shape == (6, output_size)
    assert out2_list[0].shape == (8, output_size)
    assert out2_list[1].shape == (6, output_size)

    # Numerical check against the pure-JAX (unfolded-parameter) reference.
    # Tolerance accounts for TPU MXU matmul precision + the init-time folds.
    ref1, ref2 = _reference_forward(params, f0_list, phoneme_list, speaker_id)
    for got, ref in zip(out1_list + out2_list, ref1 + ref2):
        assert bool(jnp.all(jnp.isfinite(got)))
        assert jnp.allclose(got, ref, atol=5e-3, rtol=5e-3), \
            float(jnp.max(jnp.abs(got - ref)))

    print("KERNEL_OK")
</pallas_src>

<mosaic_0001>
module attributes {stable_mosaic.version = 11 : i64} {
  func.func @_predictor_kernel(%arg0: i32, %arg1: memref<1xi32, #tpu.memory_space<smem>>, %arg2: memref<80x128xf32, #tpu.memory_space<vmem>>, %arg3: memref<128x128xf32, #tpu.memory_space<vmem>>, %arg4: memref<1x128xf32, #tpu.memory_space<vmem>>, %arg5: memref<5x5x128x128xf32, #tpu.memory_space<vmem>>, %arg6: memref<5x1x128xf32, #tpu.memory_space<vmem>>, %arg7: memref<2x80x128xf32, #tpu.memory_space<vmem>>, %arg8: memref<96x128xf32, #tpu.memory_space<vmem>>) attributes {dimension_semantics = [#tpu.dimension_semantics<arbitrary>], iteration_bounds = array<i64: 1>, scalar_prefetch = 1 : i64, scratch_operands = 1 : i64, tpu.core_type = #tpu.core_type<tc>, window_params = [{pipeline_mode = #tpu.pipeline_mode<synchronous>, transform_indices = @transform_0, window_bounds = array<i64: 80, 128>}, {pipeline_mode = #tpu.pipeline_mode<synchronous>, transform_indices = @transform_1, window_bounds = array<i64: 128, 128>}, {pipeline_mode = #tpu.pipeline_mode<synchronous>, transform_indices = @transform_2, window_bounds = array<i64: 1, 128>}, {pipeline_mode = #tpu.pipeline_mode<synchronous>, transform_indices = @transform_3, window_bounds = array<i64: 5, 5, 128, 128>}, {pipeline_mode = #tpu.pipeline_mode<synchronous>, transform_indices = @transform_4, window_bounds = array<i64: 5, 1, 128>}, {pipeline_mode = #tpu.pipeline_mode<synchronous>, transform_indices = @transform_5, window_bounds = array<i64: 2, 80, 128>}]} {
    %c0 = arith.constant 0 : index
    %0 = memref.load %arg1[%c0] : memref<1xi32, #tpu.memory_space<smem>>
    %c0_0 = arith.constant 0 : index
    %c0_1 = arith.constant 0 : index
    %1 = vector.load %arg2[%c0_0, %c0_1] : memref<80x128xf32, #tpu.memory_space<vmem>>, vector<80x128xf32>
    %c0_2 = arith.constant 0 : index
    %c0_3 = arith.constant 0 : index
    %2 = vector.load %arg3[%c0_2, %c0_3] : memref<128x128xf32, #tpu.memory_space<vmem>>, vector<128x128xf32>
    %cst = arith.constant dense<0.000000e+00> : vector<80x128xf32>
    %3 = tpu.matmul %1, %2, %cst {dimension_numbers = #tpu.dot_dimension_numbers<[1], [0], [0], [1], [0, 0, 1, 1], [], []>} : vector<80x128xf32>, vector<128x128xf32>, vector<80x128xf32> -> vector<80x128xf32>
    %c0_4 = arith.constant 0 : index
    %c0_5 = arith.constant 0 : index
    %4 = vector.load %arg4[%c0_4, %c0_5] : memref<1x128xf32, #tpu.memory_space<vmem>>, vector<1x128xf32>
    %5 = vector.broadcast %4 : vector<1x128xf32> to vector<80x128xf32>
    %6 = arith.addf %3, %5 : vector<80x128xf32>
    %7 = tpu.iota {dimensions = array<i32: 0>} : vector<80x1xi32>
    %8 = vector.broadcast %0 : i32 to vector<80x1xi32>
    %9 = arith.cmpi slt, %7, %8 : vector<80x1xi32>
    %c40_i32 = arith.constant 40 : i32
    %10 = vector.broadcast %c40_i32 : i32 to vector<80x1xi32>
    %11 = arith.cmpi sge, %7, %10 : vector<80x1xi32>
    %c40_i32_6 = arith.constant 40 : i32
    %12 = arith.addi %c40_i32_6, %0 : i32
    %13 = vector.broadcast %12 : i32 to vector<80x1xi32>
    %14 = arith.cmpi slt, %7, %13 : vector<80x1xi32>
    %15 = arith.andi %11, %14 : vector<80x1xi1>
    %16 = arith.ori %9, %15 : vector<80x1xi1>
    %cst_7 = arith.constant 0.000000e+00 : f32
    %17 = vector.broadcast %cst_7 : f32 to vector<8x128xf32>
    %c0_8 = arith.constant 0 : index
    %c0_9 = arith.constant 0 : index
    %18 = vector.load %arg8[%c0_8, %c0_9] : memref<96x128xf32, #tpu.memory_space<vmem>>, vector<8x128xf32>
    tpu.vector_store %arg8[%c0_8, %c0_9], %17 {strides = array<i32>} : memref<96x128xf32, #tpu.memory_space<vmem>>, vector<8x128xf32>,
    %cst_10 = arith.constant 0.000000e+00 : f32
    %19 = vector.broadcast %cst_10 : f32 to vector<8x128xf32>
    %c88 = arith.constant 88 : index
    %c0_11 = arith.constant 0 : index
    %20 = vector.load %arg8[%c88, %c0_11] : memref<96x128xf32, #tpu.memory_space<vmem>>, vector<8x128xf32>
    tpu.vector_store %arg8[%c88, %c0_11], %19 {strides = array<i32>} : memref<96x128xf32, #tpu.memory_space<vmem>>, vector<8x128xf32>,
    %cst_12 = arith.constant 0.000000e+00 : f32
    %21 = vector.shape_cast %16 : vector<80x1xi1> to vector<80x1xi1>
    %22 = vector.broadcast %21 : vector<80x1xi1> to vector<80x128xi1>
    %23 = vector.broadcast %cst_12 : f32 to vector<80x128xf32>
    %24 = arith.select %22, %6, %23 : vector<80x128xi1>, vector<80x128xf32>
    %c8 = arith.constant 8 : index
    %c0_13 = arith.constant 0 : index
    %25 = vector.load %arg8[%c8, %c0_13] : memref<96x128xf32, #tpu.memory_space<vmem>>, vector<80x128xf32>
    tpu.vector_store %arg8[%c8, %c0_13], %24 {strides = array<i32>} : memref<96x128xf32, #tpu.memory_space<vmem>>, vector<80x128xf32>,
    %c0_14 = arith.constant 0 : index
    %c2 = arith.constant 2 : index
    %c0_15 = arith.constant 0 : index
    %c0_16 = arith.constant 0 : index
    %26 = vector.load %arg5[%c0_14, %c2, %c0_15, %c0_16] : memref<5x5x128x128xf32, #tpu.memory_space<vmem>>, vector<1x1x128x128xf32>
    %27 = vector.shape_cast %26 : vector<1x1x128x128xf32> to vector<128x128xf32>
    %cst_17 = arith.constant dense<0.000000e+00> : vector<80x128xf32>
    %28 = tpu.matmul %24, %27, %cst_17 {dimension_numbers = #tpu.dot_dimension_numbers<[1], [0], [0], [1], [0, 0, 1, 1], [], []>} : vector<80x128xf32>, vector<128x128xf32>, vector<80x128xf32> -> vector<80x128xf32>
    %c6 = arith.constant 6 : index
    %c0_18 = arith.constant 0 : index
    %29 = vector.load %arg8[%c6, %c0_18] : memref<96x128xf32, #tpu.memory_space<vmem>>, vector<80x128xf32>
    %c0_19 = arith.constant 0 : index
    %c0_20 = arith.constant 0 : index
    %c0_21 = arith.constant 0 : index
    %c0_22 = arith.constant 0 : index
    %30 = vector.load %arg5[%c0_19, %c0_20, %c0_21, %c0_22] : memref<5x5x128x128xf32, #tpu.memory_space<vmem>>, vector<1x1x128x128xf32>
    %31 = vector.shape_cast %30 : vector<1x1x128x128xf32> to vector<128x128xf32>
    %cst_23 = arith.constant dense<0.000000e+00> : vector<80x128xf32>
    %32 = tpu.matmul %29, %31, %cst_23 {dimension_numbers = #tpu.dot_dimension_numbers<[1], [0], [0], [1], [0, 0, 1, 1], [], []>} : vector<80x128xf32>, vector<128x128xf32>, vector<80x128xf32> -> vector<80x128xf32>
    %33 = arith.addf %28, %32 : vector<80x128xf32>
    %c7 = arith.constant 7 : index
    %c0_24 = arith.constant 0 : index
    %34 = vector.load %arg8[%c7, %c0_24] : memref<96x128xf32, #tpu.memory_space<vmem>>, vector<80x128xf32>
    %c0_25 = arith.constant 0 : index
    %c1 = arith.constant 1 : index
    %c0_26 = arith.constant 0 : index
    %c0_27 = arith.constant 0 : index
    %35 = vector.load %arg5[%c0_25, %c1, %c0_26, %c0_27] : memref<5x5x128x128xf32, #tpu.memory_space<vmem>>, vector<1x1x128x128xf32>
    %36 = vector.shape_cast %35 : vector<1x1x128x128xf32> to vector<128x128xf32>
    %cst_28 = arith.constant dense<0.000000e+00> : vector<80x128xf32>
    %37 = tpu.matmul %34, %36, %cst_28 {dimension_numbers = #tpu.dot_dimension_numbers<[1], [0], [0], [1], [0, 0, 1, 1], [], []>} : vector<80x128xf32>, vector<128x128xf32>, vector<80x128xf32> -> vector<80x128xf32>
    %38 = arith.addf %33, %37 : vector<80x128xf32>
    %c9 = arith.constant 9 : index
    %c0_29 = arith.constant 0 : index
    %39 = vector.load %arg8[%c9, %c0_29] : memref<96x128xf32, #tpu.memory_space<vmem>>, vector<80x128xf32>
    %c0_30 = arith.constant 0 : index
    %c3 = arith.constant 3 : index
    %c0_31 = arith.constant 0 : index
    %c0_32 = arith.constant 0 : index
    %40 = vector.load %arg5[%c0_30, %c3, %c0_31, %c0_32] : memref<5x5x128x128xf32, #tpu.memory_space<vmem>>, vector<1x1x128x128xf32>
    %41 = vector.shape_cast %40 : vector<1x1x128x128xf32> to vector<128x128xf32>
    %cst_33 = arith.constant dense<0.000000e+00> : vector<80x128xf32>
    %42 = tpu.matmul %39, %41, %cst_33 {dimension_numbers = #tpu.dot_dimension_numbers<[1], [0], [0], [1], [0, 0, 1, 1], [], []>} : vector<80x128xf32>, vector<128x128xf32>, vector<80x128xf32> -> vector<80x128xf32>
    %43 = arith.addf %38, %42 : vector<80x128xf32>
    %c10 = arith.constant 10 : index
    %c0_34 = arith.constant 0 : index
    %44 = vector.load %arg8[%c10, %c0_34] : memref<96x128xf32, #tpu.memory_space<vmem>>, vector<80x128xf32>
    %c0_35 = arith.constant 0 : index
    %c4 = arith.constant 4 : index
    %c0_36 = arith.constant 0 : index
    %c0_37 = arith.constant 0 : index
    %45 = vector.load %arg5[%c0_35, %c4, %c0_36, %c0_37] : memref<5x5x128x128xf32, #tpu.memory_space<vmem>>, vector<1x1x128x128xf32>
    %46 = vector.shape_cast %45 : vector<1x1x128x128xf32> to vector<128x128xf32>
    %cst_38 = arith.constant dense<0.000000e+00> : vector<80x128xf32>
    %47 = tpu.matmul %44, %46, %cst_38 {dimension_numbers = #tpu.dot_dimension_numbers<[1], [0], [0], [1], [0, 0, 1, 1], [], []>} : vector<80x128xf32>, vector<128x128xf32>, vector<80x128xf32> -> vector<80x128xf32>
    %48 = arith.addf %43, %47 : vector<80x128xf32>
    %c0_39 = arith.constant 0 : index
    %c0_40 = arith.constant 0 : index
    %c0_41 = arith.constant 0 : index
    %49 = vector.load %arg6[%c0_39, %c0_40, %c0_41] : memref<5x1x128xf32, #tpu.memory_space<vmem>>, vector<1x1x128xf32>
    %50 = vector.shape_cast %49 : vector<1x1x128xf32> to vector<1x128xf32>
    %51 = vector.broadcast %50 : vector<1x128xf32> to vector<80x128xf32>
    %52 = arith.addf %48, %51 : vector<80x128xf32>
    %53 = math.tanh %52 : vector<80x128xf32>
    %cst_42 = arith.constant 0.000000e+00 : f32
    %54 = vector.shape_cast %16 : vector<80x1xi1> to vector<80x1xi1>
    %55 = vector.broadcast %54 : vector<80x1xi1> to vector<80x128xi1>
    %56 = vector.broadcast %cst_42 : f32 to vector<80x128xf32>
    %57 = arith.select %55, %53, %56 : vector<80x128xi1>, vector<80x128xf32>
    %c8_43 = arith.constant 8 : index
    %c0_44 = arith.constant 0 : index
    %58 = vector.load %arg8[%c8_43, %c0_44] : memref<96x128xf32, #tpu.memory_space<vmem>>, vector<80x128xf32>
    tpu.vector_store %arg8[%c8_43, %c0_44], %57 {strides = array<i32>} : memref<96x128xf32, #tpu.memory_space<vmem>>, vector<80x128xf32>,
    %c1_45 = arith.constant 1 : index
    %c2_46 = arith.constant 2 : index
    %c0_47 = arith.constant 0 : index
    %c0_48 = arith.constant 0 : index
    %59 = vector.load %arg5[%c1_45, %c2_46, %c0_47, %c0_48] : memref<5x5x128x128xf32, #tpu.memory_space<vmem>>, vector<1x1x128x128xf32>
    %60 = vector.shape_cast %59 : vector<1x1x128x128xf32> to vector<128x128xf32>
    %cst_49 = arith.constant dense<0.000000e+00> : vector<80x128xf32>
    %61 = tpu.matmul %57, %60, %cst_49 {dimension_numbers = #tpu.dot_dimension_numbers<[1], [0], [0], [1], [0, 0, 1, 1], [], []>} : vector<80x128xf32>, vector<128x128xf32>, vector<80x128xf32> -> vector<80x128xf32>
    %c6_50 = arith.constant 6 : index
    %c0_51 = arith.constant 0 : index
    %62 = vector.load %arg8[%c6_50, %c0_51] : memref<96x128xf32, #tpu.memory_space<vmem>>, vector<80x128xf32>
    %c1_52 = arith.constant 1 : index
    %c0_53 = arith.constant 0 : index
    %c0_54 = arith.constant 0 : index
    %c0_55 = arith.constant 0 : index
    %63 = vector.load %arg5[%c1_52, %c0_53, %c0_54, %c0_55] : memref<5x5x128x128xf32, #tpu.memory_space<vmem>>, vector<1x1x128x128xf32>
    %64 = vector.shape_cast %63 : vector<1x1x128x128xf32> to vector<128x128xf32>
    %cst_56 = arith.constant dense<0.000000e+00> : vector<80x128xf32>
    %65 = tpu.matmul %62, %64, %cst_56 {dimension_numbers = #tpu.dot_dimension_numbers<[1], [0], [0], [1], [0, 0, 1, 1], [], []>} : vector<80x128xf32>, vector<128x128xf32>, vector<80x128xf32> -> vector<80x128xf32>
    %66 = arith.addf %61, %65 : vector<80x128xf32>
    %c7_57 = arith.constant 7 : index
    %c0_58 = arith.constant 0 : index
    %67 = vector.load %arg8[%c7_57, %c0_58] : memref<96x128xf32, #tpu.memory_space<vmem>>, vector<80x128xf32>
    %c1_59 = arith.constant 1 : index
    %c1_60 = arith.constant 1 : index
    %c0_61 = arith.constant 0 : index
    %c0_62 = arith.constant 0 : index
    %68 = vector.load %arg5[%c1_59, %c1_60, %c0_61, %c0_62] : memref<5x5x128x128xf32, #tpu.memory_space<vmem>>, vector<1x1x128x128xf32>
    %69 = vector.shape_cast %68 : vector<1x1x128x128xf32> to vector<128x128xf32>
    %cst_63 = arith.constant dense<0.000000e+00> : vector<80x128xf32>
    %70 = tpu.matmul %67, %69, %cst_63 {dimension_numbers = #tpu.dot_dimension_numbers<[1], [0], [0], [1], [0, 0, 1, 1], [], []>} : vector<80x128xf32>, vector<128x128xf32>, vector<80x128xf32> -> vector<80x128xf32>
    %71 = arith.addf %66, %70 : vector<80x128xf32>
    %c9_64 = arith.constant 9 : index
    %c0_65 = arith.constant 0 : index
    %72 = vector.load %arg8[%c9_64, %c0_65] : memref<96x128xf32, #tpu.memory_space<vmem>>, vector<80x128xf32>
    %c1_66 = arith.constant 1 : index
    %c3_67 = arith.constant 3 : index
    %c0_68 = arith.constant 0 : index
    %c0_69 = arith.constant 0 : index
    %73 = vector.load %arg5[%c1_66, %c3_67, %c0_68, %c0_69] : memref<5x5x128x128xf32, #tpu.memory_space<vmem>>, vector<1x1x128x128xf32>
    %74 = vector.shape_cast %73 : vector<1x1x128x128xf32> to vector<128x128xf32>
    %cst_70 = arith.constant dense<0.000000e+00> : vector<80x128xf32>
    %75 = tpu.matmul %72, %74, %cst_70 {dimension_numbers = #tpu.dot_dimension_numbers<[1], [0], [0], [1], [0, 0, 1, 1], [], []>} : vector<80x128xf32>, vector<128x128xf32>, vector<80x128xf32> -> vector<80x128xf32>
    %76 = arith.addf %71, %75 : vector<80x128xf32>
    %c10_71 = arith.constant 10 : index
    %c0_72 = arith.constant 0 : index
    %77 = vector.load %arg8[%c10_71, %c0_72] : memref<96x128xf32, #tpu.memory_space<vmem>>, vector<80x128xf32>
    %c1_73 = arith.constant 1 : index
    %c4_74 = arith.constant 4 : index
    %c0_75 = arith.constant 0 : index
    %c0_76 = arith.constant 0 : index
    %78 = vector.load %arg5[%c1_73, %c4_74, %c0_75, %c0_76] : memref<5x5x128x128xf32, #tpu.memory_space<vmem>>, vector<1x1x128x128xf32>
    %79 = vector.shape_cast %78 : vector<1x1x128x128xf32> to vector<128x128xf32>
    %cst_77 = arith.constant dense<0.000000e+00> : vector<80x128xf32>
    %80 = tpu.matmul %77, %79, %cst_77 {dimension_numbers = #tpu.dot_dimension_numbers<[1], [0], [0], [1], [0, 0, 1, 1], [], []>} : vector<80x128xf32>, vector<128x128xf32>, vector<80x128xf32> -> vector<80x128xf32>
    %81 = arith.addf %76, %80 : vector<80x128xf32>
    %c1_78 = arith.constant 1 : index
    %c0_79 = arith.constant 0 : index
    %c0_80 = arith.constant 0 : index
    %82 = vector.load %arg6[%c1_78, %c0_79, %c0_80] : memref<5x1x128xf32, #tpu.memory_space<vmem>>, vector<1x1x128xf32>
    %83 = vector.shape_cast %82 : vector<1x1x128xf32> to vector<1x128xf32>
    %84 = vector.broadcast %83 : vector<1x128xf32> to vector<80x128xf32>
    %85 = arith.addf %81, %84 : vector<80x128xf32>
    %86 = math.tanh %85 : vector<80x128xf32>
    %cst_81 = arith.constant 0.000000e+00 : f32
    %87 = vector.shape_cast %16 : vector<80x1xi1> to vector<80x1xi1>
    %88 = vector.broadcast %87 : vector<80x1xi1> to vector<80x128xi1>
    %89 = vector.broadcast %cst_81 : f32 to vector<80x128xf32>
    %90 = arith.select %88, %86, %89 : vector<80x128xi1>, vector<80x128xf32>
    %c8_82 = arith.constant 8 : index
    %c0_83 = arith.constant 0 : index
    %91 = vector.load %arg8[%c8_82, %c0_83] : memref<96x128xf32, #tpu.memory_space<vmem>>, vector<80x128xf32>
    tpu.vector_store %arg8[%c8_82, %c0_83], %90 {strides = array<i32>} : memref<96x128xf32, #tpu.memory_space<vmem>>, vector<80x128xf32>,
    %c2_84 = arith.constant 2 : index
    %c2_85 = arith.constant 2 : index
    %c0_86 = arith.constant 0 : index
    %c0_87 = arith.constant 0 : index
    %92 = vector.load %arg5[%c2_84, %c2_85, %c0_86, %c0_87] : memref<5x5x128x128xf32, #tpu.memory_space<vmem>>, vector<1x1x128x128xf32>
    %93 = vector.shape_cast %92 : vector<1x1x128x128xf32> to vector<128x128xf32>
    %cst_88 = arith.constant dense<0.000000e+00> : vector<80x128xf32>
    %94 = tpu.matmul %90, %93, %cst_88 {dimension_numbers = #tpu.dot_dimension_numbers<[1], [0], [0], [1], [0, 0, 1, 1], [], []>} : vector<80x128xf32>, vector<128x128xf32>, vector<80x128xf32> -> vector<80x128xf32>
    %c6_89 = arith.constant 6 : index
    %c0_90 = arith.constant 0 : index
    %95 = vector.load %arg8[%c6_89, %c0_90] : memref<96x128xf32, #tpu.memory_space<vmem>>, vector<80x128xf32>
    %c2_91 = arith.constant 2 : index
    %c0_92 = arith.constant 0 : index
    %c0_93 = arith.constant 0 : index
    %c0_94 = arith.constant 0 : index
    %96 = vector.load %arg5[%c2_91, %c0_92, %c0_93, %c0_94] : memref<5x5x128x128xf32, #tpu.memory_space<vmem>>, vector<1x1x128x128xf32>
    %97 = vector.shape_cast %96 : vector<1x1x128x128xf32> to vector<128x128xf32>
    %cst_95 = arith.constant dense<0.000000e+00> : vector<80x128xf32>
    %98 = tpu.matmul %95, %97, %cst_95 {dimension_numbers = #tpu.dot_dimension_numbers<[1], [0], [0], [1], [0, 0, 1, 1], [], []>} : vector<80x128xf32>, vector<128x128xf32>, vector<80x128xf32> -> vector<80x128xf32>
    %99 = arith.addf %94, %98 : vector<80x128xf32>
    %c7_96 = arith.constant 7 : index
    %c0_97 = arith.constant 0 : index
    %100 = vector.load %arg8[%c7_96, %c0_97] : memref<96x128xf32, #tpu.memory_space<vmem>>, vector<80x128xf32>
    %c2_98 = arith.constant 2 : index
    %c1_99 = arith.constant 1 : index
    %c0_100 = arith.constant 0 : index
    %c0_101 = arith.constant 0 : index
    %101 = vector.load %arg5[%c2_98, %c1_99, %c0_100, %c0_101] : memref<5x5x128x128xf32, #tpu.memory_space<vmem>>, vector<1x1x128x128xf32>
    %102 = vector.shape_cast %101 : vector<1x1x128x128xf32> to vector<128x128xf32>
    %cst_102 = arith.constant dense<0.000000e+00> : vector<80x128xf32>
    %103 = tpu.matmul %100, %102, %cst_102 {dimension_numbers = #tpu.dot_dimension_numbers<[1], [0], [0], [1], [0, 0, 1, 1], [], []>} : vector<80x128xf32>, vector<128x128xf32>, vector<80x128xf32> -> vector<80x128xf32>
    %104 = arith.addf %99, %103 : vector<80x128xf32>
    %c9_103 = arith.constant 9 : index
    %c0_104 = arith.constant 0 : index
    %105 = vector.load %arg8[%c9_103, %c0_104] : memref<96x128xf32, #tpu.memory_space<vmem>>, vector<80x128xf32>
    %c2_105 = arith.constant 2 : index
    %c3_106 = arith.constant 3 : index
    %c0_107 = arith.constant 0 : index
    %c0_108 = arith.constant 0 : index
    %106 = vector.load %arg5[%c2_105, %c3_106, %c0_107, %c0_108] : memref<5x5x128x128xf32, #tpu.memory_space<vmem>>, vector<1x1x128x128xf32>
    %107 = vector.shape_cast %106 : vector<1x1x128x128xf32> to vector<128x128xf32>
    %cst_109 = arith.constant dense<0.000000e+00> : vector<80x128xf32>
    %108 = tpu.matmul %105, %107, %cst_109 {dimension_numbers = #tpu.dot_dimension_numbers<[1], [0], [0], [1], [0, 0, 1, 1], [], []>} : vector<80x128xf32>, vector<128x128xf32>, vector<80x128xf32> -> vector<80x128xf32>
    %109 = arith.addf %104, %108 : vector<80x128xf32>
    %c10_110 = arith.constant 10 : index
    %c0_111 = arith.constant 0 : index
    %110 = vector.load %arg8[%c10_110, %c0_111] : memref<96x128xf32, #tpu.memory_space<vmem>>, vector<80x128xf32>
    %c2_112 = arith.constant 2 : index
    %c4_113 = arith.constant 4 : index
    %c0_114 = arith.constant 0 : index
    %c0_115 = arith.constant 0 : index
    %111 = vector.load %arg5[%c2_112, %c4_113, %c0_114, %c0_115] : memref<5x5x128x128xf32, #tpu.memory_space<vmem>>, vector<1x1x128x128xf32>
    %112 = vector.shape_cast %111 : vector<1x1x128x128xf32> to vector<128x128xf32>
    %cst_116 = arith.constant dense<0.000000e+00> : vector<80x128xf32>
    %113 = tpu.matmul %110, %112, %cst_116 {dimension_numbers = #tpu.dot_dimension_numbers<[1], [0], [0], [1], [0, 0, 1, 1], [], []>} : vector<80x128xf32>, vector<128x128xf32>, vector<80x128xf32> -> vector<80x128xf32>
    %114 = arith.addf %109, %113 : vector<80x128xf32>
    %c2_117 = arith.constant 2 : index
    %c0_118 = arith.constant 0 : index
    %c0_119 = arith.constant 0 : index
    %115 = vector.load %arg6[%c2_117, %c0_118, %c0_119] : memref<5x1x128xf32, #tpu.memory_space<vmem>>, vector<1x1x128xf32>
    %116 = vector.shape_cast %115 : vector<1x1x128xf32> to vector<1x128xf32>
    %117 = vector.broadcast %116 : vector<1x128xf32> to vector<80x128xf32>
    %118 = arith.addf %114, %117 : vector<80x128xf32>
    %119 = math.tanh %118 : vector<80x128xf32>
    %cst_120 = arith.constant 0.000000e+00 : f32
    %120 = vector.shape_cast %16 : vector<80x1xi1> to vector<80x1xi1>
    %121 = vector.broadcast %120 : vector<80x1xi1> to vector<80x128xi1>
    %122 = vector.broadcast %cst_120 : f32 to vector<80x128xf32>
    %123 = arith.select %121, %119, %122 : vector<80x128xi1>, vector<80x128xf32>
    %c8_121 = arith.constant 8 : index
    %c0_122 = arith.constant 0 : index
    %124 = vector.load %arg8[%c8_121, %c0_122] : memref<96x128xf32, #tpu.memory_space<vmem>>, vector<80x128xf32>
    tpu.vector_store %arg8[%c8_121, %c0_122], %123 {strides = array<i32>} : memref<96x128xf32, #tpu.memory_space<vmem>>, vector<80x128xf32>,
    %c3_123 = arith.constant 3 : index
    %c2_124 = arith.constant 2 : index
    %c0_125 = arith.constant 0 : index
    %c0_126 = arith.constant 0 : index
    %125 = vector.load %arg5[%c3_123, %c2_124, %c0_125, %c0_126] : memref<5x5x128x128xf32, #tpu.memory_space<vmem>>, vector<1x1x128x128xf32>
    %126 = vector.shape_cast %125 : vector<1x1x128x128xf32> to vector<128x128xf32>
    %cst_127 = arith.constant dense<0.000000e+00> : vector<80x128xf32>
    %127 = tpu.matmul %123, %126, %cst_127 {dimension_numbers = #tpu.dot_dimension_numbers<[1], [0], [0], [1], [0, 0, 1, 1], [], []>} : vector<80x128xf32>, vector<128x128xf32>, vector<80x128xf32> -> vector<80x128xf32>
    %c6_128 = arith.constant 6 : index
    %c0_129 = arith.constant 0 : index
    %128 = vector.load %arg8[%c6_128, %c0_129] : memref<96x128xf32, #tpu.memory_space<vmem>>, vector<80x128xf32>
    %c3_130 = arith.constant 3 : index
    %c0_131 = arith.constant 0 : index
    %c0_132 = arith.constant 0 : index
    %c0_133 = arith.constant 0 : index
    %129 = vector.load %arg5[%c3_130, %c0_131, %c0_132, %c0_133] : memref<5x5x128x128xf32, #tpu.memory_space<vmem>>, vector<1x1x128x128xf32>
    %130 = vector.shape_cast %129 : vector<1x1x128x128xf32> to vector<128x128xf32>
    %cst_134 = arith.constant dense<0.000000e+00> : vector<80x128xf32>
    %131 = tpu.matmul %128, %130, %cst_134 {dimension_numbers = #tpu.dot_dimension_numbers<[1], [0], [0], [1], [0, 0, 1, 1], [], []>} : vector<80x128xf32>, vector<128x128xf32>, vector<80x128xf32> -> vector<80x128xf32>
    %132 = arith.addf %127, %131 : vector<80x128xf32>
    %c7_135 = arith.constant 7 : index
    %c0_136 = arith.constant 0 : index
    %133 = vector.load %arg8[%c7_135, %c0_136] : memref<96x128xf32, #tpu.memory_space<vmem>>, vector<80x128xf32>
    %c3_137 = arith.constant 3 : index
    %c1_138 = arith.constant 1 : index
    %c0_139 = arith.constant 0 : index
    %c0_140 = arith.constant 0 : index
    %134 = vector.load %arg5[%c3_137, %c1_138, %c0_139, %c0_140] : memref<5x5x128x128xf32, #tpu.memory_space<vmem>>, vector<1x1x128x128xf32>
    %135 = vector.shape_cast %134 : vector<1x1x128x128xf32> to vector<128x128xf32>
    %cst_141 = arith.constant dense<0.000000e+00> : vector<80x128xf32>
    %136 = tpu.matmul %133, %135, %cst_141 {dimension_numbers = #tpu.dot_dimension_numbers<[1], [0], [0], [1], [0, 0, 1, 1], [], []>} : vector<80x128xf32>, vector<128x128xf32>, vector<80x128xf32> -> vector<80x128xf32>
    %137 = arith.addf %132, %136 : vector<80x128xf32>
    %c9_142 = arith.constant 9 : index
    %c0_143 = arith.constant 0 : index
    %138 = vector.load %arg8[%c9_142, %c0_143] : memref<96x128xf32, #tpu.memory_space<vmem>>, vector<80x128xf32>
    %c3_144 = arith.constant 3 : index
    %c3_145 = arith.constant 3 : index
    %c0_146 = arith.constant 0 : index
    %c0_147 = arith.constant 0 : index
    %139 = vector.load %arg5[%c3_144, %c3_145, %c0_146, %c0_147] : memref<5x5x128x128xf32, #tpu.memory_space<vmem>>, vector<1x1x128x128xf32>
    %140 = vector.shape_cast %139 : vector<1x1x128x128xf32> to vector<128x128xf32>
    %cst_148 = arith.constant dense<0.000000e+00> : vector<80x128xf32>
    %141 = tpu.matmul %138, %140, %cst_148 {dimension_numbers = #tpu.dot_dimension_numbers<[1], [0], [0], [1], [0, 0, 1, 1], [], []>} : vector<80x128xf32>, vector<128x128xf32>, vector<80x128xf32> -> vector<80x128xf32>
    %142 = arith.addf %137, %141 : vector<80x128xf32>
    %c10_149 = arith.constant 10 : index
    %c0_150 = arith.constant 0 : index
    %143 = vector.load %arg8[%c10_149, %c0_150] : memref<96x128xf32, #tpu.memory_space<vmem>>, vector<80x128xf32>
    %c3_151 = arith.constant 3 : index
    %c4_152 = arith.constant 4 : index
    %c0_153 = arith.constant 0 : index
    %c0_154 = arith.constant 0 : index
    %144 = vector.load %arg5[%c3_151, %c4_152, %c0_153, %c0_154] : memref<5x5x128x128xf32, #tpu.memory_space<vmem>>, vector<1x1x128x128xf32>
    %145 = vector.shape_cast %144 : vector<1x1x128x128xf32> to vector<128x128xf32>
    %cst_155 = arith.constant dense<0.000000e+00> : vector<80x128xf32>
    %146 = tpu.matmul %143, %145, %cst_155 {dimension_numbers = #tpu.dot_dimension_numbers<[1], [0], [0], [1], [0, 0, 1, 1], [], []>} : vector<80x128xf32>, vector<128x128xf32>, vector<80x128xf32> -> vector<80x128xf32>
    %147 = arith.addf %142, %146 : vector<80x128xf32>
    %c3_156 = arith.constant 3 : index
    %c0_157 = arith.constant 0 : index
    %c0_158 = arith.constant 0 : index
    %148 = vector.load %arg6[%c3_156, %c0_157, %c0_158] : memref<5x1x128xf32, #tpu.memory_space<vmem>>, vector<1x1x128xf32>
    %149 = vector.shape_cast %148 : vector<1x1x128xf32> to vector<1x128xf32>
    %150 = vector.broadcast %149 : vector<1x128xf32> to vector<80x128xf32>
    %151 = arith.addf %147, %150 : vector<80x128xf32>
    %152 = math.tanh %151 : vector<80x128xf32>
    %cst_159 = arith.constant 0.000000e+00 : f32
    %153 = vector.shape_cast %16 : vector<80x1xi1> to vector<80x1xi1>
    %154 = vector.broadcast %153 : vector<80x1xi1> to vector<80x128xi1>
    %155 = vector.broadcast %cst_159 : f32 to vector<80x128xf32>
    %156 = arith.select %154, %152, %155 : vector<80x128xi1>, vector<80x128xf32>
    %c8_160 = arith.constant 8 : index
    %c0_161 = arith.constant 0 : index
    %157 = vector.load %arg8[%c8_160, %c0_161] : memref<96x128xf32, #tpu.memory_space<vmem>>, vector<80x128xf32>
    tpu.vector_store %arg8[%c8_160, %c0_161], %156 {strides = array<i32>} : memref<96x128xf32, #tpu.memory_space<vmem>>, vector<80x128xf32>,
    %c4_162 = arith.constant 4 : index
    %c2_163 = arith.constant 2 : index
    %c0_164 = arith.constant 0 : index
    %c0_165 = arith.constant 0 : index
    %158 = vector.load %arg5[%c4_162, %c2_163, %c0_164, %c0_165] : memref<5x5x128x128xf32, #tpu.memory_space<vmem>>, vector<1x1x128x128xf32>
    %159 = vector.shape_cast %158 : vector<1x1x128x128xf32> to vector<128x128xf32>
    %cst_166 = arith.constant dense<0.000000e+00> : vector<80x128xf32>
    %160 = tpu.matmul %156, %159, %cst_166 {dimension_numbers = #tpu.dot_dimension_numbers<[1], [0], [0], [1], [0, 0, 1, 1], [], []>} : vector<80x128xf32>, vector<128x128xf32>, vector<80x128xf32> -> vector<80x128xf32>
    %c6_167 = arith.constant 6 : index
    %c0_168 = arith.constant 0 : index
    %161 = vector.load %arg8[%c6_167, %c0_168] : memref<96x128xf32, #tpu.memory_space<vmem>>, vector<80x128xf32>
    %c4_169 = arith.constant 4 : index
    %c0_170 = arith.constant 0 : index
    %c0_171 = arith.constant 0 : index
    %c0_172 = arith.constant 0 : index
    %162 = vector.load %arg5[%c4_169, %c0_170, %c0_171, %c0_172] : memref<5x5x128x128xf32, #tpu.memory_space<vmem>>, vector<1x1x128x128xf32>
    %163 = vector.shape_cast %162 : vector<1x1x128x128xf32> to vector<128x128xf32>
    %cst_173 = arith.constant dense<0.000000e+00> : vector<80x128xf32>
    %164 = tpu.matmul %161, %163, %cst_173 {dimension_numbers = #tpu.dot_dimension_numbers<[1], [0], [0], [1], [0, 0, 1, 1], [], []>} : vector<80x128xf32>, vector<128x128xf32>, vector<80x128xf32> -> vector<80x128xf32>
    %165 = arith.addf %160, %164 : vector<80x128xf32>
    %c7_174 = arith.constant 7 : index
    %c0_175 = arith.constant 0 : index
    %166 = vector.load %arg8[%c7_174, %c0_175] : memref<96x128xf32, #tpu.memory_space<vmem>>, vector<80x128xf32>
    %c4_176 = arith.constant 4 : index
    %c1_177 = arith.constant 1 : index
    %c0_178 = arith.constant 0 : index
    %c0_179 = arith.constant 0 : index
    %167 = vector.load %arg5[%c4_176, %c1_177, %c0_178, %c0_179] : memref<5x5x128x128xf32, #tpu.memory_space<vmem>>, vector<1x1x128x128xf32>
    %168 = vector.shape_cast %167 : vector<1x1x128x128xf32> to vector<128x128xf32>
    %cst_180 = arith.constant dense<0.000000e+00> : vector<80x128xf32>
    %169 = tpu.matmul %166, %168, %cst_180 {dimension_numbers = #tpu.dot_dimension_numbers<[1], [0], [0], [1], [0, 0, 1, 1], [], []>} : vector<80x128xf32>, vector<128x128xf32>, vector<80x128xf32> -> vector<80x128xf32>
    %170 = arith.addf %165, %169 : vector<80x128xf32>
    %c9_181 = arith.constant 9 : index
    %c0_182 = arith.constant 0 : index
    %171 = vector.load %arg8[%c9_181, %c0_182] : memref<96x128xf32, #tpu.memory_space<vmem>>, vector<80x128xf32>
    %c4_183 = arith.constant 4 : index
    %c3_184 = arith.constant 3 : index
    %c0_185 = arith.constant 0 : index
    %c0_186 = arith.constant 0 : index
    %172 = vector.load %arg5[%c4_183, %c3_184, %c0_185, %c0_186] : memref<5x5x128x128xf32, #tpu.memory_space<vmem>>, vector<1x1x128x128xf32>
    %173 = vector.shape_cast %172 : vector<1x1x128x128xf32> to vector<128x128xf32>
    %cst_187 = arith.constant dense<0.000000e+00> : vector<80x128xf32>
    %174 = tpu.matmul %171, %173, %cst_187 {dimension_numbers = #tpu.dot_dimension_numbers<[1], [0], [0], [1], [0, 0, 1, 1], [], []>} : vector<80x128xf32>, vector<128x128xf32>, vector<80x128xf32> -> vector<80x128xf32>
    %175 = arith.addf %170, %174 : vector<80x128xf32>
    %c10_188 = arith.constant 10 : index
    %c0_189 = arith.constant 0 : index
    %176 = vector.load %arg8[%c10_188, %c0_189] : memref<96x128xf32, #tpu.memory_space<vmem>>, vector<80x128xf32>
    %c4_190 = arith.constant 4 : index
    %c4_191 = arith.constant 4 : index
    %c0_192 = arith.constant 0 : index
    %c0_193 = arith.constant 0 : index
    %177 = vector.load %arg5[%c4_190, %c4_191, %c0_192, %c0_193] : memref<5x5x128x128xf32, #tpu.memory_space<vmem>>, vector<1x1x128x128xf32>
    %178 = vector.shape_cast %177 : vector<1x1x128x128xf32> to vector<128x128xf32>
    %cst_194 = arith.constant dense<0.000000e+00> : vector<80x128xf32>
    %179 = tpu.matmul %176, %178, %cst_194 {dimension_numbers = #tpu.dot_dimension_numbers<[1], [0], [0], [1], [0, 0, 1, 1], [], []>} : vector<80x128xf32>, vector<128x128xf32>, vector<80x128xf32> -> vector<80x128xf32>
    %180 = arith.addf %175, %179 : vector<80x128xf32>
    %c4_195 = arith.constant 4 : index
    %c0_196 = arith.constant 0 : index
    %c0_197 = arith.constant 0 : index
    %181 = vector.load %arg6[%c4_195, %c0_196, %c0_197] : memref<5x1x128xf32, #tpu.memory_space<vmem>>, vector<1x1x128xf32>
    %182 = vector.shape_cast %181 : vector<1x1x128xf32> to vector<1x128xf32>
    %183 = vector.broadcast %182 : vector<1x128xf32> to vector<80x128xf32>
    %184 = arith.addf %180, %183 : vector<80x128xf32>
    %cst_198 = arith.constant 0.000000e+00 : f32
    %185 = vector.shape_cast %16 : vector<80x1xi1> to vector<80x1xi1>
    %186 = vector.broadcast %185 : vector<80x1xi1> to vector<80x128xi1>
    %187 = vector.broadcast %cst_198 : f32 to vector<80x128xf32>
    %188 = arith.select %186, %184, %187 : vector<80x128xi1>, vector<80x128xf32>
    %c0_199 = arith.constant 0 : index
    %c0_200 = arith.constant 0 : index
    %c0_201 = arith.constant 0 : index
    %189 = vector.load %arg7[%c0_199, %c0_200, %c0_201] : memref<2x80x128xf32, #tpu.memory_space<vmem>>, vector<1x80x128xf32>
    %190 = vector.shape_cast %189 : vector<1x80x128xf32> to vector<80x128xf32>
    %191 = vector.shape_cast %6 : vector<80x128xf32> to vector<1x80x128xf32>
    tpu.vector_store %arg7[%c0_199, %c0_200, %c0_201], %191 {strides = array<i32>} : memref<2x80x128xf32, #tpu.memory_space<vmem>>, vector<1x80x128xf32>,
    %192 = arith.addf %6, %188 : vector<80x128xf32>
    %c1_202 = arith.constant 1 : index
    %c0_203 = arith.constant 0 : index
    %c0_204 = arith.constant 0 : index
    %193 = vector.load %arg7[%c1_202, %c0_203, %c0_204] : memref<2x80x128xf32, #tpu.memory_space<vmem>>, vector<1x80x128xf32>
    %194 = vector.shape_cast %193 : vector<1x80x128xf32> to vector<80x128xf32>
    %195 = vector.shape_cast %192 : vector<80x128xf32> to vector<1x80x128xf32>
    tpu.vector_store %arg7[%c1_202, %c0_203, %c0_204], %195 {strides = array<i32>} : memref<2x80x128xf32, #tpu.memory_space<vmem>>, vector<1x80x128xf32>,
    return
  }
  func.func @transform_0(%arg0: i32, %arg1: memref<1xi32, #tpu.memory_space<smem>>) -> (i32, i32) {
    %c0_i32 = arith.constant 0 : i32
    %c0_i32_0 = arith.constant 0 : i32
    %c0_i32_1 = arith.constant 0 : i32
    return %c0_i32, %c0_i32_0 : i32, i32
  }
  func.func @transform_1(%arg0: i32, %arg1: memref<1xi32, #tpu.memory_space<smem>>) -> (i32, i32) {
    %c0_i32 = arith.constant 0 : i32
    %c0_i32_0 = arith.constant 0 : i32
    %c0_i32_1 = arith.constant 0 : i32
    return %c0_i32, %c0_i32_0 : i32, i32
  }
  func.func @transform_2(%arg0: i32, %arg1: memref<1xi32, #tpu.memory_space<smem>>) -> (i32, i32) {
    %c0_i32 = arith.constant 0 : i32
    %c0_i32_0 = arith.constant 0 : i32
    %c0_i32_1 = arith.constant 0 : i32
    return %c0_i32, %c0_i32_0 : i32, i32
  }
  func.func @transform_3(%arg0: i32, %arg1: memref<1xi32, #tpu.memory_space<smem>>) -> (i32, i32, i32, i32) {
    %c0_i32 = arith.constant 0 : i32
    %c0_i32_0 = arith.constant 0 : i32
    %c0_i32_1 = arith.constant 0 : i32
    %c0_i32_2 = arith.constant 0 : i32
    %c0_i32_3 = arith.constant 0 : i32
    return %c0_i32, %c0_i32_0, %c0_i32_1, %c0_i32_2 : i32, i32, i32, i32
  }
  func.func @transform_4(%arg0: i32, %arg1: memref<1xi32, #tpu.memory_space<smem>>) -> (i32, i32, i32) {
    %c0_i32 = arith.constant 0 : i32
    %c0_i32_0 = arith.constant 0 : i32
    %c0_i32_1 = arith.constant 0 : i32
    %c0_i32_2 = arith.constant 0 : i32
    return %c0_i32, %c0_i32_0, %c0_i32_1 : i32, i32, i32
  }
  func.func @transform_5(%arg0: i32, %arg1: memref<1xi32, #tpu.memory_space<smem>>) -> (i32, i32, i32) {
    %c0_i32 = arith.constant 0 : i32
    %c0_i32_0 = arith.constant 0 : i32
    %c0_i32_1 = arith.constant 0 : i32
    %c0_i32_2 = arith.constant 0 : i32
    return %c0_i32, %c0_i32_0, %c0_i32_1 : i32, i32, i32
  }
}

</mosaic_0001>

<bundles_post_ra>
// kernel: tpu_custom_call.1
= control target key start
LH: loop header
LB: loop body
LE: loop exit
PB: predicated region body
PF: predicated region fallthrough
CT: control target
= control target key end

     0   :  { %12 = vsyncpa [#allocation6], 0  ;;  %s8171_s0 = inlined_call_operand.<no memory space> [shape: s32[1], index: 0, kind: input, shape index: {}]   ;;  %s8172_s1 = inlined_call_operand.hbm [shape: f32[80,128], index: 1, kind: input, shape index: {}]   ;;  %s8173_s2 = inlined_call_operand.hbm [shape: f32[128,128], index: 2, kind: input, shape index: {}]   ;;  %s8174_s3 = inlined_call_operand.hbm [shape: f32[1,128], index: 3, kind: input, shape index: {}]   ;;  %s8175_s4 = inlined_call_operand.hbm [shape: f32[5,5,128,128], index: 4, kind: input, shape index: {}]   ;;  %s8176_s5 = inlined_call_operand.hbm [shape: f32[5,1,128], index: 5, kind: input, shape index: {}]   ;;  %s8177_s6 = inlined_call_operand.hbm [shape: f32[2,80,128], index: 6, kind: output, shape index: {}]  }
   0x1   :  { %13 = vsyncpa [#allocation9], 0 }
   0x2   :  { %14 = vsyncpa [#allocation12], 0 }
   0x3   :  { %15 = vsyncpa [#allocation7], 0  ;;  %s7489_s21 = smov [#allocation8]   ;;  %s7490_s23 = smov [#allocation11]  }
   0x4   :  { %s33_s22 = sshll.u32 %s7489_s21, 4  ;;  %s55_s24 = sshll.u32 %s7490_s23, 4  ;;  %s34_s22 = int_to_ptr.vmem [resolvable:$true] %s33_s22  ;;  %s7535_s24 = int_to_ptr.vmem [resolvable:$true] %s55_s24 }
   0x5   :  { %s7349_s27 = scalar_lea.hbm %s8173_s2, 2048 }
   0x6   :  { %p7350_p0 = scmp.ne.s32.totalorder %s8173_s2, %s7349_s27  ;;  %p7353_p1 = scmp.lt.u32.totalorder %s7349_s27, %s8173_s2 }
   0x8   :  { %p7355_p2 = pnand %p7353_p1, %p7350_p0 }
   0xa   :  { %7358 = shalt.err (!%p7355_p2)
}
   0xb   :  { %s7359_s8 = scalar_lea.vmem %s34_s22, 2048  ;;  %p7364_p4 = scmp.lt.s32.totalorder %s34_s22, %s34_s22 }
   0xc   :  { %p7360_p3 = scmp.ne.s32.totalorder %s34_s22, %s7359_s8  ;;  %p7365_p5 = scmp.lt.s32.totalorder %s7359_s8, %s7359_s8 }
   0xe   :  { %p7366_p6 = por %p7365_p5, %p7364_p4 }
  0x10   :  { %p7367_p7 = pnand %p7366_p6, %p7360_p3 }
  0x12   :  { %7370 = shalt.err (!%p7367_p7)
}
  0x13   :  { %s7491_s9 = smov 128   ;;  %s7492_s10 = smov 8  }
  0x14   :  { %39 = dma.hbm_to_vmem [thread:$0]  %s8173_s2, 2048, %s34_s22, [#allocation9], %s7491_s9, %s7491_s9, %s7492_s10  }
  0x15   :  { %s7371_s15 = scalar_lea.hbm %s8175_s4, 51200 }
  0x16   :  { %p7372_p8 = scmp.ne.s32.totalorder %s8175_s4, %s7371_s15  ;;  %p7375_p9 = scmp.lt.u32.totalorder %s7371_s15, %s8175_s4 }
  0x18   :  { %p7377_p10 = pnand %p7375_p9, %p7372_p8 }
  0x1a   :  { %7380 = shalt.err (!%p7377_p10)
}
  0x1b   :  { %s7381_s20 = scalar_lea.vmem %s7535_s24, 51200  ;;  %p7386_p12 = scmp.lt.s32.totalorder %s7535_s24, %s7535_s24 }
  0x1c   :  { %p7382_p11 = scmp.ne.s32.totalorder %s7535_s24, %s7381_s20  ;;  %p7387_p13 = scmp.lt.s32.totalorder %s7381_s20, %s7381_s20 }
  0x1e   :  { %p7388_p0 = por %p7387_p13, %p7386_p12 }
  0x20   :  { %p7389_p1 = pnand %p7388_p0, %p7382_p11 }
  0x22   :  { %7392 = shalt.err (!%p7389_p1)
}
  0x23   :  { %61 = dma.hbm_to_vmem [thread:$0]  %s8175_s4, 51200, %s7535_s24, [#allocation12], %s7491_s9, %s7491_s9, %s7492_s10  }
  0x24   :  { %s7493_s22 = smov [#allocation5]   ;;  %s7494_s25 = smov [#allocation10]  }
  0x25   :  { %s21_s23 = sshll.u32 %s7493_s22, 4  ;;  %s46_s26 = sshll.u32 %s7494_s25, 4  ;;  %s22_s23 = int_to_ptr.vmem [resolvable:$true] %s21_s23  ;;  %s47_s26 = int_to_ptr.vmem [resolvable:$true] %s46_s26 }
  0x26   :  { %s7393_s29 = scalar_lea.hbm %s8172_s1, 1280 }
  0x27   :  { %p7394_p2 = scmp.ne.s32.totalorder %s8172_s1, %s7393_s29  ;;  %p7397_p3 = scmp.lt.u32.totalorder %s7393_s29, %s8172_s1 }
  0x29   :  { %p7399_p4 = pnand %p7397_p3, %p7394_p2 }
  0x2b   :  { %7402 = shalt.err (!%p7399_p4)
}
  0x2c   :  { %s7403_s4 = scalar_lea.vmem %s22_s23, 1280  ;;  %p7408_p6 = scmp.lt.s32.totalorder %s22_s23, %s22_s23 }
  0x2d   :  { %p7404_p5 = scmp.ne.s32.totalorder %s22_s23, %s7403_s4  ;;  %p7409_p7 = scmp.lt.s32.totalorder %s7403_s4, %s7403_s4 }
  0x2f   :  { %p7410_p8 = por %p7409_p7, %p7408_p6 }
  0x31   :  { %p7411_p9 = pnand %p7410_p8, %p7404_p5 }
  0x33   :  { %7414 = shalt.err (!%p7411_p9)
}
  0x34   :  { %27 = dma.hbm_to_vmem [thread:$0]  %s8172_s1, 1280, %s22_s23, [#allocation6], %s7491_s9, %s7491_s9, %s7492_s10  }
  0x35   :  { %s7415_s15 = scalar_lea.hbm %s8174_s3, 16 }
  0x36   :  { %p7416_p10 = scmp.ne.s32.totalorder %s8174_s3, %s7415_s15  ;;  %p7419_p11 = scmp.lt.u32.totalorder %s7415_s15, %s8174_s3 }
  0x38   :  { %p7421_p12 = pnand %p7419_p11, %p7416_p10 }
  0x3a   :  { %7424 = shalt.err (!%p7421_p12)
}
  0x3b   :  { %s7425_s20 = scalar_lea.vmem %s47_s26, 16  ;;  %s7429_s2 = scalar_lea.vmem %s47_s26, 32 }
  0x3c   :  { %p7426_p13 = scmp.ne.s32.totalorder %s47_s26, %s7425_s20  ;;  %p7430_p0 = scmp.lt.s32.totalorder %s47_s26, %s47_s26 }
  0x3d   :  { %p7431_p1 = scmp.lt.s32.totalorder %s7429_s2, %s7425_s20 }
  0x3f   :  { %p7432_p2 = por %p7431_p1, %p7430_p0 }
  0x41   :  { %p7433_p3 = pnand %p7432_p2, %p7426_p13 }
  0x43   :  { %7436 = shalt.err (!%p7433_p3)
}
  0x44   :  { %49 = dma.hbm_to_vmem [thread:$0]  %s8174_s3, 16, %s47_s26, [#allocation9]  }
  0x45   :  { %s7495_s22 = smov [#allocation13]   ;;  %s7437_s28 = scalar_lea.hbm %s8176_s5, 80 }
  0x46   :  { %s67_s23 = sshll.u32 %s7495_s22, 4  ;;  %p7438_p4 = scmp.ne.s32.totalorder %s8176_s5, %s7437_s28  ;;  %s68_s23 = int_to_ptr.vmem [resolvable:$true] %s67_s23 }
  0x47   :  { %p7441_p5 = scmp.lt.u32.totalorder %s7437_s28, %s8176_s5 }
  0x49   :  { %p7443_p6 = pnand %p7441_p5, %p7438_p4 }
  0x4b   :  { %7446 = shalt.err (!%p7443_p6)
}
  0x4c   :  { %s7447_s11 = scalar_lea.vmem %s68_s23, 80  ;;  %s7451_s3 = scalar_lea.vmem %s68_s23, 96 }
  0x4d   :  { %p7448_p7 = scmp.ne.s32.totalorder %s68_s23, %s7447_s11  ;;  %p7452_p8 = scmp.lt.s32.totalorder %s68_s23, %s68_s23 }
  0x4e   :  { %p7453_p9 = scmp.lt.s32.totalorder %s7451_s3, %s7447_s11 }
  0x50   :  { %p7454_p10 = por %p7453_p9, %p7452_p8 }
  0x52   :  { %p7455_p11 = pnand %p7454_p10, %p7448_p7 }
  0x54   :  { %7458 = shalt.err (!%p7455_p11)
}
  0x55   :  { %s7496_s26 = smov 16   ;;  %s7497_s4 = smov 1  }
  0x56   :  { %73 = dma.hbm_to_vmem [thread:$0]  %s8176_s5, 80, %s68_s23, [#allocation12], %s7496_s26, %s7496_s26, %s7497_s4  }
  0x57   :  { %7481 = dma.done.wait [#allocation6], 1280  }
  0x58   :  { %7482 = vsyncadd [#allocation6], 4294966016 }
  0x59   :  { %7483 = dma.done.wait [#allocation9], 2064  }
  0x5a   :  { %7484 = vsyncadd [#allocation9], 4294965232 }
  0x5b   :  { %7485 = dma.done.wait [#allocation12], 51280  }
  0x5c   :  { %7486 = vsyncadd [#allocation12], 4294916016  ;;  %v100_v0 = vld [vmem:[#allocation8] sm:$0xff]  ;;  %v101_v1 = vld [vmem:[#allocation8 + $0x8] sm:$0xff]  ;;  %s270_s16 = sadd.s32 40, %s8171_s0 }
  0x5d   :  { %v102_v2 = vld [vmem:[#allocation8 + $0x10] sm:$0xff]  ;;  %v6216_v3 = vpack.c.bf16 %v101_v1, %v100_v0  ;;  %v103_v4 = vld [vmem:[#allocation8 + $0x18] sm:$0xff]  ;;  %v104_v6 = vld [vmem:[#allocation8 + $0x20] sm:$0xff] }
  0x5e   :  { %v6220_v5 = vpack.c.bf16 %v103_v4, %v102_v2  ;;  %v105_v7 = vld [vmem:[#allocation8 + $0x28] sm:$0xff]  ;;  %v90_v9 = vld [vmem:[#allocation5] sm:$0xff]  ;;  %v107_v11 = vld [vmem:[#allocation8 + $0x38] sm:$0xff] }
  0x5f   :  { %6217 = vmatprep.subr.bf16.mxu0 %v6216_v3  ;;  %v6224_v8 = vpack.c.bf16 %v105_v7, %v104_v6  ;;  %v106_v10 = vld [vmem:[#allocation8 + $0x30] sm:$0xff]  ;;  %5026 = vmatprep.mubr.f32.mxu0 %v90_v9  ;;  %v628_v13 = vld [vmem:[#allocation11 + $0x80] sm:$0xff]  ;;  %v631_v19 = vld [vmem:[#allocation11 + $0x98] sm:$0xff] }
  0x60   :  { %6219 = vmatpush3.bf16.msra.mxu0 %v6216_v3  ;;  %v6228_v12 = vpack.c.bf16 %v107_v11, %v106_v10  ;;  %v629_v14 = vld [vmem:[#allocation11 + $0x88] sm:$0xff]  ;;  %v108_v15 = vld [vmem:[#allocation8 + $0x40] sm:$0xff]  ;;  %v630_v18 = vld [vmem:[#allocation11 + $0x90] sm:$0xff] }
  0x61   :  { %6221 = vmatprep.subr.bf16.mxu0 %v6220_v5  ;;  %v109_v16 = vld [vmem:[#allocation8 + $0x48] sm:$0xff]  ;;  %v6312_v17 = vpack.c.bf16 %v629_v14, %v628_v13  ;;  %v6316_v20 = vpack.c.bf16 %v631_v19, %v630_v18  ;;  %v110_v24 = vld [vmem:[#allocation8 + $0x50] sm:$0xff]  ;;  %v111_v25 = vld [vmem:[#allocation8 + $0x58] sm:$0xff] }
  0x62   :  { %v632_v21 = vld [vmem:[#allocation11 + $0xa0] sm:$0xff]  ;;  %v633_v22 = vld [vmem:[#allocation11 + $0xa8] sm:$0xff]  ;;  %v6232_v23 = vpack.c.bf16 %v109_v16, %v108_v15  ;;  %v634_v27 = vld [vmem:[#allocation11 + $0xb0] sm:$0xff]  ;;  %v6236_v29 = vpack.c.bf16 %v111_v25, %v110_v24  ;;  %v238_v25 = vlaneseq }
  0x63   :  { %6313 = vmatprep.subr.bf16.mxu1 %v6312_v17  ;;  %v6320_v26 = vpack.c.bf16 %v633_v22, %v632_v21  ;;  %v635_v28 = vld [vmem:[#allocation11 + $0xb8] sm:$0xff]  ;;  %v113_v31 = vld [vmem:[#allocation8 + $0x68] sm:$0xff]  ;;  %v114_v36 = vld [vmem:[#allocation8 + $0x70] sm:$0xff] }
  0x64   :  { %6223 = vmatpush3.bf16.msra.mxu0 %v6220_v5  ;;  %6315 = vmatpush3.bf16.msra.mxu1 %v6312_v17  ;;  %v112_v30 = vld [vmem:[#allocation8 + $0x60] sm:$0xff]  ;;  %v6324_v32 = vpack.c.bf16 %v635_v28, %v634_v27  ;;  %v637_v34 = vld [vmem:[#allocation11 + $0xc8] sm:$0xff]  ;;  %v115_v37 = vld [vmem:[#allocation8 + $0x78] sm:$0xff]  ;;  %v7620_v28 = vstv %s8171_s0  ;;  %s7499_s0 = smov [#allocation14]  }
  0x65   :  { %6225 = vmatprep.subr.bf16.mxu0 %v6224_v8  ;;  %6317 = vmatprep.subr.bf16.mxu1 %v6316_v20  ;;  %v636_v33 = vld [vmem:[#allocation11 + $0xc0] sm:$0xff]  ;;  %v6240_v35 = vpack.c.bf16 %v113_v31, %v112_v30  ;;  %v6244_v39 = vpack.c.bf16 %v115_v37, %v114_v36  ;;  %v372_v41 = vld [vmem:[#allocation11 + $0x8] sm:$0xff]  ;;  %v373_v43 = vld [vmem:[#allocation11 + $0x10] sm:$0xff]  ;;  %s4248_s17 = sshll.u32 %s7499_s0, 4  ;;  %s4249_s17 = int_to_ptr.vmem [resolvable:$true] %s4248_s17 }
  0x66   :  { %v6328_v38 = vpack.c.bf16 %v637_v34, %v636_v33  ;;  %v371_v40 = vld [vmem:[#allocation11] sm:$0xff]  ;;  %v374_v44 = vld [vmem:[#allocation11 + $0x18] sm:$0xff]  ;;  %v376_v49 = vld [vmem:[#allocation11 + $0x28] sm:$0xff]  ;;  %s7459_s18 = scalar_lea.vmem %s4249_s17, 2560  ;;  %p7464_p13 = scmp.lt.s32.totalorder %s4249_s17, %s4249_s17 }
  0x67   :  { %v6248_v42 = vpack.c.bf16 %v372_v41, %v371_v40  ;;  %v91_v45 = vld [vmem:[#allocation5 + $0x8] sm:$0xff]  ;;  %v92_v46 = vld [vmem:[#allocation5 + $0x10] sm:$0xff]  ;;  %v6252_v47 = vpack.c.bf16 %v374_v44, %v373_v43  ;;  %v93_v50 = vld [vmem:[#allocation5 + $0x18] sm:$0xff]  ;;  %p7460_p12 = scmp.ne.s32.totalorder %s4249_s17, %s7459_s18  ;;  %p7465_p0 = scmp.lt.s32.totalorder %s7459_s18, %s7459_s18 }
  0x68   :  { %6227 = vmatpush3.bf16.msra.mxu0 %v6224_v8  ;;  %6319 = vmatpush3.bf16.msra.mxu1 %v6316_v20  ;;  %v375_v48 = vld [vmem:[#allocation11 + $0x20] sm:$0xff]  ;;  %v94_v51 = vld [vmem:[#allocation5 + $0x20] sm:$0xff]  ;;  %v378_v54 = vld [vmem:[#allocation11 + $0x38] sm:$0xff] }
  0x69   :  { %6229 = vmatprep.subr.bf16.mxu0 %v6228_v12  ;;  %6321 = vmatprep.subr.bf16.mxu1 %v6320_v26  ;;  %v6256_v52 = vpack.c.bf16 %v376_v49, %v375_v48  ;;  %v377_v53 = vld [vmem:[#allocation11 + $0x30] sm:$0xff]  ;;  %v96_v56 = vld [vmem:[#allocation5 + $0x30] sm:$0xff]  ;;  %v380_v59 = vld [vmem:[#allocation11 + $0x48] sm:$0xff]  ;;  %p7466_p1 = por %p7465_p0, %p7464_p13 }
  0x6a   :  { %v95_v55 = vld [vmem:[#allocation5 + $0x28] sm:$0xff]  ;;  %v6260_v57 = vpack.c.bf16 %v378_v54, %v377_v53  ;;  %v379_v58 = vld [vmem:[#allocation11 + $0x40] sm:$0xff]  ;;  %v98_v61 = vld [vmem:[#allocation5 + $0x40] sm:$0xff] }
  0x6b   :  { %v97_v60 = vld [vmem:[#allocation5 + $0x38] sm:$0xff]  ;;  %v6264_v62 = vpack.c.bf16 %v380_v59, %v379_v58  ;;  %v99_v63 = vld [vmem:[#allocation5 + $0x48] sm:$0xff]  ;;  %p7467_p2 = pnand %p7466_p1, %p7460_p12 }
  0x6c   :  { %6231 = vmatpush3.bf16.msra.mxu0 %v6228_v12  ;;  %6323 = vmatpush3.bf16.msra.mxu1 %v6320_v26  ;;  %v381_v0 = vld [vmem:[#allocation11 + $0x50] sm:$0xff]  ;;  %v382_v1 = vld [vmem:[#allocation11 + $0x58] sm:$0xff]  ;;  %v383_v6 = vld [vmem:[#allocation11 + $0x60] sm:$0xff]  ;;  %v7498_v12 = vmov 0.0   ;;  %v239_v26 = vshrl.u32 %v238_v25, 7 }
  0x6d   :  { %6233 = vmatprep.subr.bf16.mxu0 %v6232_v23  ;;  %6325 = vmatprep.subr.bf16.mxu1 %v6324_v32  ;;  %v638_v2 = vld [vmem:[#allocation11 + $0xd0] sm:$0xff]  ;;  %v6268_v3 = vpack.c.bf16 %v382_v1, %v381_v0  ;;  %v639_v4 = vld [vmem:[#allocation11 + $0xd8] sm:$0xff]  ;;  %v384_v7 = vld [vmem:[#allocation11 + $0x68] sm:$0xff]  ;;  %302 = vst [vmem:[#allocation2] sm:$0xff] %v7498_v12 }
  0x6e   :  { %v6332_v5 = vpack.c.bf16 %v639_v4, %v638_v2  ;;  %v640_v8 = vld [vmem:[#allocation11 + $0xe0] sm:$0xff]  ;;  %v6272_v9 = vpack.c.bf16 %v384_v7, %v383_v6  ;;  %v641_v10 = vld [vmem:[#allocation11 + $0xe8] sm:$0xff]  ;;  %303 = vst [vmem:[#allocation2 + $0x58] sm:$0xff] %v7498_v12  ;;  %v385_v13 = vld [vmem:[#allocation11 + $0x70] sm:$0xff]  ;;  %v240_v27 = vadd.s32 8, %v239_v26  ;;  %v241_v33 = vadd.s32 16, %v239_v26 }
  0x6f   :  { %v6336_v11 = vpack.c.bf16 %v641_v10, %v640_v8  ;;  %v386_v14 = vld [vmem:[#allocation11 + $0x78] sm:$0xff]  ;;  %v642_v15 = vld [vmem:[#allocation11 + $0xf0] sm:$0xff]  ;;  %v345_v19 = vld [vmem:[#allocation11 + $0x100] sm:$0xff]  ;;  %vm7636_vm1 = vcmp.lt.s32.totalorder %v239_v26, %v7620_v28  ;;  %v244_v37 = vadd.s32 40, %v239_v26  ;;  %v245_v41 = vadd.s32 48, %v239_v26 }
  0x70   :  { %6235 = vmatpush3.bf16.msra.mxu0 %v6232_v23  ;;  %6327 = vmatpush3.bf16.msra.mxu1 %v6324_v32  ;;  %v6276_v16 = vpack.c.bf16 %v386_v14, %v385_v13  ;;  %v643_v17 = vld [vmem:[#allocation11 + $0xf8] sm:$0xff]  ;;  %v346_v20 = vld [vmem:[#allocation11 + $0x108] sm:$0xff]  ;;  %v780_v21 = vld [vmem:[#allocation11 + $0x180] sm:$0xff]  ;;  %vm7628_vm0 = vcmp.lt.s32.totalorder %v240_v27, %v7620_v28  ;;  %v242_v32 = vadd.s32 24, %v239_v26  ;;  %vm7659_vm3 = vcmp.lt.s32.totalorder %v241_v33, %v7620_v28 }
  0x71   :  { %6237 = vmatprep.subr.bf16.mxu0 %v6236_v29  ;;  %6329 = vmatprep.subr.bf16.mxu1 %v6328_v38  ;;  %v6340_v18 = vpack.c.bf16 %v643_v17, %v642_v15  ;;  %v7611_v22 = vpack.c.bf16 %v346_v20, %v345_v19  ;;  %v781_v23 = vld [vmem:[#allocation11 + $0x188] sm:$0xff]  ;;  %vm255_vm4 = vcmp.lt.s32.totalorder %v244_v37, %v7620_v28  ;;  %v243_v49 = vadd.s32 32, %v239_v26  ;;  %v348_v58 = vld [vmem:[#allocation11 + $0x118] sm:$0xff] }
  0x72   :  { %v7613_v24 = vpack.c.bf16 %v781_v23, %v780_v21  ;;  %vm7654_vm2 = vcmp.lt.s32.totalorder %v242_v32, %v7620_v28  ;;  %vm256_vm6 = vcmp.lt.s32.totalorder %v245_v41, %v7620_v28  ;;  %v350_v6 = vld [vmem:[#allocation11 + $0x128] sm:$0xff]  ;;  %v351_v23 = vld [vmem:[#allocation11 + $0x130] sm:$0xff]  ;;  %v352_v25 = vld [vmem:[#allocation11 + $0x138] sm:$0xff] }
  0x73   :  { %vm7691_vm11 = vcmp.lt.s32.totalorder %v243_v49, %v7620_v28  ;;  %v785_v17 = vld [vmem:[#allocation11 + $0x1a8] sm:$0xff] }
  0x74   :  { %6239 = vmatpush3.bf16.msra.mxu0 %v6236_v29  ;;  %6331 = vmatpush3.bf16.msra.mxu1 %v6328_v38  ;;  %v7622_v29 = vld [vmem:[#allocation10] ss:$0 sm:$0xff] }
  0x75   :  { %6241 = vmatprep.subr.bf16.mxu0 %v6240_v35  ;;  %6333 = vmatprep.subr.bf16.mxu1 %v6332_v5 }
  0x78   :  { %6243 = vmatpush3.bf16.msra.mxu0 %v6240_v35  ;;  %6335 = vmatpush3.bf16.msra.mxu1 %v6332_v5  ;;  %v349_v5 = vld [vmem:[#allocation11 + $0x120] sm:$0xff] }
  0x79   :  { %6245 = vmatprep.subr.bf16.mxu0 %v6244_v39  ;;  %6337 = vmatprep.subr.bf16.mxu1 %v6336_v11 }
  0x7c   :  { %6247 = vmatpush3.bf16.msra.mxu0 %v6244_v39  ;;  %6339 = vmatpush3.bf16.msra.mxu1 %v6336_v11  ;;  %v7643_v39 = vstv %s270_s16 }
  0x7d   :  { %6249 = vmatprep.subr.bf16.mxu0 %v6248_v42  ;;  %6341 = vmatprep.subr.bf16.mxu1 %v6340_v18  ;;  %vm277_vm5 = vcmp.lt.s32.totalorder %v244_v37, %v7643_v39  ;;  %vm278_vm7 = vcmp.lt.s32.totalorder %v245_v41, %v7643_v39 }
  0x7e   :  { %vm7681_vm8 = vmor %vm255_vm4, %vm277_vm5 }
  0x7f   :  { %5027 = vmatmul.mubr.f32.vlgmr.msra.gmra.mrb[0].mxu0 %v91_v45  ;;  %vm7702_vm12 = vmor %vm256_vm6, %vm278_vm7 }
  0x80   :  { %5029 = vmatprep.mubr.f32.mxu0 %v92_v46  ;;  %6251 = vmatpush3.bf16.msra.mxu0 %v6248_v42  ;;  %v246_v46 = vadd.s32 56, %v239_v26 }
  0x81   :  { %6253 = vmatprep.subr.bf16.mxu0 %v6252_v47  ;;  %6343 = vmatpush3.bf16.msra.mxu1 %v6340_v18 }
  0x82   :  { %6345 = vmatprep.subr.bf16.mxu1 %v7613_v24  ;;  %vm257_vm9 = vcmp.lt.s32.totalorder %v246_v46, %v7620_v28  ;;  %vm279_vm10 = vcmp.lt.s32.totalorder %v246_v46, %v7643_v39  ;;  %v354_v46 = vld [vmem:[#allocation11 + $0x148] sm:$0xff] }
  0x83   :  { %5030 = vmatmul.mubr.f32.gmra.mrb[2].mxu0 %v93_v50  ;;  %vm7712_vm13 = vmor %vm257_vm9, %vm279_vm10 }
  0x84   :  { %5032 = vmatprep.mubr.f32.mxu0 %v94_v51  ;;  %6255 = vmatpush3.bf16.msra.mxu0 %v6252_v47 }
  0x85   :  { %6257 = vmatprep.subr.bf16.mxu0 %v6256_v52 }
  0x87   :  { %5033 = vmatmul.mubr.f32.gmra.mrb[4].mxu0 %v95_v55 }
  0x88   :  { %5035 = vmatprep.mubr.f32.mxu0 %v96_v56  ;;  %6259 = vmatpush3.bf16.msra.mxu0 %v6256_v52  ;;  %v248_v52 = vadd.s32 72, %v239_v26  ;;  %v247_v56 = vadd.s32 64, %v239_v26 }
  0x89   :  { %6261 = vmatprep.subr.bf16.mxu0 %v6260_v57 }
  0x8a   :  { %vm259_vm14 = vcmp.lt.s32.totalorder %v248_v52, %v7620_v28  ;;  %vm281_vm15 = vcmp.lt.s32.totalorder %v248_v52, %v7643_v39  ;;  %vm258_vm4 = vcmp.lt.s32.totalorder %v247_v56, %v7620_v28  ;;  %vm280_vm5 = vcmp.lt.s32.totalorder %v247_v56, %v7643_v39  ;;  %v786_v39 = vld [vmem:[#allocation11 + $0x1b0] sm:$0xff]  ;;  %v788_v56 = vld [vmem:[#allocation11 + $0x1c0] sm:$0xff] }
  0x8b   :  { %5036 = vmatmul.mubr.f32.gmra.mrb[6].mxu0 %v97_v60  ;;  %vm7734_vm6 = vmor %vm259_vm14, %vm281_vm15  ;;  %v6288_v28 = vpack.c.bf16 %v350_v6, %v349_v5  ;;  %v6292_v52 = vpack.c.bf16 %v352_v25, %v351_v23  ;;  %v355_v5 = vld [vmem:[#allocation11 + $0x150] sm:$0xff]  ;;  %v356_v6 = vld [vmem:[#allocation11 + $0x158] sm:$0xff] }
  0x8c   :  { %5038 = vmatprep.mubr.f32.mxu0 %v98_v61  ;;  %6263 = vmatpush3.bf16.msra.mxu0 %v6260_v57  ;;  %v347_v57 = vld [vmem:[#allocation11 + $0x110] sm:$0xff]  ;;  %vm7748_vm7 = vmor %vm258_vm4, %vm280_vm5  ;;  %v793_v23 = vld [vmem:[#allocation11 + $0x1e8] sm:$0xff] }
  0x8d   :  { %6265 = vmatprep.subr.bf16.mxu0 %v6264_v62  ;;  %v6284_v4 = vpack.c.bf16 %v348_v58, %v347_v57  ;;  %v789_v57 = vld [vmem:[#allocation11 + $0x1c8] sm:$0xff] }
  0x8f   :  { %5039 = vmatmul.mubr.f32.gmra.mrb[8].mxu0 %v99_v63  ;;  %v783_v63 = vld [vmem:[#allocation11 + $0x198] sm:$0xff] }
  0x90   :  { %6267 = vmatpush3.bf16.msra.mxu0 %v6264_v62  ;;  %v782_v62 = vld [vmem:[#allocation11 + $0x190] sm:$0xff] }
  0x91   :  { %6269 = vmatprep.subr.bf16.mxu0 %v6268_v3  ;;  %v6348_v12 = vpack.c.bf16 %v783_v63, %v782_v62 }
  0x94   :  { %6271 = vmatpush3.bf16.msra.mxu0 %v6268_v3 }
  0x95   :  { %6273 = vmatprep.subr.bf16.mxu0 %v6272_v9 }
  0x98   :  { %6275 = vmatpush3.bf16.msra.mxu0 %v6272_v9 }
  0x99   :  { %6277 = vmatprep.subr.bf16.mxu0 %v6276_v16 }
  0x9c   :  { %6279 = vmatpush3.bf16.msra.mxu0 %v6276_v16  ;;  %v784_v16 = vld [vmem:[#allocation11 + $0x1a0] sm:$0xff] }
  0x9d   :  { %6281 = vmatprep.subr.bf16.mxu0 %v7611_v22  ;;  %v6352_v32 = vpack.c.bf16 %v785_v17, %v784_v16  ;;  %v6300_v16 = vpack.c.bf16 %v356_v6, %v355_v5  ;;  %v945_v5 = vld [vmem:[#allocation11 + $0x268] sm:$0xff] }
 0x152   :  { %v5028_v30 = vpop.f32.mrb[0].mxu0 }
 0x153   :  { %v7633_v34 = vadd.f32 %v5028_v30, %v7622_v29  ;;  %v189_v35 = vpop.f32.mrb[1].mxu0 }
 0x154   :  { %v7641_v38 = vadd.f32 %v7622_v29, %v189_v35 }
 0x155   :  { %v325_v40 = vsel %vm7628_vm0, %v7633_v34, 0.0  ;;  %4213 = vst [vmem:[#allocation14 + $0x8] sm:$0xff] %v7633_v34 }
 0x156   :  { %335 = vst [vmem:[#allocation2 + $0x10] sm:$0xff] %v325_v40  ;;  %v324_v42 = vsel %vm7636_vm1, %v7641_v38, 0.0  ;;  %4212 = vst [vmem:[#allocation14] sm:$0xff] %v7641_v38  ;;  %v5031_v43 = vpop.f32.mrb[2].mxu0  ;;  %v787_v40 = vld [vmem:[#allocation11 + $0x1b8] sm:$0xff] }
 0x157   :  { %334 = vst [vmem:[#allocation2 + $0x8] sm:$0xff] %v324_v42  ;;  %v7664_v47 = vadd.f32 %v5031_v43, %v7622_v29  ;;  %v199_v48 = vpop.f32.mrb[3].mxu0  ;;  %v353_v43 = vld [vmem:[#allocation11 + $0x140] sm:$0xff] }
 0x158   :  { %v7669_v50 = vadd.f32 %v7622_v29, %v199_v48  ;;  %v6296_v63 = vpack.c.bf16 %v354_v46, %v353_v43 }
 0x159   :  { %v327_v51 = vsel %vm7654_vm2, %v7664_v47, 0.0  ;;  %4215 = vst [vmem:[#allocation14 + $0x18] sm:$0xff] %v7664_v47 }
 0x15a   :  { %337 = vst [vmem:[#allocation2 + $0x20] sm:$0xff] %v327_v51  ;;  %v326_v53 = vsel %vm7659_vm3, %v7669_v50, 0.0  ;;  %4214 = vst [vmem:[#allocation14 + $0x10] sm:$0xff] %v7669_v50  ;;  %v5034_v54 = vpop.f32.mrb[4].mxu0 }
 0x15b   :  { %336 = vst [vmem:[#allocation2 + $0x18] sm:$0xff] %v326_v53  ;;  %v7688_v59 = vadd.f32 %v5034_v54, %v7622_v29  ;;  %v209_v60 = vpop.f32.mrb[5].mxu0  ;;  %v6356_v53 = vpack.c.bf16 %v787_v40, %v786_v39  ;;  %v933_v39 = vld [vmem:[#allocation11 + $0x208] sm:$0xff]  ;;  %v934_v40 = vld [vmem:[#allocation11 + $0x210] sm:$0xff] }
 0x15c   :  { %v7696_v0 = vadd.f32 %v7622_v29, %v209_v60 }
 0x15d   :  { %v329_v2 = vsel %vm7681_vm8, %v7688_v59, 0.0  ;;  %4217 = vst [vmem:[#allocation14 + $0x28] sm:$0xff] %v7688_v59 }
 0x15e   :  { %339 = vst [vmem:[#allocation2 + $0x30] sm:$0xff] %v329_v2  ;;  %v328_v7 = vsel %vm7691_vm11, %v7696_v0, 0.0  ;;  %4216 = vst [vmem:[#allocation14 + $0x20] sm:$0xff] %v7696_v0  ;;  %v5037_v8 = vpop.f32.mrb[6].mxu0  ;;  %v361_v9 = vld [vmem:[#allocation2 + $0x6] sm:$0xff]  ;;  %v362_v11 = vld [vmem:[#allocation2 + $0xe] sm:$0xff]  ;;  %v6360_v2 = vpack.c.bf16 %v789_v57, %v788_v56 }
 0x15f   :  { %v617_v10 = vld [vmem:[#allocation2 + $0x7] sm:$0xff]  ;;  %338 = vst [vmem:[#allocation2 + $0x28] sm:$0xff] %v328_v7  ;;  %v7725_v13 = vadd.f32 %v5037_v8, %v7622_v29  ;;  %v219_v14 = vpop.f32.mrb[7].mxu0  ;;  %5073 = vmatprep.mubr.f32.mxu0 %v361_v9  ;;  %v618_v15 = vld [vmem:[#allocation2 + $0xf] sm:$0xff] }
 0x160   :  { %5167 = vmatprep.mubr.f32.mxu1 %v617_v10  ;;  %v7728_v18 = vadd.f32 %v7622_v29, %v219_v14  ;;  %5074 = vmatmul.mubr.f32.vlgmr.msra.gmra.mrb[10].mxu0 %v362_v11  ;;  %v790_v7 = vld [vmem:[#allocation11 + $0x1d0] sm:$0xff]  ;;  %v791_v8 = vld [vmem:[#allocation11 + $0x1d8] sm:$0xff]  ;;  %v357_v9 = vld [vmem:[#allocation11 + $0x160] sm:$0xff] }
 0x161   :  { %5168 = vmatmul.mubr.f32.vlgmr.msra.gmra.mrb[0].mxu1 %v618_v15  ;;  %v331_v20 = vsel %vm7712_vm13, %v7725_v13, 0.0  ;;  %4219 = vst [vmem:[#allocation14 + $0x38] sm:$0xff] %v7725_v13  ;;  %6283 = vmatpush3.bf16.msra.mxu0 %v7611_v22  ;;  %v358_v10 = vld [vmem:[#allocation11 + $0x168] sm:$0xff]  ;;  %v6364_v17 = vpack.c.bf16 %v791_v8, %v790_v7  ;;  %v769_v25 = vld [vmem:[#allocation2 + $0x9] sm:$0xff] }
 0x162   :  { %6347 = vmatpush3.bf16.msra.mxu1 %v7613_v24  ;;  %341 = vst [vmem:[#allocation2 + $0x40] sm:$0xff] %v331_v20  ;;  %v330_v26 = vsel %vm7702_vm12, %v7728_v18, 0.0  ;;  %4218 = vst [vmem:[#allocation14 + $0x30] sm:$0xff] %v7728_v18  ;;  %v5040_v22 = vpop.f32.mrb[8].mxu0  ;;  %v363_v27 = vld [vmem:[#allocation2 + $0x16] sm:$0xff]  ;;  %6285 = vmatprep.subr.bf16.mxu0 %v6284_v4  ;;  %v364_v30 = vld [vmem:[#allocation2 + $0x1e] sm:$0xff] }
 0x163   :  { %v619_v24 = vld [vmem:[#allocation2 + $0x17] sm:$0xff]  ;;  %6349 = vmatprep.subr.bf16.mxu1 %v6348_v12  ;;  %340 = vst [vmem:[#allocation2 + $0x38] sm:$0xff] %v330_v26  ;;  %v7757_v33 = vadd.f32 %v5040_v22, %v7622_v29  ;;  %v229_v35 = vpop.f32.mrb[9].mxu0  ;;  %5076 = vmatprep.mubr.f32.mxu0 %v363_v27  ;;  %v620_v37 = vld [vmem:[#allocation2 + $0x1f] sm:$0xff]  ;;  %v6304_v26 = vpack.c.bf16 %v358_v10, %v357_v9  ;;  %v947_v8 = vld [vmem:[#allocation11 + $0x278] sm:$0xff] }
 0x164   :  { %5170 = vmatprep.mubr.f32.mxu1 %v619_v24  ;;  %v7760_v41 = vadd.f32 %v7622_v29, %v229_v35  ;;  %5077 = vmatmul.mubr.f32.gmra.mrb[12].mxu0 %v364_v30  ;;  %v792_v20 = vld [vmem:[#allocation11 + $0x1e0] sm:$0xff]  ;;  %v359_v27 = vld [vmem:[#allocation11 + $0x170] sm:$0xff]  ;;  %v360_v24 = vld [vmem:[#allocation11 + $0x178] sm:$0xff] }
 0x165   :  { %5171 = vmatmul.mubr.f32.gmra.mrb[2].mxu1 %v620_v37  ;;  %v333_v42 = vsel %vm7734_vm6, %v7757_v33, 0.0  ;;  %4221 = vst [vmem:[#allocation14 + $0x48] sm:$0xff] %v7757_v33  ;;  %6287 = vmatpush3.bf16.msra.mxu0 %v6284_v4  ;;  %v6368_v22 = vpack.c.bf16 %v793_v23, %v792_v20  ;;  %v794_v30 = vld [vmem:[#allocation11 + $0x1f0] sm:$0xff]  ;;  %v932_v37 = vld [vmem:[#allocation11 + $0x200] sm:$0xff]  ;;  %v923_v10 = vld [vmem:[#allocation2 + $0x1a] sm:$0xff] }
 0x166   :  { %6351 = vmatpush3.bf16.msra.mxu1 %v6348_v12  ;;  %343 = vst [vmem:[#allocation2 + $0x50] sm:$0xff] %v333_v42  ;;  %v332_v48 = vsel %vm7748_vm7, %v7760_v41, 0.0  ;;  %4220 = vst [vmem:[#allocation14 + $0x40] sm:$0xff] %v7760_v41  ;;  %v365_v29 = vld [vmem:[#allocation2 + $0x26] sm:$0xff]  ;;  %6289 = vmatprep.subr.bf16.mxu0 %v6288_v28  ;;  %v366_v51 = vld [vmem:[#allocation2 + $0x2e] sm:$0xff] }
 0x167   :  { %v621_v49 = vld [vmem:[#allocation2 + $0x27] sm:$0xff]  ;;  %6353 = vmatprep.subr.bf16.mxu1 %v6352_v32  ;;  %342 = vst [vmem:[#allocation2 + $0x48] sm:$0xff] %v332_v48  ;;  %5079 = vmatprep.mubr.f32.mxu0 %v365_v29  ;;  %v622_v54 = vld [vmem:[#allocation2 + $0x2f] sm:$0xff]  ;;  %v771_v48 = vld [vmem:[#allocation2 + $0x19] sm:$0xff] }
 0x168   :  { %5173 = vmatprep.mubr.f32.mxu1 %v621_v49  ;;  %5080 = vmatmul.mubr.f32.gmra.mrb[14].mxu0 %v366_v51  ;;  %v935_v42 = vld [vmem:[#allocation11 + $0x218] sm:$0xff]  ;;  %v936_v29 = vld [vmem:[#allocation11 + $0x220] sm:$0xff]  ;;  %v937_v49 = vld [vmem:[#allocation11 + $0x228] sm:$0xff] }
 0x169   :  { %5174 = vmatmul.mubr.f32.gmra.mrb[4].mxu1 %v622_v54  ;;  %6291 = vmatpush3.bf16.msra.mxu0 %v6288_v28  ;;  %v795_v28 = vld [vmem:[#allocation11 + $0x1f8] sm:$0xff]  ;;  %v6380_v46 = vpack.c.bf16 %v935_v42, %v934_v40  ;;  %v772_v51 = vld [vmem:[#allocation2 + $0x21] sm:$0xff]  ;;  %v922_v9 = vld [vmem:[#allocation2 + $0x12] sm:$0xff] }
 0x16a   :  { %6355 = vmatpush3.bf16.msra.mxu1 %v6352_v32  ;;  %v367_v58 = vld [vmem:[#allocation2 + $0x36] sm:$0xff]  ;;  %6293 = vmatprep.subr.bf16.mxu0 %v6292_v52  ;;  %v368_v62 = vld [vmem:[#allocation2 + $0x3e] sm:$0xff]  ;;  %v6308_v32 = vpack.c.bf16 %v360_v24, %v359_v27  ;;  %v6372_v35 = vpack.c.bf16 %v795_v28, %v794_v30  ;;  %v939_v54 = vld [vmem:[#allocation11 + $0x238] sm:$0xff] }
 0x16b   :  { %v623_v60 = vld [vmem:[#allocation2 + $0x37] sm:$0xff]  ;;  %6357 = vmatprep.subr.bf16.mxu1 %v6356_v53  ;;  %5082 = vmatprep.mubr.f32.mxu0 %v367_v58  ;;  %v624_v4 = vld [vmem:[#allocation2 + $0x3f] sm:$0xff] }
 0x16c   :  { %5176 = vmatprep.mubr.f32.mxu1 %v623_v60  ;;  %5083 = vmatmul.mubr.f32.gmra.mrb[16].mxu0 %v368_v62  ;;  %v770_v43 = vld [vmem:[#allocation2 + $0x11] sm:$0xff]  ;;  %v775_v57 = vld [vmem:[#allocation2 + $0x39] sm:$0xff]  ;;  %v946_v7 = vld [vmem:[#allocation11 + $0x270] sm:$0xff] }
 0x16d   :  { %5177 = vmatmul.mubr.f32.gmra.mrb[6].mxu1 %v624_v4  ;;  %6295 = vmatpush3.bf16.msra.mxu0 %v6292_v52  ;;  %v6384_v52 = vpack.c.bf16 %v937_v49, %v936_v29  ;;  %v941_v58 = vld [vmem:[#allocation11 + $0x248] sm:$0xff]  ;;  %v921_v4 = vld [vmem:[#allocation2 + $0xa] sm:$0xff]  ;;  %v1148_v20 = vld [vmem:[#allocation11 + $0x280] sm:$0xff] }
 0x16e   :  { %6359 = vmatpush3.bf16.msra.mxu1 %v6356_v53  ;;  %v369_v11 = vld [vmem:[#allocation2 + $0x46] sm:$0xff]  ;;  %6297 = vmatprep.subr.bf16.mxu0 %v6296_v63  ;;  %v370_v14 = vld [vmem:[#allocation2 + $0x4e] sm:$0xff]  ;;  %v1149_v23 = vld [vmem:[#allocation11 + $0x288] sm:$0xff] }
 0x16f   :  { %v625_v12 = vld [vmem:[#allocation2 + $0x47] sm:$0xff]  ;;  %6361 = vmatprep.subr.bf16.mxu1 %v6360_v2  ;;  %5085 = vmatprep.mubr.f32.mxu0 %v369_v11  ;;  %v626_v15 = vld [vmem:[#allocation2 + $0x4f] sm:$0xff]  ;;  %v1153_v30 = vld [vmem:[#allocation11 + $0x2a8] sm:$0xff] }
 0x170   :  { %5179 = vmatprep.mubr.f32.mxu1 %v625_v12  ;;  %5086 = vmatmul.mubr.f32.gmra.mrb[18].mxu0 %v370_v14  ;;  %v773_v53 = vld [vmem:[#allocation2 + $0x29] sm:$0xff]  ;;  %v926_v12 = vld [vmem:[#allocation2 + $0x32] sm:$0xff]  ;;  %v927_v14 = vld [vmem:[#allocation2 + $0x3a] sm:$0xff] }
 0x171   :  { %5180 = vmatmul.mubr.f32.gmra.mrb[8].mxu1 %v626_v15  ;;  %6299 = vmatpush3.bf16.msra.mxu0 %v6296_v63  ;;  %v777_v62 = vld [vmem:[#allocation2 + $0x49] sm:$0xff]  ;;  %v1152_v24 = vld [vmem:[#allocation11 + $0x2a0] sm:$0xff]  ;;  %v1161_v29 = vld [vmem:[#allocation11 + $0x2e8] sm:$0xff] }
 0x172   :  { %6363 = vmatpush3.bf16.msra.mxu1 %v6360_v2  ;;  %5120 = vmatprep.mubr.msk.f32.mxu0 %vm7636_vm1, %v7641_v38  ;;  %v6376_v38 = vpack.c.bf16 %v933_v39, %v932_v37  ;;  %v943_v63 = vld [vmem:[#allocation11 + $0x258] sm:$0xff]  ;;  %v928_v15 = vld [vmem:[#allocation2 + $0x42] sm:$0xff]  ;;  %v6416_v28 = vpack.c.bf16 %v1153_v30, %v1152_v24  ;;  %v1156_v39 = vld [vmem:[#allocation11 + $0x2c0] sm:$0xff] }
 0x173   :  { %5214 = vmatprep.mubr.f32.mxu1 %v769_v25  ;;  %6301 = vmatprep.subr.bf16.mxu0 %v6300_v16  ;;  %v925_v11 = vld [vmem:[#allocation2 + $0x2a] sm:$0xff]  ;;  %v1150_v25 = vld [vmem:[#allocation11 + $0x290] sm:$0xff]  ;;  %v7348_v1 = vld [vmem:[#allocation14 + $0x40] sm:$0xff] }
 0x174   :  { %6365 = vmatprep.subr.bf16.mxu1 %v6364_v17  ;;  %v1158_v42 = vld [vmem:[#allocation11 + $0x2d0] sm:$0xff] }
 0x175   :  { %6303 = vmatpush3.bf16.msra.mxu0 %v6300_v16  ;;  %v929_v16 = vld [vmem:[#allocation2 + $0x4a] sm:$0xff]  ;;  %v7347_v3 = vld [vmem:[#allocation14 + $0x48] sm:$0xff] }
 0x176   :  { %6367 = vmatpush3.bf16.msra.mxu1 %v6364_v17  ;;  %6305 = vmatprep.subr.bf16.mxu0 %v6304_v26  ;;  %v930_v17 = vld [vmem:[#allocation2 + $0x52] sm:$0xff] }
 0x177   :  { %6369 = vmatprep.subr.bf16.mxu1 %v6368_v22 }
 0x179   :  { %6307 = vmatpush3.bf16.msra.mxu0 %v6304_v26  ;;  %v6408_v26 = vpack.c.bf16 %v1149_v23, %v1148_v20 }
 0x17a   :  { %6371 = vmatpush3.bf16.msra.mxu1 %v6368_v22  ;;  %6309 = vmatprep.subr.bf16.mxu0 %v6308_v32  ;;  %v1151_v22 = vld [vmem:[#allocation11 + $0x298] sm:$0xff] }
 0x17b   :  { %6373 = vmatprep.subr.bf16.mxu1 %v6372_v35  ;;  %v6412_v27 = vpack.c.bf16 %v1151_v22, %v1150_v25 }
 0x17d   :  { %6311 = vmatpush3.bf16.msra.mxu0 %v6308_v32  ;;  %v1154_v32 = vld [vmem:[#allocation11 + $0x2b0] sm:$0xff] }
 0x17e   :  { %6375 = vmatpush3.bf16.msra.mxu1 %v6372_v35  ;;  %6409 = vmatprep.subr.bf16.mxu0 %v6408_v26  ;;  %v1155_v35 = vld [vmem:[#allocation11 + $0x2b8] sm:$0xff] }
 0x17f   :  { %6377 = vmatprep.subr.bf16.mxu1 %v6376_v38  ;;  %v6420_v37 = vpack.c.bf16 %v1155_v35, %v1154_v32 }
 0x180   :  { %5121 = vmatmul.mubr.msk.f32.vlgmr.msra.gmra.mrb[10].mxu0 %vm7628_vm0, %v7633_v34  ;;  %v938_v34 = vld [vmem:[#allocation11 + $0x230] sm:$0xff] }
 0x181   :  { %5215 = vmatmul.mubr.f32.vlgmr.msra.gmra.mrb[0].mxu1 %v770_v43  ;;  %5123 = vmatprep.mubr.msk.f32.mxu0 %vm7659_vm3, %v7669_v50  ;;  %v774_v50 = vld [vmem:[#allocation2 + $0x31] sm:$0xff]  ;;  %v6388_v56 = vpack.c.bf16 %v939_v54, %v938_v34  ;;  %v1122_v54 = vld [vmem:[#allocation11 + $0x388] sm:$0xff] }
 0x182   :  { %5217 = vmatprep.mubr.f32.mxu1 %v771_v48  ;;  %6379 = vmatpush3.bf16.msra.mxu1 %v6376_v38  ;;  %v1157_v38 = vld [vmem:[#allocation11 + $0x2c8] sm:$0xff]  ;;  %v1159_v43 = vld [vmem:[#allocation11 + $0x2d8] sm:$0xff]  ;;  %v1160_v48 = vld [vmem:[#allocation11 + $0x2e0] sm:$0xff] }
 0x183   :  { %6381 = vmatprep.subr.bf16.mxu1 %v6380_v46  ;;  %6411 = vmatpush3.bf16.msra.mxu0 %v6408_v26  ;;  %v6424_v40 = vpack.c.bf16 %v1157_v38, %v1156_v39  ;;  %v6432_v49 = vpack.c.bf16 %v1161_v29, %v1160_v48  ;;  %v1121_v34 = vld [vmem:[#allocation11 + $0x380] sm:$0xff] }
 0x184   :  { %5124 = vmatmul.mubr.msk.f32.gmra.mrb[12].mxu0 %vm7654_vm2, %v7664_v47  ;;  %v940_v47 = vld [vmem:[#allocation11 + $0x240] sm:$0xff]  ;;  %6413 = vmatprep.subr.bf16.mxu0 %v6412_v27 }
 0x185   :  { %5218 = vmatmul.mubr.f32.gmra.mrb[2].mxu1 %v772_v51  ;;  %5126 = vmatprep.mubr.msk.f32.mxu0 %vm7691_vm11, %v7696_v0  ;;  %v776_v0 = vld [vmem:[#allocation2 + $0x41] sm:$0xff]  ;;  %v6392_v60 = vpack.c.bf16 %v941_v58, %v940_v47 }
 0x186   :  { %5220 = vmatprep.mubr.f32.mxu1 %v773_v53  ;;  %6383 = vmatpush3.bf16.msra.mxu1 %v6380_v46  ;;  %v6428_v46 = vpack.c.bf16 %v1159_v43, %v1158_v42  ;;  %v1162_v51 = vld [vmem:[#allocation11 + $0x2f0] sm:$0xff] }
 0x187   :  { %6385 = vmatprep.subr.bf16.mxu1 %v6384_v52  ;;  %6415 = vmatpush3.bf16.msra.mxu0 %v6412_v27 }
 0x188   :  { %5127 = vmatmul.mubr.msk.f32.gmra.mrb[14].mxu0 %vm7681_vm8, %v7688_v59  ;;  %v942_v59 = vld [vmem:[#allocation11 + $0x250] sm:$0xff]  ;;  %6417 = vmatprep.subr.bf16.mxu0 %v6416_v28 }
 0x189   :  { %5221 = vmatmul.mubr.f32.gmra.mrb[4].mxu1 %v774_v50  ;;  %5129 = vmatprep.mubr.msk.f32.mxu0 %vm7702_vm12, %v7728_v18  ;;  %v778_v18 = vld [vmem:[#allocation2 + $0x51] sm:$0xff]  ;;  %v6396_v2 = vpack.c.bf16 %v943_v63, %v942_v59  ;;  %v7800_v50 = vpack.c.bf16 %v1122_v54, %v1121_v34 }
 0x18a   :  { %5223 = vmatprep.mubr.f32.mxu1 %v775_v57  ;;  %6387 = vmatpush3.bf16.msra.mxu1 %v6384_v52  ;;  %v1163_v52 = vld [vmem:[#allocation11 + $0x2f8] sm:$0xff] }
 0x18b   :  { %6389 = vmatprep.subr.bf16.mxu1 %v6388_v56  ;;  %6419 = vmatpush3.bf16.msra.mxu0 %v6416_v28  ;;  %v6436_v53 = vpack.c.bf16 %v1163_v52, %v1162_v51  ;;  %v1123_v52 = vld [vmem:[#allocation11 + $0x390] sm:$0xff] }
 0x18c   :  { %5130 = vmatmul.mubr.msk.f32.gmra.mrb[16].mxu0 %vm7712_vm13, %v7725_v13  ;;  %v944_v13 = vld [vmem:[#allocation11 + $0x260] sm:$0xff]  ;;  %6421 = vmatprep.subr.bf16.mxu0 %v6420_v37 }
 0x18d   :  { %5224 = vmatmul.mubr.f32.gmra.mrb[6].mxu1 %v776_v0  ;;  %5132 = vmatprep.mubr.msk.f32.mxu0 %vm7748_vm7, %v7760_v41  ;;  %v6400_v6 = vpack.c.bf16 %v945_v5, %v944_v13  ;;  %v6404_v41 = vpack.c.bf16 %v947_v8, %v946_v7 }
 0x18e   :  { %5226 = vmatprep.mubr.f32.mxu1 %v777_v62  ;;  %6391 = vmatpush3.bf16.msra.mxu1 %v6388_v56 }
 0x18f   :  { %6393 = vmatprep.subr.bf16.mxu1 %v6392_v60  ;;  %6423 = vmatpush3.bf16.msra.mxu0 %v6420_v37 }
 0x190   :  { %5133 = vmatmul.mubr.msk.f32.gmra.mrb[18].mxu0 %vm7734_vm6, %v7757_v33  ;;  %v924_v33 = vld [vmem:[#allocation2 + $0x22] sm:$0xff]  ;;  %6425 = vmatprep.subr.bf16.mxu0 %v6424_v40 }
 0x191   :  { %5227 = vmatmul.mubr.f32.gmra.mrb[8].mxu1 %v778_v18 }
 0x192   :  { %5261 = vmatprep.mubr.f32.mxu1 %v921_v4  ;;  %6395 = vmatpush3.bf16.msra.mxu1 %v6392_v60  ;;  %v4273_v4 = vld [vmem:[#allocation13] ss:$0 sm:$0xff] }
 0x193   :  { %6397 = vmatprep.subr.bf16.mxu1 %v6396_v2  ;;  %6427 = vmatpush3.bf16.msra.mxu0 %v6424_v40 }
 0x194   :  { %6429 = vmatprep.subr.bf16.mxu0 %v6428_v46 }
 0x196   :  { %6399 = vmatpush3.bf16.msra.mxu1 %v6396_v2 }
 0x197   :  { %6401 = vmatprep.subr.bf16.mxu1 %v6400_v6  ;;  %6431 = vmatpush3.bf16.msra.mxu0 %v6428_v46 }
 0x198   :  { %6433 = vmatprep.subr.bf16.mxu0 %v6432_v49 }
 0x19a   :  { %6403 = vmatpush3.bf16.msra.mxu1 %v6400_v6 }
 0x19b   :  { %6405 = vmatprep.subr.bf16.mxu1 %v6404_v41  ;;  %6435 = vmatpush3.bf16.msra.mxu0 %v6432_v49 }
 0x19c   :  { %6437 = vmatprep.subr.bf16.mxu0 %v6436_v53 }
 0x19e   :  { %6407 = vmatpush3.bf16.msra.mxu1 %v6404_v41 }
 0x19f   :  { %6439 = vmatpush3.bf16.msra.mxu0 %v6436_v53  ;;  %v1124_v53 = vld [vmem:[#allocation11 + $0x398] sm:$0xff] }
 0x1a0   :  { %6441 = vmatprep.subr.bf16.mxu0 %v7800_v50 }
 0x1a1   :  { %5262 = vmatmul.mubr.f32.vlgmr.msra.gmra.mrb[0].mxu1 %v922_v9 }
 0x1a2   :  { %5264 = vmatprep.mubr.f32.mxu1 %v923_v10 }
 0x1a5   :  { %5265 = vmatmul.mubr.f32.gmra.mrb[2].mxu1 %v924_v33 }
 0x1a6   :  { %5267 = vmatprep.mubr.f32.mxu1 %v925_v11 }
 0x1a9   :  { %5268 = vmatmul.mubr.f32.gmra.mrb[4].mxu1 %v926_v12 }
 0x1aa   :  { %5270 = vmatprep.mubr.f32.mxu1 %v927_v14 }
 0x1ad   :  { %5271 = vmatmul.mubr.f32.gmra.mrb[6].mxu1 %v928_v15 }
 0x1ae   :  { %5273 = vmatprep.mubr.f32.mxu1 %v929_v16 }
 0x1b1   :  { %5274 = vmatmul.mubr.f32.gmra.mrb[8].mxu1 %v930_v17 }
 0x253   :  { %v5122_v56 = vpop.f32.mrb[10].mxu0 }
 0x254   :  { %v568_v57 = vpop.f32.mrb[11].mxu0 }
 0x257   :  { %v5125_v47 = vpop.f32.mrb[12].mxu0 }
 0x258   :  { %v578_v58 = vpop.f32.mrb[13].mxu0 }
 0x25b   :  { %v5128_v0 = vpop.f32.mrb[14].mxu0 }
 0x25c   :  { %v588_v60 = vpop.f32.mrb[15].mxu0 }
 0x25f   :  { %v5131_v62 = vpop.f32.mrb[16].mxu0 }
 0x260   :  { %v598_v59 = vpop.f32.mrb[17].mxu0 }
 0x263   :  { %v5134_v63 = vpop.f32.mrb[18].mxu0 }
 0x264   :  { %v608_v18 = vpop.f32.mrb[19].mxu0 }
 0x274   :  { %v5263_v2 = vpop.f32.mrb[0].mxu1 }
 0x275   :  { %v7048_v13 = vadd.f32 %v5263_v2, %v5122_v56  ;;  %v1014_v5 = vpop.f32.mrb[1].mxu1 }
 0x276   :  { %v7049_v6 = vadd.f32 %v1014_v5, %v568_v57 }
 0x277   :  { %v1081_v7 = vadd.f32 %v7048_v13, %v4273_v4 }
 0x278   :  { %v1080_v8 = vadd.f32 %v7049_v6, %v4273_v4  ;;  %v5266_v41 = vpop.f32.mrb[2].mxu1  ;;  %v1127_v6 = vld [vmem:[#allocation11 + $0x3b0] sm:$0xff] }
 0x279   :  { %7259 = vtanh.f32 %v1081_v7  ;;  %v7050_v9 = vadd.f32 %v5266_v41, %v5125_v47  ;;  %v1024_v10 = vpop.f32.mrb[3].mxu1  ;;  %v1128_v7 = vld [vmem:[#allocation11 + $0x3b8] sm:$0xff] }
 0x27a   :  { %7261 = vtanh.f32 %v1080_v8  ;;  %v7051_v33 = vadd.f32 %v1024_v10, %v578_v58 }
 0x27b   :  { %v1083_v11 = vadd.f32 %v7050_v9, %v4273_v4 }
 0x27c   :  { %v1082_v12 = vadd.f32 %v7051_v33, %v4273_v4  ;;  %v5269_v14 = vpop.f32.mrb[4].mxu1 }
 0x27d   :  { %7263 = vtanh.f32 %v1083_v11  ;;  %v7052_v15 = vadd.f32 %v5269_v14, %v5128_v0  ;;  %v1034_v16 = vpop.f32.mrb[5].mxu1  ;;  %v6444_v0 = vpack.c.bf16 %v1124_v53, %v1123_v52  ;;  %v6452_v11 = vpack.c.bf16 %v1128_v7, %v1127_v6  ;;  %v1130_v14 = vld [vmem:[#allocation11 + $0x3c8] sm:$0xff]  ;;  %v1407_v53 = vld [vmem:[#allocation11 + $0x310] sm:$0xff] }
 0x27e   :  { %7265 = vtanh.f32 %v1082_v12  ;;  %v7053_v17 = vadd.f32 %v1034_v16, %v588_v60  ;;  %v1125_v60 = vld [vmem:[#allocation11 + $0x3a0] sm:$0xff]  ;;  %v1406_v52 = vld [vmem:[#allocation11 + $0x308] sm:$0xff]  ;;  %v1419_v6 = vld [vmem:[#allocation11 + $0x370] sm:$0xff] }
 0x27f   :  { %v1085_v20 = vadd.f32 %v7052_v15, %v4273_v4  ;;  %v1129_v12 = vld [vmem:[#allocation11 + $0x3c0] sm:$0xff] }
 0x280   :  { %v1084_v23 = vadd.f32 %v7053_v17, %v4273_v4  ;;  %v5272_v25 = vpop.f32.mrb[6].mxu1  ;;  %v6456_v17 = vpack.c.bf16 %v1130_v14, %v1129_v12  ;;  %v1561_v12 = vld [vmem:[#allocation11 + $0x420] sm:$0xff]  ;;  %v1562_v14 = vld [vmem:[#allocation11 + $0x428] sm:$0xff] }
 0x281   :  { %7267 = vtanh.f32 %v1085_v20  ;;  %v7054_v26 = vadd.f32 %v5272_v25, %v5131_v62  ;;  %v1044_v22 = vpop.f32.mrb[7].mxu1  ;;  %v1126_v62 = vld [vmem:[#allocation11 + $0x3a8] sm:$0xff]  ;;  %v1131_v20 = vld [vmem:[#allocation11 + $0x3d0] sm:$0xff] }
 0x282   :  { %7269 = vtanh.f32 %v1084_v23  ;;  %v7055_v27 = vadd.f32 %v1044_v22, %v598_v59  ;;  %v6448_v5 = vpack.c.bf16 %v1126_v62, %v1125_v60  ;;  %v1132_v23 = vld [vmem:[#allocation11 + $0x3d8] sm:$0xff]  ;;  %v1411_v60 = vld [vmem:[#allocation11 + $0x330] sm:$0xff] }
 0x283   :  { %v7803_v24 = vpop.eup %7259  ;;  %v1087_v30 = vadd.f32 %v7054_v26, %v4273_v4  ;;  %v6460_v22 = vpack.c.bf16 %v1132_v23, %v1131_v20  ;;  %v1412_v62 = vld [vmem:[#allocation11 + $0x338] sm:$0xff]  ;;  %v1563_v20 = vld [vmem:[#allocation11 + $0x430] sm:$0xff] }
 0x284   :  { %v7805_v28 = vpop.eup %7261  ;;  %v1101_v32 = vsel %vm7628_vm0, %v7803_v24, 0.0  ;;  %v1086_v35 = vadd.f32 %v7055_v27, %v4273_v4  ;;  %v5275_v37 = vpop.f32.mrb[8].mxu1  ;;  %v1133_v27 = vld [vmem:[#allocation11 + $0x3e0] sm:$0xff]  ;;  %v1564_v23 = vld [vmem:[#allocation11 + $0x438] sm:$0xff] }
 0x285   :  { %1111 = vst [vmem:[#allocation2 + $0x10] sm:$0xff] %v1101_v32  ;;  %v1100_v39 = vsel %vm7636_vm1, %v7805_v28, 0.0  ;;  %7271 = vtanh.f32 %v1087_v30  ;;  %v7056_v38 = vadd.f32 %v5275_v37, %v5134_v63  ;;  %v1054_v40 = vpop.f32.mrb[9].mxu1  ;;  %v1134_v30 = vld [vmem:[#allocation11 + $0x3e8] sm:$0xff]  ;;  %v1926_v32 = vld [vmem:[#allocation11 + $0x500] sm:$0xff]  ;;  %v1928_v37 = vld [vmem:[#allocation11 + $0x510] sm:$0xff] }
 0x286   :  { %1110 = vst [vmem:[#allocation2 + $0x8] sm:$0xff] %v1100_v39  ;;  %7273 = vtanh.f32 %v1086_v35  ;;  %v7057_v42 = vadd.f32 %v1054_v40, %v608_v18  ;;  %v1927_v35 = vld [vmem:[#allocation11 + $0x508] sm:$0xff]  ;;  %v1929_v39 = vld [vmem:[#allocation11 + $0x518] sm:$0xff] }
 0x287   :  { %v7813_v43 = vpop.eup %7263  ;;  %v1089_v46 = vadd.f32 %v7056_v38, %v4273_v4  ;;  %v6464_v38 = vpack.c.bf16 %v1134_v30, %v1133_v27  ;;  %v6568_v40 = vpack.c.bf16 %v1927_v35, %v1926_v32  ;;  %v1565_v27 = vld [vmem:[#allocation11 + $0x440] sm:$0xff]  ;;  %v1566_v30 = vld [vmem:[#allocation11 + $0x448] sm:$0xff] }
 0x288   :  { %v7815_v48 = vpop.eup %7265  ;;  %v1103_v29 = vsel %vm7654_vm2, %v7813_v43, 0.0  ;;  %v1088_v49 = vadd.f32 %v7057_v42, %v4273_v4  ;;  %v6572_v42 = vpack.c.bf16 %v1929_v39, %v1928_v37  ;;  %v6520_v35 = vpack.c.bf16 %v1566_v30, %v1565_v27  ;;  %v1567_v39 = vld [vmem:[#allocation11 + $0x450] sm:$0xff] }
 0x289   :  { %1113 = vst [vmem:[#allocation2 + $0x20] sm:$0xff] %v1103_v29  ;;  %v1102_v51 = vsel %vm7659_vm3, %v7815_v48, 0.0  ;;  %7275 = vtanh.f32 %v1089_v46  ;;  %v1135_v46 = vld [vmem:[#allocation11 + $0x3f0] sm:$0xff]  ;;  %v1136_v29 = vld [vmem:[#allocation11 + $0x3f8] sm:$0xff]  ;;  %6569 = vmatprep.subr.bf16.mxu1 %v6568_v40 }
 0x28a   :  { %1112 = vst [vmem:[#allocation2 + $0x18] sm:$0xff] %v1102_v51  ;;  %7277 = vtanh.f32 %v1088_v49  ;;  %6571 = vmatpush3.bf16.msra.mxu1 %v6568_v40  ;;  %v6468_v49 = vpack.c.bf16 %v1136_v29, %v1135_v46  ;;  %v1405_v51 = vld [vmem:[#allocation11 + $0x300] sm:$0xff] }
 0x28b   :  { %v7823_v34 = vpop.eup %7267  ;;  %6573 = vmatprep.subr.bf16.mxu1 %v6572_v42  ;;  %v1569_v29 = vld [vmem:[#allocation11 + $0x460] sm:$0xff] }
 0x28c   :  { %v7825_v54 = vpop.eup %7269  ;;  %v1105_v56 = vsel %vm7681_vm8, %v7823_v34, 0.0 }
 0x28d   :  { %1115 = vst [vmem:[#allocation2 + $0x30] sm:$0xff] %v1105_v56  ;;  %v1104_v57 = vsel %vm7691_vm11, %v7825_v54, 0.0  ;;  %v1137_v47 = vld [vmem:[#allocation2 + $0x6] sm:$0xff]  ;;  %v1138_v58 = vld [vmem:[#allocation2 + $0xe] sm:$0xff] }
 0x28e   :  { %1114 = vst [vmem:[#allocation2 + $0x28] sm:$0xff] %v1104_v57  ;;  %5308 = vmatprep.mubr.f32.mxu0 %v1137_v47  ;;  %6575 = vmatpush3.bf16.msra.mxu1 %v6572_v42  ;;  %v1408_v56 = vld [vmem:[#allocation11 + $0x318] sm:$0xff]  ;;  %v1409_v47 = vld [vmem:[#allocation11 + $0x320] sm:$0xff] }
 0x28f   :  { %v7833_v59 = vpop.eup %7271  ;;  %5309 = vmatmul.mubr.f32.vlgmr.msra.gmra.mrb[20].mxu0 %v1138_v58  ;;  %v6476_v57 = vpack.c.bf16 %v1408_v56, %v1407_v53  ;;  %v1410_v58 = vld [vmem:[#allocation11 + $0x328] sm:$0xff]  ;;  %v1572_v53 = vld [vmem:[#allocation11 + $0x478] sm:$0xff] }
 0x290   :  { %v7835_v63 = vpop.eup %7273  ;;  %v1107_v18 = vsel %vm7712_vm13, %v7833_v59, 0.0  ;;  %6443 = vmatpush3.bf16.msra.mxu0 %v7800_v50 }
 0x291   :  { %1117 = vst [vmem:[#allocation2 + $0x40] sm:$0xff] %v1107_v18  ;;  %v1106_v2 = vsel %vm7702_vm12, %v7835_v63, 0.0  ;;  %v1139_v4 = vld [vmem:[#allocation2 + $0x16] sm:$0xff]  ;;  %6445 = vmatprep.subr.bf16.mxu0 %v6444_v0  ;;  %v1140_v13 = vld [vmem:[#allocation2 + $0x1e] sm:$0xff] }
 0x292   :  { %1116 = vst [vmem:[#allocation2 + $0x38] sm:$0xff] %v1106_v2  ;;  %5311 = vmatprep.mubr.f32.mxu0 %v1139_v4  ;;  %v1413_v18 = vld [vmem:[#allocation11 + $0x340] sm:$0xff]  ;;  %v1414_v2 = vld [vmem:[#allocation11 + $0x348] sm:$0xff]  ;;  %v1416_v4 = vld [vmem:[#allocation11 + $0x358] sm:$0xff] }
 0x293   :  { %v7844_v8 = vpop.eup %7275  ;;  %5312 = vmatmul.mubr.f32.gmra.mrb[22].mxu0 %v1140_v13  ;;  %v1418_v13 = vld [vmem:[#allocation11 + $0x368] sm:$0xff] }
 0x294   :  { %v7846_v41 = vpop.eup %7277  ;;  %v1109_v50 = vsel %vm7734_vm6, %v7844_v8, 0.0  ;;  %6447 = vmatpush3.bf16.msra.mxu0 %v6444_v0  ;;  %v6480_v0 = vpack.c.bf16 %v1410_v58, %v1409_v47  ;;  %v1710_v47 = vld [vmem:[#allocation11 + $0x488] sm:$0xff] }
 0x295   :  { %1119 = vst [vmem:[#allocation2 + $0x50] sm:$0xff] %v1109_v50  ;;  %v1108_v9 = vsel %vm7748_vm7, %v7846_v41, 0.0  ;;  %v1141_v10 = vld [vmem:[#allocation2 + $0x26] sm:$0xff]  ;;  %6449 = vmatprep.subr.bf16.mxu0 %v6448_v5  ;;  %v1142_v33 = vld [vmem:[#allocation2 + $0x2e] sm:$0xff]  ;;  %v1558_v50 = vld [vmem:[#allocation11 + $0x408] sm:$0xff] }
 0x296   :  { %1118 = vst [vmem:[#allocation2 + $0x48] sm:$0xff] %v1108_v9  ;;  %5314 = vmatprep.mubr.f32.mxu0 %v1141_v10  ;;  %v1559_v10 = vld [vmem:[#allocation11 + $0x410] sm:$0xff]  ;;  %v1702_v27 = vld [vmem:[#allocation2 + $0x2a] sm:$0xff] }
 0x297   :  { %5315 = vmatmul.mubr.f32.gmra.mrb[24].mxu0 %v1142_v33  ;;  %v1560_v33 = vld [vmem:[#allocation11 + $0x418] sm:$0xff] }
 0x298   :  { %6451 = vmatpush3.bf16.msra.mxu0 %v6448_v5 }
 0x299   :  { %v1143_v15 = vld [vmem:[#allocation2 + $0x36] sm:$0xff]  ;;  %6453 = vmatprep.subr.bf16.mxu0 %v6452_v11  ;;  %v1144_v16 = vld [vmem:[#allocation2 + $0x3e] sm:$0xff] }
 0x29a   :  { %5317 = vmatprep.mubr.f32.mxu0 %v1143_v15  ;;  %v1396_v15 = vld [vmem:[#allocation2 + $0x17] sm:$0xff]  ;;  %v1401_v37 = vld [vmem:[#allocation2 + $0x3f] sm:$0xff] }
 0x29b   :  { %5318 = vmatmul.mubr.f32.gmra.mrb[26].mxu0 %v1144_v16  ;;  %v6512_v16 = vpack.c.bf16 %v1562_v14, %v1561_v12  ;;  %v1400_v32 = vld [vmem:[#allocation2 + $0x37] sm:$0xff] }
 0x29c   :  { %6455 = vmatpush3.bf16.msra.mxu0 %v6452_v11  ;;  %v1395_v11 = vld [vmem:[#allocation2 + $0xf] sm:$0xff]  ;;  %v1722_v14 = vld [vmem:[#allocation11 + $0x4e8] sm:$0xff] }
 0x29d   :  { %v1145_v25 = vld [vmem:[#allocation2 + $0x46] sm:$0xff]  ;;  %6457 = vmatprep.subr.bf16.mxu0 %v6456_v17  ;;  %v1146_v26 = vld [vmem:[#allocation2 + $0x4e] sm:$0xff] }
 0x29e   :  { %5320 = vmatprep.mubr.f32.mxu0 %v1145_v25  ;;  %v1398_v25 = vld [vmem:[#allocation2 + $0x27] sm:$0xff]  ;;  %v1403_v46 = vld [vmem:[#allocation2 + $0x4f] sm:$0xff] }
 0x29f   :  { %5321 = vmatmul.mubr.f32.gmra.mrb[28].mxu0 %v1146_v26  ;;  %v6516_v26 = vpack.c.bf16 %v1564_v23, %v1563_v20  ;;  %v1402_v40 = vld [vmem:[#allocation2 + $0x47] sm:$0xff]  ;;  %v1721_v12 = vld [vmem:[#allocation11 + $0x4e0] sm:$0xff] }
 0x2a0   :  { %6459 = vmatpush3.bf16.msra.mxu0 %v6456_v17  ;;  %5355 = vmatprep.mubr.msk.f32.mxu0 %vm7636_vm1, %v7805_v28  ;;  %v6472_v28 = vpack.c.bf16 %v1406_v52, %v1405_v51  ;;  %v1397_v17 = vld [vmem:[#allocation2 + $0x1f] sm:$0xff]  ;;  %v1546_v51 = vld [vmem:[#allocation2 + $0x9] sm:$0xff]  ;;  %v1703_v30 = vld [vmem:[#allocation2 + $0x32] sm:$0xff] }
 0x2a1   :  { %6461 = vmatprep.subr.bf16.mxu0 %v6460_v22  ;;  %v1724_v20 = vld [vmem:[#allocation11 + $0x4f8] sm:$0xff] }
 0x2a4   :  { %6463 = vmatpush3.bf16.msra.mxu0 %v6460_v22  ;;  %v1399_v22 = vld [vmem:[#allocation2 + $0x2f] sm:$0xff] }
 0x2a5   :  { %6465 = vmatprep.subr.bf16.mxu0 %v6464_v38 }
 0x2a8   :  { %6467 = vmatpush3.bf16.msra.mxu0 %v6464_v38  ;;  %v1568_v38 = vld [vmem:[#allocation11 + $0x458] sm:$0xff] }
 0x2a9   :  { %6469 = vmatprep.subr.bf16.mxu0 %v6468_v49  ;;  %v6524_v42 = vpack.c.bf16 %v1568_v38, %v1567_v39  ;;  %v1707_v39 = vld [vmem:[#allocation2 + $0x52] sm:$0xff] }
 0x2aa   :  { %v1930_v38 = vld [vmem:[#allocation11 + $0x520] sm:$0xff] }
 0x2ac   :  { %6471 = vmatpush3.bf16.msra.mxu0 %v6468_v49  ;;  %v1570_v49 = vld [vmem:[#allocation11 + $0x468] sm:$0xff] }
 0x2ad   :  { %6473 = vmatprep.subr.bf16.mxu0 %v6472_v28  ;;  %v6528_v52 = vpack.c.bf16 %v1570_v49, %v1569_v29  ;;  %v1933_v29 = vld [vmem:[#allocation11 + $0x538] sm:$0xff] }
 0x2af   :  { %5356 = vmatmul.mubr.msk.f32.vlgmr.msra.gmra.mrb[20].mxu0 %vm7628_vm0, %v7803_v24  ;;  %v6484_v24 = vpack.c.bf16 %v1412_v62, %v1411_v60  ;;  %v1712_v60 = vld [vmem:[#allocation11 + $0x498] sm:$0xff] }
 0x2b0   :  { %5358 = vmatprep.mubr.msk.f32.mxu0 %vm7659_vm3, %v7815_v48  ;;  %6475 = vmatpush3.bf16.msra.mxu0 %v6472_v28  ;;  %v1415_v48 = vld [vmem:[#allocation11 + $0x350] sm:$0xff] }
 0x2b1   :  { %6477 = vmatprep.subr.bf16.mxu0 %v6476_v57  ;;  %v1571_v28 = vld [vmem:[#allocation11 + $0x470] sm:$0xff] }
 0x2b2   :  { %v6532_v56 = vpack.c.bf16 %v1572_v53, %v1571_v28  ;;  %v1936_v53 = vld [vmem:[#allocation11 + $0x550] sm:$0xff] }
 0x2b3   :  { %5359 = vmatmul.mubr.msk.f32.gmra.mrb[22].mxu0 %vm7654_vm2, %v7813_v43  ;;  %v6488_v43 = vpack.c.bf16 %v1414_v2, %v1413_v18  ;;  %v1713_v18 = vld [vmem:[#allocation11 + $0x4a0] sm:$0xff]  ;;  %v1714_v2 = vld [vmem:[#allocation11 + $0x4a8] sm:$0xff] }
 0x2b4   :  { %5361 = vmatprep.mubr.msk.f32.mxu0 %vm7691_vm11, %v7825_v54  ;;  %6479 = vmatpush3.bf16.msra.mxu0 %v6476_v57  ;;  %v1417_v54 = vld [vmem:[#allocation11 + $0x360] sm:$0xff] }
 0x2b5   :  { %6481 = vmatprep.subr.bf16.mxu0 %v6480_v0  ;;  %v6496_v5 = vpack.c.bf16 %v1418_v13, %v1417_v54  ;;  %v1709_v57 = vld [vmem:[#allocation11 + $0x480] sm:$0xff]  ;;  %v1716_v54 = vld [vmem:[#allocation11 + $0x4b8] sm:$0xff] }
 0x2b6   :  { %v6536_v58 = vpack.c.bf16 %v1710_v47, %v1709_v57  ;;  %v1550_v13 = vld [vmem:[#allocation2 + $0x29] sm:$0xff]  ;;  %v1938_v47 = vld [vmem:[#allocation11 + $0x560] sm:$0xff] }
 0x2b7   :  { %5362 = vmatmul.mubr.msk.f32.gmra.mrb[24].mxu0 %vm7681_vm8, %v7823_v34  ;;  %v6492_v34 = vpack.c.bf16 %v1416_v4, %v1415_v48  ;;  %v6544_v48 = vpack.c.bf16 %v1714_v2, %v1713_v18  ;;  %v1549_v4 = vld [vmem:[#allocation2 + $0x21] sm:$0xff]  ;;  %v1899_v18 = vld [vmem:[#allocation11 + $0x600] sm:$0xff] }
 0x2b8   :  { %5364 = vmatprep.mubr.msk.f32.mxu0 %vm7702_vm12, %v7835_v63  ;;  %6483 = vmatpush3.bf16.msra.mxu0 %v6480_v0  ;;  %v1394_v63 = vld [vmem:[#allocation2 + $0x7] sm:$0xff]  ;;  %v1900_v2 = vld [vmem:[#allocation11 + $0x608] sm:$0xff] }
 0x2b9   :  { %6485 = vmatprep.subr.bf16.mxu0 %v6484_v24  ;;  %v1711_v0 = vld [vmem:[#allocation11 + $0x490] sm:$0xff] }
 0x2ba   :  { %v6540_v62 = vpack.c.bf16 %v1712_v60, %v1711_v0  ;;  %v1940_v60 = vld [vmem:[#allocation11 + $0x570] sm:$0xff] }
 0x2bb   :  { %5365 = vmatmul.mubr.msk.f32.gmra.mrb[26].mxu0 %vm7712_vm13, %v7833_v59  ;;  %v1420_v59 = vld [vmem:[#allocation11 + $0x378] sm:$0xff] }
 0x2bc   :  { %5367 = vmatprep.mubr.msk.f32.mxu0 %vm7748_vm7, %v7846_v41  ;;  %6487 = vmatpush3.bf16.msra.mxu0 %v6484_v24  ;;  %v6500_v7 = vpack.c.bf16 %v1420_v59, %v1419_v6  ;;  %v1557_v41 = vld [vmem:[#allocation11 + $0x400] sm:$0xff]  ;;  %v1718_v59 = vld [vmem:[#allocation11 + $0x4c8] sm:$0xff] }
 0x2bd   :  { %6489 = vmatprep.subr.bf16.mxu0 %v6488_v43  ;;  %v6504_v9 = vpack.c.bf16 %v1558_v50, %v1557_v41  ;;  %v1547_v24 = vld [vmem:[#allocation2 + $0x11] sm:$0xff]  ;;  %v1553_v50 = vld [vmem:[#allocation2 + $0x41] sm:$0xff] }
 0x2be   :  { %v1717_v6 = vld [vmem:[#allocation11 + $0x4c0] sm:$0xff] }
 0x2bf   :  { %5368 = vmatmul.mubr.msk.f32.gmra.mrb[28].mxu0 %vm7734_vm6, %v7844_v8  ;;  %v6508_v8 = vpack.c.bf16 %v1560_v33, %v1559_v10  ;;  %v6552_v41 = vpack.c.bf16 %v1718_v59, %v1717_v6  ;;  %v1720_v10 = vld [vmem:[#allocation11 + $0x4d8] sm:$0xff] }
 0x2c0   :  { %6491 = vmatpush3.bf16.msra.mxu0 %v6488_v43  ;;  %5402 = vmatprep.mubr.f32.mxu0 %v1394_v63  ;;  %v1548_v43 = vld [vmem:[#allocation2 + $0x19] sm:$0xff]  ;;  %v1554_v33 = vld [vmem:[#allocation2 + $0x49] sm:$0xff] }
 0x2c1   :  { %6493 = vmatprep.subr.bf16.mxu0 %v6492_v34 }
 0x2c4   :  { %6495 = vmatpush3.bf16.msra.mxu0 %v6492_v34  ;;  %v1715_v34 = vld [vmem:[#allocation11 + $0x4b0] sm:$0xff] }
 0x2c5   :  { %6497 = vmatprep.subr.bf16.mxu0 %v6496_v5  ;;  %v6548_v63 = vpack.c.bf16 %v1716_v54, %v1715_v34 }
 0x2c8   :  { %6499 = vmatpush3.bf16.msra.mxu0 %v6496_v5  ;;  %v1551_v5 = vld [vmem:[#allocation2 + $0x31] sm:$0xff] }
 0x2c9   :  { %6501 = vmatprep.subr.bf16.mxu0 %v6500_v7 }
 0x2cc   :  { %6503 = vmatpush3.bf16.msra.mxu0 %v6500_v7  ;;  %v1552_v7 = vld [vmem:[#allocation2 + $0x39] sm:$0xff] }
 0x2cd   :  { %6505 = vmatprep.subr.bf16.mxu0 %v6504_v9 }
 0x2cf   :  { %5403 = vmatmul.mubr.f32.vlgmr.msra.gmra.mrb[20].mxu0 %v1395_v11  ;;  %v1555_v11 = vld [vmem:[#allocation2 + $0x51] sm:$0xff] }
 0x2d0   :  { %5405 = vmatprep.mubr.f32.mxu0 %v1396_v15  ;;  %6507 = vmatpush3.bf16.msra.mxu0 %v6504_v9  ;;  %v1719_v9 = vld [vmem:[#allocation11 + $0x4d0] sm:$0xff]  ;;  %v1698_v15 = vld [vmem:[#allocation2 + $0xa] sm:$0xff] }
 0x2d1   :  { %6509 = vmatprep.subr.bf16.mxu0 %v6508_v8 }
 0x2d3   :  { %5406 = vmatmul.mubr.f32.gmra.mrb[22].mxu0 %v1397_v17  ;;  %v1723_v17 = vld [vmem:[#allocation11 + $0x4f0] sm:$0xff] }
 0x2d4   :  { %5408 = vmatprep.mubr.f32.mxu0 %v1398_v25  ;;  %6511 = vmatpush3.bf16.msra.mxu0 %v6508_v8  ;;  %v6556_v8 = vpack.c.bf16 %v1720_v10, %v1719_v9  ;;  %v6564_v23 = vpack.c.bf16 %v1724_v20, %v1723_v17  ;;  %v1699_v25 = vld [vmem:[#allocation2 + $0x12] sm:$0xff] }
 0x2d5   :  { %6513 = vmatprep.subr.bf16.mxu0 %v6512_v16 }
 0x2d7   :  { %5409 = vmatmul.mubr.f32.gmra.mrb[24].mxu0 %v1399_v22  ;;  %v1701_v22 = vld [vmem:[#allocation2 + $0x22] sm:$0xff] }
 0x2d8   :  { %5411 = vmatprep.mubr.f32.mxu0 %v1400_v32  ;;  %6515 = vmatpush3.bf16.msra.mxu0 %v6512_v16  ;;  %v6560_v16 = vpack.c.bf16 %v1722_v14, %v1721_v12  ;;  %v1704_v32 = vld [vmem:[#allocation2 + $0x3a] sm:$0xff] }
 0x2d9   :  { %6517 = vmatprep.subr.bf16.mxu0 %v6516_v26 }
 0x2db   :  { %5412 = vmatmul.mubr.f32.gmra.mrb[26].mxu0 %v1401_v37  ;;  %v1706_v37 = vld [vmem:[#allocation2 + $0x4a] sm:$0xff] }
 0x2dc   :  { %5414 = vmatprep.mubr.f32.mxu0 %v1402_v40  ;;  %6519 = vmatpush3.bf16.msra.mxu0 %v6516_v26  ;;  %v1700_v26 = vld [vmem:[#allocation2 + $0x1a] sm:$0xff] }
 0x2dd   :  { %6521 = vmatprep.subr.bf16.mxu0 %v6520_v35  ;;  %v1931_v40 = vld [vmem:[#allocation11 + $0x528] sm:$0xff] }
 0x2df   :  { %5415 = vmatmul.mubr.f32.gmra.mrb[28].mxu0 %v1403_v46  ;;  %v1932_v46 = vld [vmem:[#allocation11 + $0x530] sm:$0xff] }
 0x2e0   :  { %6523 = vmatpush3.bf16.msra.mxu0 %v6520_v35  ;;  %5449 = vmatprep.mubr.f32.mxu0 %v1546_v51  ;;  %v1705_v35 = vld [vmem:[#allocation2 + $0x42] sm:$0xff]  ;;  %v6580_v49 = vpack.c.bf16 %v1933_v29, %v1932_v46  ;;  %v1934_v51 = vld [vmem:[#allocation11 + $0x540] sm:$0xff] }
 0x2e1   :  { %6525 = vmatprep.subr.bf16.mxu0 %v6524_v42 }
 0x2e4   :  { %6527 = vmatpush3.bf16.msra.mxu0 %v6524_v42  ;;  %v6576_v42 = vpack.c.bf16 %v1931_v40, %v1930_v38 }
 0x2e5   :  { %6529 = vmatprep.subr.bf16.mxu0 %v6528_v52 }
 0x2e6   :  { %6577 = vmatprep.subr.bf16.mxu1 %v6576_v42 }
 0x2e7   :  { %6579 = vmatpush3.bf16.msra.mxu1 %v6576_v42 }
 0x2e8   :  { %6531 = vmatpush3.bf16.msra.mxu0 %v6528_v52  ;;  %6581 = vmatprep.subr.bf16.mxu1 %v6580_v49  ;;  %v1935_v52 = vld [vmem:[#allocation11 + $0x548] sm:$0xff] }
 0x2e9   :  { %6533 = vmatprep.subr.bf16.mxu0 %v6532_v56  ;;  %v6584_v28 = vpack.c.bf16 %v1935_v52, %v1934_v51  ;;  %v1904_v51 = vld [vmem:[#allocation11 + $0x628] sm:$0xff] }
 0x2eb   :  { %6583 = vmatpush3.bf16.msra.mxu1 %v6580_v49  ;;  %v1903_v49 = vld [vmem:[#allocation11 + $0x620] sm:$0xff] }
 0x2ec   :  { %6535 = vmatpush3.bf16.msra.mxu0 %v6532_v56  ;;  %6585 = vmatprep.subr.bf16.mxu1 %v6584_v28  ;;  %v1937_v56 = vld [vmem:[#allocation11 + $0x558] sm:$0xff] }
 0x2ed   :  { %6537 = vmatprep.subr.bf16.mxu0 %v6536_v58  ;;  %v6588_v57 = vpack.c.bf16 %v1937_v56, %v1936_v53 }
 0x2ef   :  { %5450 = vmatmul.mubr.f32.vlgmr.msra.gmra.mrb[20].mxu0 %v1547_v24  ;;  %6587 = vmatpush3.bf16.msra.mxu1 %v6584_v28 }
 0x2f0   :  { %5452 = vmatprep.mubr.f32.mxu0 %v1548_v43  ;;  %6539 = vmatpush3.bf16.msra.mxu0 %v6536_v58  ;;  %v1939_v58 = vld [vmem:[#allocation11 + $0x568] sm:$0xff]  ;;  %v7884_v43 = vpack.c.bf16 %v1900_v2, %v1899_v18 }
 0x2f1   :  { %6541 = vmatprep.subr.bf16.mxu0 %v6540_v62  ;;  %6589 = vmatprep.subr.bf16.mxu1 %v6588_v57  ;;  %v6592_v0 = vpack.c.bf16 %v1939_v58, %v1938_v47  ;;  %v6608_v58 = vpack.c.bf16 %v1904_v51, %v1903_v49  ;;  %v2189_v49 = vld [vmem:[#allocation11 + $0x5b0] sm:$0xff]  ;;  %v2190_v51 = vld [vmem:[#allocation11 + $0x5b8] sm:$0xff] }
 0x2f3   :  { %5453 = vmatmul.mubr.f32.gmra.mrb[22].mxu0 %v1549_v4  ;;  %6591 = vmatpush3.bf16.msra.mxu1 %v6588_v57 }
 0x2f4   :  { %5455 = vmatprep.mubr.f32.mxu0 %v1550_v13  ;;  %6543 = vmatpush3.bf16.msra.mxu0 %v6540_v62  ;;  %v1941_v62 = vld [vmem:[#allocation11 + $0x578] sm:$0xff] }
 0x2f5   :  { %6545 = vmatprep.subr.bf16.mxu0 %v6544_v48  ;;  %6593 = vmatprep.subr.bf16.mxu1 %v6592_v0  ;;  %v6596_v24 = vpack.c.bf16 %v1941_v62, %v1940_v60  ;;  %v1906_v60 = vld [vmem:[#allocation11 + $0x638] sm:$0xff] }
 0x2f7   :  { %5456 = vmatmul.mubr.f32.gmra.mrb[24].mxu0 %v1551_v5  ;;  %6595 = vmatpush3.bf16.msra.mxu1 %v6592_v0  ;;  %v1905_v0 = vld [vmem:[#allocation11 + $0x630] sm:$0xff] }
 0x2f8   :  { %5458 = vmatprep.mubr.f32.mxu0 %v1552_v7  ;;  %6547 = vmatpush3.bf16.msra.mxu0 %v6544_v48  ;;  %v4284_v48 = vld [vmem:[#allocation13 + $0x1] ss:$0 sm:$0xff] }
 0x2f9   :  { %6549 = vmatprep.subr.bf16.mxu0 %v6548_v63  ;;  %6597 = vmatprep.subr.bf16.mxu1 %v6596_v24 }
 0x2fb   :  { %5459 = vmatmul.mubr.f32.gmra.mrb[26].mxu0 %v1553_v50  ;;  %6599 = vmatpush3.bf16.msra.mxu1 %v6596_v24 }
 0x2fc   :  { %5461 = vmatprep.mubr.f32.mxu0 %v1554_v33  ;;  %6551 = vmatpush3.bf16.msra.mxu0 %v6548_v63 }
 0x2fd   :  { %6553 = vmatprep.subr.bf16.mxu0 %v6552_v41  ;;  %6601 = vmatprep.subr.bf16.mxu1 %v7884_v43 }
 0x2ff   :  { %5462 = vmatmul.mubr.f32.gmra.mrb[28].mxu0 %v1555_v11 }
 0x300   :  { %6555 = vmatpush3.bf16.msra.mxu0 %v6552_v41  ;;  %5496 = vmatprep.mubr.f32.mxu0 %v1698_v15 }
 0x301   :  { %6557 = vmatprep.subr.bf16.mxu0 %v6556_v8 }
 0x304   :  { %6559 = vmatpush3.bf16.msra.mxu0 %v6556_v8 }
 0x305   :  { %6561 = vmatprep.subr.bf16.mxu0 %v6560_v16 }
 0x308   :  { %6563 = vmatpush3.bf16.msra.mxu0 %v6560_v16 }
 0x309   :  { %6565 = vmatprep.subr.bf16.mxu0 %v6564_v23 }
 0x30c   :  { %6567 = vmatpush3.bf16.msra.mxu0 %v6564_v23 }
 0x30f   :  { %5497 = vmatmul.mubr.f32.vlgmr.msra.gmra.mrb[20].mxu0 %v1699_v25 }
 0x310   :  { %5499 = vmatprep.mubr.f32.mxu0 %v1700_v26 }
 0x313   :  { %5500 = vmatmul.mubr.f32.gmra.mrb[22].mxu0 %v1701_v22 }
 0x314   :  { %5502 = vmatprep.mubr.f32.mxu0 %v1702_v27 }
 0x317   :  { %5503 = vmatmul.mubr.f32.gmra.mrb[24].mxu0 %v1703_v30 }
 0x318   :  { %5505 = vmatprep.mubr.f32.mxu0 %v1704_v32  ;;  %v1901_v32 = vld [vmem:[#allocation11 + $0x610] sm:$0xff] }
 0x31b   :  { %5506 = vmatmul.mubr.f32.gmra.mrb[26].mxu0 %v1705_v35  ;;  %v1902_v35 = vld [vmem:[#allocation11 + $0x618] sm:$0xff] }
 0x31c   :  { %5508 = vmatprep.mubr.f32.mxu0 %v1706_v37  ;;  %v6604_v29 = vpack.c.bf16 %v1902_v35, %v1901_v32  ;;  %v2184_v32 = vld [vmem:[#allocation11 + $0x588] sm:$0xff]  ;;  %v2185_v35 = vld [vmem:[#allocation11 + $0x590] sm:$0xff] }
 0x31f   :  { %5509 = vmatmul.mubr.f32.gmra.mrb[28].mxu0 %v1707_v39 }
 0x3e2   :  { %v5498_v4 = vpop.f32.mrb[20].mxu0 }
 0x3e3   :  { %v1859_v34 = vadd.f32 %v5498_v4, %v4284_v48  ;;  %v1791_v54 = vpop.f32.mrb[21].mxu0  ;;  %v6612_v4 = vpack.c.bf16 %v1906_v60, %v1905_v0  ;;  %v2197_v0 = vld [vmem:[#allocation11 + $0x5f0] sm:$0xff] }
 0x3e4   :  { %v1858_v13 = vadd.f32 %v4284_v48, %v1791_v54  ;;  %v1908_v54 = vld [vmem:[#allocation11 + $0x648] sm:$0xff] }
 0x3e5   :  { %7279 = vtanh.f32 %v1859_v34  ;;  %v1907_v34 = vld [vmem:[#allocation11 + $0x640] sm:$0xff] }
 0x3e6   :  { %7281 = vtanh.f32 %v1858_v13  ;;  %v5501_v63 = vpop.f32.mrb[22].mxu0 }
 0x3e7   :  { %v1861_v5 = vadd.f32 %v5501_v63, %v4284_v48  ;;  %v1801_v6 = vpop.f32.mrb[23].mxu0 }
 0x3e8   :  { %v1860_v59 = vadd.f32 %v4284_v48, %v1801_v6  ;;  %v1909_v6 = vld [vmem:[#allocation11 + $0x650] sm:$0xff] }
 0x3e9   :  { %7283 = vtanh.f32 %v1861_v5  ;;  %v6616_v5 = vpack.c.bf16 %v1908_v54, %v1907_v34  ;;  %v2339_v34 = vld [vmem:[#allocation11 + $0x6a0] sm:$0xff]  ;;  %v2340_v54 = vld [vmem:[#allocation11 + $0x6a8] sm:$0xff] }
 0x3ea   :  { %7285 = vtanh.f32 %v1860_v59  ;;  %v5504_v7 = vpop.f32.mrb[24].mxu0  ;;  %v1910_v59 = vld [vmem:[#allocation11 + $0x658] sm:$0xff] }
 0x3eb   :  { %v1863_v41 = vadd.f32 %v5504_v7, %v4284_v48  ;;  %v1811_v50 = vpop.f32.mrb[25].mxu0 }
 0x3ec   :  { %v1862_v9 = vadd.f32 %v4284_v48, %v1811_v50  ;;  %v6620_v50 = vpack.c.bf16 %v1910_v59, %v1909_v6  ;;  %v2341_v6 = vld [vmem:[#allocation11 + $0x6b0] sm:$0xff]  ;;  %v2342_v59 = vld [vmem:[#allocation11 + $0x6b8] sm:$0xff] }
 0x3ed   :  { %7287 = vtanh.f32 %v1863_v41 }
 0x3ee   :  { %7289 = vtanh.f32 %v1862_v9  ;;  %v5507_v10 = vpop.f32.mrb[26].mxu0  ;;  %v1911_v9 = vld [vmem:[#allocation11 + $0x660] sm:$0xff] }
 0x3ef   :  { %v7887_v33 = vpop.eup %7279  ;;  %v1865_v8 = vadd.f32 %v5507_v10, %v4284_v48  ;;  %v1821_v11 = vpop.f32.mrb[27].mxu0  ;;  %v1912_v10 = vld [vmem:[#allocation11 + $0x668] sm:$0xff] }
 0x3f0   :  { %v7889_v12 = vpop.eup %7281  ;;  %v1879_v14 = vsel %vm7628_vm0, %v7887_v33, 0.0  ;;  %v1864_v15 = vadd.f32 %v4284_v48, %v1821_v11  ;;  %v2705_v11 = vld [vmem:[#allocation11 + $0x788] sm:$0xff] }
 0x3f1   :  { %1889 = vst [vmem:[#allocation2 + $0x10] sm:$0xff] %v1879_v14  ;;  %v1878_v16 = vsel %vm7636_vm1, %v7889_v12, 0.0  ;;  %7291 = vtanh.f32 %v1865_v8  ;;  %v2704_v8 = vld [vmem:[#allocation11 + $0x780] sm:$0xff]  ;;  %v2706_v14 = vld [vmem:[#allocation11 + $0x790] sm:$0xff] }
 0x3f2   :  { %1888 = vst [vmem:[#allocation2 + $0x8] sm:$0xff] %v1878_v16  ;;  %7293 = vtanh.f32 %v1864_v15  ;;  %v5510_v17 = vpop.f32.mrb[28].mxu0  ;;  %v2707_v15 = vld [vmem:[#allocation11 + $0x798] sm:$0xff]  ;;  %v6624_v16 = vpack.c.bf16 %v1912_v10, %v1911_v9  ;;  %v2343_v9 = vld [vmem:[#allocation11 + $0x6c0] sm:$0xff]  ;;  %v2344_v10 = vld [vmem:[#allocation11 + $0x6c8] sm:$0xff] }
 0x3f3   :  { %v7897_v20 = vpop.eup %7283  ;;  %v1867_v23 = vadd.f32 %v5510_v17, %v4284_v48  ;;  %v1831_v25 = vpop.f32.mrb[29].mxu0  ;;  %v6728_v17 = vpack.c.bf16 %v2705_v11, %v2704_v8  ;;  %v6680_v11 = vpack.c.bf16 %v2344_v10, %v2343_v9 }
 0x3f4   :  { %v7899_v26 = vpop.eup %7285  ;;  %v1881_v22 = vsel %vm7654_vm2, %v7897_v20, 0.0  ;;  %v1866_v27 = vadd.f32 %v4284_v48, %v1831_v25  ;;  %v1913_v25 = vld [vmem:[#allocation11 + $0x670] sm:$0xff] }
 0x3f5   :  { %1891 = vst [vmem:[#allocation2 + $0x20] sm:$0xff] %v1881_v22  ;;  %v1880_v30 = vsel %vm7659_vm3, %v7899_v26, 0.0  ;;  %7295 = vtanh.f32 %v1867_v23  ;;  %v6732_v23 = vpack.c.bf16 %v2707_v15, %v2706_v14  ;;  %v1914_v22 = vld [vmem:[#allocation11 + $0x678] sm:$0xff]  ;;  %6729 = vmatprep.subr.bf16.mxu0 %v6728_v17  ;;  %v2345_v15 = vld [vmem:[#allocation11 + $0x6d0] sm:$0xff] }
 0x3f6   :  { %1890 = vst [vmem:[#allocation2 + $0x18] sm:$0xff] %v1880_v30  ;;  %7297 = vtanh.f32 %v1866_v27  ;;  %6731 = vmatpush3.bf16.msra.mxu0 %v6728_v17  ;;  %v6628_v27 = vpack.c.bf16 %v1914_v22, %v1913_v25  ;;  %v2183_v30 = vld [vmem:[#allocation11 + $0x580] sm:$0xff] }
 0x3f7   :  { %v7907_v37 = vpop.eup %7287  ;;  %6733 = vmatprep.subr.bf16.mxu0 %v6732_v23  ;;  %v2347_v22 = vld [vmem:[#allocation11 + $0x6e0] sm:$0xff] }
 0x3f8   :  { %v7909_v39 = vpop.eup %7289  ;;  %v1883_v38 = vsel %vm7681_vm8, %v7907_v37, 0.0 }
 0x3f9   :  { %1893 = vst [vmem:[#allocation2 + $0x30] sm:$0xff] %v1883_v38  ;;  %v1882_v40 = vsel %vm7691_vm11, %v7909_v39, 0.0  ;;  %v1915_v42 = vld [vmem:[#allocation2 + $0x6] sm:$0xff]  ;;  %v1916_v46 = vld [vmem:[#allocation2 + $0xe] sm:$0xff] }
 0x3fa   :  { %1892 = vst [vmem:[#allocation2 + $0x28] sm:$0xff] %v1882_v40  ;;  %5543 = vmatprep.mubr.f32.mxu1 %v1915_v42  ;;  %6735 = vmatpush3.bf16.msra.mxu0 %v6732_v23  ;;  %v2186_v38 = vld [vmem:[#allocation11 + $0x598] sm:$0xff]  ;;  %v2187_v42 = vld [vmem:[#allocation11 + $0x5a0] sm:$0xff] }
 0x3fb   :  { %v7917_v52 = vpop.eup %7291  ;;  %5544 = vmatmul.mubr.f32.vlgmr.msra.gmra.mrb[10].mxu1 %v1916_v46  ;;  %v6636_v40 = vpack.c.bf16 %v2186_v38, %v2185_v35  ;;  %v2188_v46 = vld [vmem:[#allocation11 + $0x5a8] sm:$0xff]  ;;  %v2350_v35 = vld [vmem:[#allocation11 + $0x6f8] sm:$0xff] }
 0x3fc   :  { %v7919_v28 = vpop.eup %7293  ;;  %v1885_v53 = vsel %vm7712_vm13, %v7917_v52, 0.0  ;;  %6603 = vmatpush3.bf16.msra.mxu1 %v7884_v43 }
 0x3fd   :  { %1895 = vst [vmem:[#allocation2 + $0x40] sm:$0xff] %v1885_v53  ;;  %v1884_v56 = vsel %vm7702_vm12, %v7919_v28, 0.0  ;;  %v1917_v57 = vld [vmem:[#allocation2 + $0x16] sm:$0xff]  ;;  %6605 = vmatprep.subr.bf16.mxu1 %v6604_v29  ;;  %v1918_v47 = vld [vmem:[#allocation2 + $0x1e] sm:$0xff] }
 0x3fe   :  { %1894 = vst [vmem:[#allocation2 + $0x38] sm:$0xff] %v1884_v56  ;;  %5546 = vmatprep.mubr.f32.mxu1 %v1917_v57  ;;  %v2191_v53 = vld [vmem:[#allocation11 + $0x5c0] sm:$0xff]  ;;  %v2192_v56 = vld [vmem:[#allocation11 + $0x5c8] sm:$0xff]  ;;  %v2194_v57 = vld [vmem:[#allocation11 + $0x5d8] sm:$0xff] }
 0x3ff   :  { %v7928_v62 = vpop.eup %7295  ;;  %5547 = vmatmul.mubr.f32.gmra.mrb[12].mxu1 %v1918_v47  ;;  %v2196_v47 = vld [vmem:[#allocation11 + $0x5e8] sm:$0xff] }
 0x400   :  { %v7930_v24 = vpop.eup %7297  ;;  %v1887_v18 = vsel %vm7734_vm6, %v7928_v62, 0.0  ;;  %6607 = vmatpush3.bf16.msra.mxu1 %v6604_v29  ;;  %v6640_v29 = vpack.c.bf16 %v2188_v46, %v2187_v42  ;;  %v2488_v42 = vld [vmem:[#allocation11 + $0x708] sm:$0xff] }
 0x401   :  { %1897 = vst [vmem:[#allocation2 + $0x50] sm:$0xff] %v1887_v18  ;;  %v1886_v2 = vsel %vm7748_vm7, %v7930_v24, 0.0  ;;  %v1919_v43 = vld [vmem:[#allocation2 + $0x26] sm:$0xff]  ;;  %6609 = vmatprep.subr.bf16.mxu1 %v6608_v58  ;;  %v1920_v48 = vld [vmem:[#allocation2 + $0x2e] sm:$0xff]  ;;  %v2336_v18 = vld [vmem:[#allocation11 + $0x688] sm:$0xff] }
 0x402   :  { %1896 = vst [vmem:[#allocation2 + $0x48] sm:$0xff] %v1886_v2  ;;  %5549 = vmatprep.mubr.f32.mxu1 %v1919_v43  ;;  %v2337_v43 = vld [vmem:[#allocation11 + $0x690] sm:$0xff]  ;;  %v2480_v9 = vld [vmem:[#allocation2 + $0x2a] sm:$0xff] }
 0x403   :  { %5550 = vmatmul.mubr.f32.gmra.mrb[14].mxu1 %v1920_v48  ;;  %v2338_v48 = vld [vmem:[#allocation11 + $0x698] sm:$0xff] }
 0x404   :  { %6611 = vmatpush3.bf16.msra.mxu1 %v6608_v58 }
 0x405   :  { %v1921_v13 = vld [vmem:[#allocation2 + $0x36] sm:$0xff]  ;;  %6613 = vmatprep.subr.bf16.mxu1 %v6612_v4  ;;  %v1922_v63 = vld [vmem:[#allocation2 + $0x3e] sm:$0xff] }
 0x406   :  { %5552 = vmatprep.mubr.f32.mxu1 %v1921_v13  ;;  %v2174_v13 = vld [vmem:[#allocation2 + $0x17] sm:$0xff]  ;;  %v2179_v14 = vld [vmem:[#allocation2 + $0x3f] sm:$0xff] }
 0x407   :  { %5553 = vmatmul.mubr.f32.gmra.mrb[16].mxu1 %v1922_v63  ;;  %v6672_v63 = vpack.c.bf16 %v2340_v54, %v2339_v34  ;;  %v2178_v8 = vld [vmem:[#allocation2 + $0x37] sm:$0xff] }
 0x408   :  { %6615 = vmatpush3.bf16.msra.mxu1 %v6612_v4  ;;  %v2173_v4 = vld [vmem:[#allocation2 + $0xf] sm:$0xff]  ;;  %v2500_v54 = vld [vmem:[#allocation11 + $0x768] sm:$0xff] }
 0x409   :  { %v1923_v7 = vld [vmem:[#allocation2 + $0x46] sm:$0xff]  ;;  %6617 = vmatprep.subr.bf16.mxu1 %v6616_v5  ;;  %v1924_v41 = vld [vmem:[#allocation2 + $0x4e] sm:$0xff] }
 0x40a   :  { %5555 = vmatprep.mubr.f32.mxu1 %v1923_v7  ;;  %v2176_v7 = vld [vmem:[#allocation2 + $0x27] sm:$0xff]  ;;  %v2181_v25 = vld [vmem:[#allocation2 + $0x4f] sm:$0xff] }
 0x40b   :  { %5556 = vmatmul.mubr.f32.gmra.mrb[18].mxu1 %v1924_v41  ;;  %v6676_v41 = vpack.c.bf16 %v2342_v59, %v2341_v6  ;;  %v2180_v17 = vld [vmem:[#allocation2 + $0x47] sm:$0xff]  ;;  %v2499_v34 = vld [vmem:[#allocation11 + $0x760] sm:$0xff] }
 0x40c   :  { %6619 = vmatpush3.bf16.msra.mxu1 %v6616_v5  ;;  %5590 = vmatprep.mubr.msk.f32.mxu1 %vm7636_vm1, %v7889_v12  ;;  %v6632_v12 = vpack.c.bf16 %v2184_v32, %v2183_v30  ;;  %v2175_v5 = vld [vmem:[#allocation2 + $0x1f] sm:$0xff]  ;;  %v2324_v30 = vld [vmem:[#allocation2 + $0x9] sm:$0xff]  ;;  %v2481_v10 = vld [vmem:[#allocation2 + $0x32] sm:$0xff] }
 0x40d   :  { %6621 = vmatprep.subr.bf16.mxu1 %v6620_v50  ;;  %v2502_v6 = vld [vmem:[#allocation11 + $0x778] sm:$0xff] }
 0x410   :  { %6623 = vmatpush3.bf16.msra.mxu1 %v6620_v50  ;;  %v2177_v50 = vld [vmem:[#allocation2 + $0x2f] sm:$0xff] }
 0x411   :  { %6625 = vmatprep.subr.bf16.mxu1 %v6624_v16 }
 0x414   :  { %6627 = vmatpush3.bf16.msra.mxu1 %v6624_v16  ;;  %v2346_v16 = vld [vmem:[#allocation11 + $0x6d8] sm:$0xff] }
 0x415   :  { %6629 = vmatprep.subr.bf16.mxu1 %v6628_v27  ;;  %v6684_v23 = vpack.c.bf16 %v2346_v16, %v2345_v15  ;;  %v2485_v15 = vld [vmem:[#allocation2 + $0x52] sm:$0xff] }
 0x416   :  { %v2708_v16 = vld [vmem:[#allocation11 + $0x7a0] sm:$0xff] }
 0x418   :  { %6631 = vmatpush3.bf16.msra.mxu1 %v6628_v27  ;;  %v2348_v27 = vld [vmem:[#allocation11 + $0x6e8] sm:$0xff] }
 0x419   :  { %6633 = vmatprep.subr.bf16.mxu1 %v6632_v12  ;;  %v6688_v32 = vpack.c.bf16 %v2348_v27, %v2347_v22  ;;  %v2711_v22 = vld [vmem:[#allocation11 + $0x7b8] sm:$0xff] }
 0x41b   :  { %5591 = vmatmul.mubr.msk.f32.vlgmr.msra.gmra.mrb[10].mxu1 %vm7628_vm0, %v7887_v33  ;;  %v6644_v33 = vpack.c.bf16 %v2190_v51, %v2189_v49  ;;  %v2490_v49 = vld [vmem:[#allocation11 + $0x718] sm:$0xff] }
 0x41c   :  { %5593 = vmatprep.mubr.msk.f32.mxu1 %vm7659_vm3, %v7899_v26  ;;  %6635 = vmatpush3.bf16.msra.mxu1 %v6632_v12  ;;  %v2193_v26 = vld [vmem:[#allocation11 + $0x5d0] sm:$0xff] }
 0x41d   :  { %6637 = vmatprep.subr.bf16.mxu1 %v6636_v40  ;;  %v2349_v12 = vld [vmem:[#allocation11 + $0x6f0] sm:$0xff] }
 0x41e   :  { %v6692_v38 = vpack.c.bf16 %v2350_v35, %v2349_v12  ;;  %v2714_v35 = vld [vmem:[#allocation11 + $0x7d0] sm:$0xff] }
 0x41f   :  { %5594 = vmatmul.mubr.msk.f32.gmra.mrb[12].mxu1 %vm7654_vm2, %v7897_v20  ;;  %v6648_v20 = vpack.c.bf16 %v2192_v56, %v2191_v53  ;;  %v2491_v53 = vld [vmem:[#allocation11 + $0x720] sm:$0xff]  ;;  %v2492_v56 = vld [vmem:[#allocation11 + $0x728] sm:$0xff] }
 0x420   :  { %5596 = vmatprep.mubr.msk.f32.mxu1 %vm7691_vm11, %v7909_v39  ;;  %6639 = vmatpush3.bf16.msra.mxu1 %v6636_v40  ;;  %v2195_v39 = vld [vmem:[#allocation11 + $0x5e0] sm:$0xff] }
 0x421   :  { %6641 = vmatprep.subr.bf16.mxu1 %v6640_v29  ;;  %v6656_v58 = vpack.c.bf16 %v2196_v47, %v2195_v39  ;;  %v2487_v40 = vld [vmem:[#allocation11 + $0x700] sm:$0xff]  ;;  %v2494_v39 = vld [vmem:[#allocation11 + $0x738] sm:$0xff] }
 0x422   :  { %v6696_v46 = vpack.c.bf16 %v2488_v42, %v2487_v40  ;;  %v2328_v47 = vld [vmem:[#allocation2 + $0x29] sm:$0xff]  ;;  %v2716_v42 = vld [vmem:[#allocation11 + $0x7e0] sm:$0xff] }
 0x423   :  { %5597 = vmatmul.mubr.msk.f32.gmra.mrb[14].mxu1 %vm7681_vm8, %v7907_v37  ;;  %v6652_v37 = vpack.c.bf16 %v2194_v57, %v2193_v26  ;;  %v6704_v26 = vpack.c.bf16 %v2492_v56, %v2491_v53  ;;  %v2327_v57 = vld [vmem:[#allocation2 + $0x21] sm:$0xff]  ;;  %v2677_v53 = vld [vmem:[#allocation11 + $0x880] sm:$0xff] }
 0x424   :  { %5599 = vmatprep.mubr.msk.f32.mxu1 %vm7702_vm12, %v7919_v28  ;;  %6643 = vmatpush3.bf16.msra.mxu1 %v6640_v29  ;;  %v2172_v28 = vld [vmem:[#allocation2 + $0x7] sm:$0xff]  ;;  %v2678_v56 = vld [vmem:[#allocation11 + $0x888] sm:$0xff] }
 0x425   :  { %6645 = vmatprep.subr.bf16.mxu1 %v6644_v33  ;;  %v2489_v29 = vld [vmem:[#allocation11 + $0x710] sm:$0xff] }
 0x426   :  { %v6700_v51 = vpack.c.bf16 %v2490_v49, %v2489_v29  ;;  %v2718_v49 = vld [vmem:[#allocation11 + $0x7f0] sm:$0xff] }
 0x427   :  { %5600 = vmatmul.mubr.msk.f32.gmra.mrb[16].mxu1 %vm7712_vm13, %v7917_v52  ;;  %v2198_v52 = vld [vmem:[#allocation11 + $0x5f8] sm:$0xff] }
 0x428   :  { %5602 = vmatprep.mubr.msk.f32.mxu1 %vm7748_vm7, %v7930_v24  ;;  %6647 = vmatpush3.bf16.msra.mxu1 %v6644_v33  ;;  %v6660_v60 = vpack.c.bf16 %v2198_v52, %v2197_v0  ;;  %v2335_v24 = vld [vmem:[#allocation11 + $0x680] sm:$0xff]  ;;  %v2496_v52 = vld [vmem:[#allocation11 + $0x748] sm:$0xff] }
 0x429   :  { %6649 = vmatprep.subr.bf16.mxu1 %v6648_v20  ;;  %v6664_v2 = vpack.c.bf16 %v2336_v18, %v2335_v24  ;;  %v2325_v33 = vld [vmem:[#allocation2 + $0x11] sm:$0xff]  ;;  %v2331_v18 = vld [vmem:[#allocation2 + $0x41] sm:$0xff] }
 0x42a   :  { %v2495_v0 = vld [vmem:[#allocation11 + $0x740] sm:$0xff] }
 0x42b   :  { %5603 = vmatmul.mubr.msk.f32.gmra.mrb[18].mxu1 %vm7734_vm6, %v7928_v62  ;;  %v6668_v62 = vpack.c.bf16 %v2338_v48, %v2337_v43  ;;  %v6712_v24 = vpack.c.bf16 %v2496_v52, %v2495_v0  ;;  %v2498_v43 = vld [vmem:[#allocation11 + $0x758] sm:$0xff] }
 0x42c   :  { %6651 = vmatpush3.bf16.msra.mxu1 %v6648_v20  ;;  %5637 = vmatprep.mubr.f32.mxu1 %v2172_v28  ;;  %v2326_v20 = vld [vmem:[#allocation2 + $0x19] sm:$0xff]  ;;  %v2332_v48 = vld [vmem:[#allocation2 + $0x49] sm:$0xff] }
 0x42d   :  { %6653 = vmatprep.subr.bf16.mxu1 %v6652_v37 }
 0x430   :  { %6655 = vmatpush3.bf16.msra.mxu1 %v6652_v37  ;;  %v2493_v37 = vld [vmem:[#allocation11 + $0x730] sm:$0xff] }
 0x431   :  { %6657 = vmatprep.subr.bf16.mxu1 %v6656_v58  ;;  %v6708_v28 = vpack.c.bf16 %v2494_v39, %v2493_v37 }
 0x434   :  { %6659 = vmatpush3.bf16.msra.mxu1 %v6656_v58  ;;  %v2329_v58 = vld [vmem:[#allocation2 + $0x31] sm:$0xff] }
 0x435   :  { %6661 = vmatprep.subr.bf16.mxu1 %v6660_v60 }
 0x438   :  { %6663 = vmatpush3.bf16.msra.mxu1 %v6660_v60  ;;  %v2330_v60 = vld [vmem:[#allocation2 + $0x39] sm:$0xff] }
 0x439   :  { %6665 = vmatprep.subr.bf16.mxu1 %v6664_v2 }
 0x43b   :  { %5638 = vmatmul.mubr.f32.vlgmr.msra.gmra.mrb[10].mxu1 %v2173_v4  ;;  %v2333_v4 = vld [vmem:[#allocation2 + $0x51] sm:$0xff] }
 0x43c   :  { %5640 = vmatprep.mubr.f32.mxu1 %v2174_v13  ;;  %6667 = vmatpush3.bf16.msra.mxu1 %v6664_v2  ;;  %v2497_v2 = vld [vmem:[#allocation11 + $0x750] sm:$0xff]  ;;  %v2476_v13 = vld [vmem:[#allocation2 + $0xa] sm:$0xff] }
 0x43d   :  { %6669 = vmatprep.subr.bf16.mxu1 %v6668_v62 }
 0x43f   :  { %5641 = vmatmul.mubr.f32.gmra.mrb[12].mxu1 %v2175_v5  ;;  %v2501_v5 = vld [vmem:[#allocation11 + $0x770] sm:$0xff] }
 0x440   :  { %5643 = vmatprep.mubr.f32.mxu1 %v2176_v7  ;;  %6671 = vmatpush3.bf16.msra.mxu1 %v6668_v62  ;;  %v6716_v62 = vpack.c.bf16 %v2498_v43, %v2497_v2  ;;  %v6724_v59 = vpack.c.bf16 %v2502_v6, %v2501_v5  ;;  %v2477_v7 = vld [vmem:[#allocation2 + $0x12] sm:$0xff] }
 0x441   :  { %6673 = vmatprep.subr.bf16.mxu1 %v6672_v63 }
 0x443   :  { %5644 = vmatmul.mubr.f32.gmra.mrb[14].mxu1 %v2177_v50  ;;  %v2479_v50 = vld [vmem:[#allocation2 + $0x22] sm:$0xff] }
 0x444   :  { %5646 = vmatprep.mubr.f32.mxu1 %v2178_v8  ;;  %6675 = vmatpush3.bf16.msra.mxu1 %v6672_v63  ;;  %v6720_v63 = vpack.c.bf16 %v2500_v54, %v2499_v34  ;;  %v2482_v8 = vld [vmem:[#allocation2 + $0x3a] sm:$0xff] }
 0x445   :  { %6677 = vmatprep.subr.bf16.mxu1 %v6676_v41 }
 0x447   :  { %5647 = vmatmul.mubr.f32.gmra.mrb[16].mxu1 %v2179_v14  ;;  %v2484_v14 = vld [vmem:[#allocation2 + $0x4a] sm:$0xff] }
 0x448   :  { %5649 = vmatprep.mubr.f32.mxu1 %v2180_v17  ;;  %6679 = vmatpush3.bf16.msra.mxu1 %v6676_v41  ;;  %v2478_v41 = vld [vmem:[#allocation2 + $0x1a] sm:$0xff] }
 0x449   :  { %6681 = vmatprep.subr.bf16.mxu1 %v6680_v11  ;;  %v2709_v17 = vld [vmem:[#allocation11 + $0x7a8] sm:$0xff] }
 0x44b   :  { %5650 = vmatmul.mubr.f32.gmra.mrb[18].mxu1 %v2181_v25  ;;  %v2710_v25 = vld [vmem:[#allocation11 + $0x7b0] sm:$0xff] }
 0x44c   :  { %6683 = vmatpush3.bf16.msra.mxu1 %v6680_v11  ;;  %5684 = vmatprep.mubr.f32.mxu1 %v2324_v30  ;;  %v2483_v11 = vld [vmem:[#allocation2 + $0x42] sm:$0xff]  ;;  %v6740_v27 = vpack.c.bf16 %v2711_v22, %v2710_v25  ;;  %v2712_v30 = vld [vmem:[#allocation11 + $0x7c0] sm:$0xff] }
 0x44d   :  { %6685 = vmatprep.subr.bf16.mxu1 %v6684_v23 }
 0x450   :  { %6687 = vmatpush3.bf16.msra.mxu1 %v6684_v23  ;;  %v6736_v23 = vpack.c.bf16 %v2709_v17, %v2708_v16 }
 0x451   :  { %6689 = vmatprep.subr.bf16.mxu1 %v6688_v32 }
 0x452   :  { %6737 = vmatprep.subr.bf16.mxu0 %v6736_v23 }
 0x453   :  { %6739 = vmatpush3.bf16.msra.mxu0 %v6736_v23 }
 0x454   :  { %6691 = vmatpush3.bf16.msra.mxu1 %v6688_v32  ;;  %6741 = vmatprep.subr.bf16.mxu0 %v6740_v27  ;;  %v2713_v32 = vld [vmem:[#allocation11 + $0x7c8] sm:$0xff] }
 0x455   :  { %6693 = vmatprep.subr.bf16.mxu1 %v6692_v38  ;;  %v6744_v12 = vpack.c.bf16 %v2713_v32, %v2712_v30  ;;  %v2682_v30 = vld [vmem:[#allocation11 + $0x8a8] sm:$0xff] }
 0x457   :  { %6743 = vmatpush3.bf16.msra.mxu0 %v6740_v27  ;;  %v2681_v27 = vld [vmem:[#allocation11 + $0x8a0] sm:$0xff] }
 0x458   :  { %6695 = vmatpush3.bf16.msra.mxu1 %v6692_v38  ;;  %6745 = vmatprep.subr.bf16.mxu0 %v6744_v12  ;;  %v2715_v38 = vld [vmem:[#allocation11 + $0x7d8] sm:$0xff] }
 0x459   :  { %6697 = vmatprep.subr.bf16.mxu1 %v6696_v46  ;;  %v6748_v40 = vpack.c.bf16 %v2715_v38, %v2714_v35 }
 0x45b   :  { %5685 = vmatmul.mubr.f32.vlgmr.msra.gmra.mrb[10].mxu1 %v2325_v33  ;;  %6747 = vmatpush3.bf16.msra.mxu0 %v6744_v12 }
 0x45c   :  { %5687 = vmatprep.mubr.f32.mxu1 %v2326_v20  ;;  %6699 = vmatpush3.bf16.msra.mxu1 %v6696_v46  ;;  %v2717_v46 = vld [vmem:[#allocation11 + $0x7e8] sm:$0xff]  ;;  %v7968_v20 = vpack.c.bf16 %v2678_v56, %v2677_v53 }
 0x45d   :  { %6701 = vmatprep.subr.bf16.mxu1 %v6700_v51  ;;  %6749 = vmatprep.subr.bf16.mxu0 %v6748_v40  ;;  %v6752_v29 = vpack.c.bf16 %v2717_v46, %v2716_v42  ;;  %v6768_v46 = vpack.c.bf16 %v2682_v30, %v2681_v27  ;;  %v2967_v27 = vld [vmem:[#allocation11 + $0x830] sm:$0xff]  ;;  %v2968_v30 = vld [vmem:[#allocation11 + $0x838] sm:$0xff] }
 0x45f   :  { %5688 = vmatmul.mubr.f32.gmra.mrb[12].mxu1 %v2327_v57  ;;  %6751 = vmatpush3.bf16.msra.mxu0 %v6748_v40 }
 0x460   :  { %5690 = vmatprep.mubr.f32.mxu1 %v2328_v47  ;;  %6703 = vmatpush3.bf16.msra.mxu1 %v6700_v51  ;;  %v2719_v51 = vld [vmem:[#allocation11 + $0x7f8] sm:$0xff] }
 0x461   :  { %6705 = vmatprep.subr.bf16.mxu1 %v6704_v26  ;;  %6753 = vmatprep.subr.bf16.mxu0 %v6752_v29  ;;  %v6756_v33 = vpack.c.bf16 %v2719_v51, %v2718_v49  ;;  %v2684_v49 = vld [vmem:[#allocation11 + $0x8b8] sm:$0xff] }
 0x463   :  { %5691 = vmatmul.mubr.f32.gmra.mrb[14].mxu1 %v2329_v58  ;;  %6755 = vmatpush3.bf16.msra.mxu0 %v6752_v29  ;;  %v2683_v29 = vld [vmem:[#allocation11 + $0x8b0] sm:$0xff] }
 0x464   :  { %5693 = vmatprep.mubr.f32.mxu1 %v2330_v60  ;;  %6707 = vmatpush3.bf16.msra.mxu1 %v6704_v26  ;;  %v4295_v26 = vld [vmem:[#allocation13 + $0x2] ss:$0 sm:$0xff] }
 0x465   :  { %6709 = vmatprep.subr.bf16.mxu1 %v6708_v28  ;;  %6757 = vmatprep.subr.bf16.mxu0 %v6756_v33 }
 0x467   :  { %5694 = vmatmul.mubr.f32.gmra.mrb[16].mxu1 %v2331_v18  ;;  %6759 = vmatpush3.bf16.msra.mxu0 %v6756_v33 }
 0x468   :  { %5696 = vmatprep.mubr.f32.mxu1 %v2332_v48  ;;  %6711 = vmatpush3.bf16.msra.mxu1 %v6708_v28 }
 0x469   :  { %6713 = vmatprep.subr.bf16.mxu1 %v6712_v24  ;;  %6761 = vmatprep.subr.bf16.mxu0 %v7968_v20 }
 0x46b   :  { %5697 = vmatmul.mubr.f32.gmra.mrb[18].mxu1 %v2333_v4 }
 0x46c   :  { %6715 = vmatpush3.bf16.msra.mxu1 %v6712_v24  ;;  %5731 = vmatprep.mubr.f32.mxu1 %v2476_v13 }
 0x46d   :  { %6717 = vmatprep.subr.bf16.mxu1 %v6716_v62 }
 0x470   :  { %6719 = vmatpush3.bf16.msra.mxu1 %v6716_v62 }
 0x471   :  { %6721 = vmatprep.subr.bf16.mxu1 %v6720_v63 }
 0x474   :  { %6723 = vmatpush3.bf16.msra.mxu1 %v6720_v63 }
 0x475   :  { %6725 = vmatprep.subr.bf16.mxu1 %v6724_v59 }
 0x478   :  { %6727 = vmatpush3.bf16.msra.mxu1 %v6724_v59 }
 0x47b   :  { %5732 = vmatmul.mubr.f32.vlgmr.msra.gmra.mrb[10].mxu1 %v2477_v7 }
 0x47c   :  { %5734 = vmatprep.mubr.f32.mxu1 %v2478_v41 }
 0x47f   :  { %5735 = vmatmul.mubr.f32.gmra.mrb[12].mxu1 %v2479_v50 }
 0x480   :  { %5737 = vmatprep.mubr.f32.mxu1 %v2480_v9 }
 0x483   :  { %5738 = vmatmul.mubr.f32.gmra.mrb[14].mxu1 %v2481_v10 }
 0x484   :  { %5740 = vmatprep.mubr.f32.mxu1 %v2482_v8  ;;  %v2679_v8 = vld [vmem:[#allocation11 + $0x890] sm:$0xff] }
 0x487   :  { %5741 = vmatmul.mubr.f32.gmra.mrb[16].mxu1 %v2483_v11  ;;  %v2680_v11 = vld [vmem:[#allocation11 + $0x898] sm:$0xff] }
 0x488   :  { %5743 = vmatprep.mubr.f32.mxu1 %v2484_v14  ;;  %v6764_v22 = vpack.c.bf16 %v2680_v11, %v2679_v8  ;;  %v2962_v8 = vld [vmem:[#allocation11 + $0x808] sm:$0xff]  ;;  %v2963_v11 = vld [vmem:[#allocation11 + $0x810] sm:$0xff] }
 0x48b   :  { %5744 = vmatmul.mubr.f32.gmra.mrb[18].mxu1 %v2485_v15 }
 0x54e   :  { %v5733_v57 = vpop.f32.mrb[10].mxu1 }
 0x54f   :  { %v2637_v37 = vadd.f32 %v5733_v57, %v4295_v26  ;;  %v2569_v39 = vpop.f32.mrb[11].mxu1  ;;  %v6772_v57 = vpack.c.bf16 %v2684_v49, %v2683_v29  ;;  %v2975_v29 = vld [vmem:[#allocation11 + $0x870] sm:$0xff] }
 0x550   :  { %v2636_v47 = vadd.f32 %v4295_v26, %v2569_v39  ;;  %v2686_v39 = vld [vmem:[#allocation11 + $0x8c8] sm:$0xff] }
 0x551   :  { %7299 = vtanh.f32 %v2637_v37  ;;  %v2685_v37 = vld [vmem:[#allocation11 + $0x8c0] sm:$0xff] }
 0x552   :  { %7301 = vtanh.f32 %v2636_v47  ;;  %v5736_v28 = vpop.f32.mrb[12].mxu1 }
 0x553   :  { %v2639_v58 = vadd.f32 %v5736_v28, %v4295_v26  ;;  %v2579_v0 = vpop.f32.mrb[13].mxu1 }
 0x554   :  { %v2638_v52 = vadd.f32 %v4295_v26, %v2579_v0  ;;  %v2687_v0 = vld [vmem:[#allocation11 + $0x8d0] sm:$0xff] }
 0x555   :  { %7303 = vtanh.f32 %v2639_v58  ;;  %v6776_v58 = vpack.c.bf16 %v2686_v39, %v2685_v37  ;;  %v3117_v37 = vld [vmem:[#allocation11 + $0x920] sm:$0xff]  ;;  %v3118_v39 = vld [vmem:[#allocation11 + $0x928] sm:$0xff] }
 0x556   :  { %7305 = vtanh.f32 %v2638_v52  ;;  %v5739_v60 = vpop.f32.mrb[14].mxu1  ;;  %v2688_v52 = vld [vmem:[#allocation11 + $0x8d8] sm:$0xff] }
 0x557   :  { %v2641_v24 = vadd.f32 %v5739_v60, %v4295_v26  ;;  %v2589_v18 = vpop.f32.mrb[15].mxu1 }
 0x558   :  { %v2640_v2 = vadd.f32 %v4295_v26, %v2589_v18  ;;  %v6780_v18 = vpack.c.bf16 %v2688_v52, %v2687_v0  ;;  %v3119_v0 = vld [vmem:[#allocation11 + $0x930] sm:$0xff]  ;;  %v3120_v52 = vld [vmem:[#allocation11 + $0x938] sm:$0xff] }
 0x559   :  { %7307 = vtanh.f32 %v2641_v24 }
 0x55a   :  { %7309 = vtanh.f32 %v2640_v2  ;;  %v5742_v43 = vpop.f32.mrb[16].mxu1  ;;  %v2689_v2 = vld [vmem:[#allocation11 + $0x8e0] sm:$0xff] }
 0x55b   :  { %v7971_v48 = vpop.eup %7299  ;;  %v2643_v62 = vadd.f32 %v5742_v43, %v4295_v26  ;;  %v2599_v4 = vpop.f32.mrb[17].mxu1  ;;  %v2690_v43 = vld [vmem:[#allocation11 + $0x8e8] sm:$0xff] }
 0x55c   :  { %v7973_v34 = vpop.eup %7301  ;;  %v2657_v54 = vsel %vm7628_vm0, %v7971_v48, 0.0  ;;  %v2642_v13 = vadd.f32 %v4295_v26, %v2599_v4  ;;  %v3483_v4 = vld [vmem:[#allocation11 + $0xa08] sm:$0xff] }
 0x55d   :  { %2667 = vst [vmem:[#allocation2 + $0x10] sm:$0xff] %v2657_v54  ;;  %v2656_v63 = vsel %vm7636_vm1, %v7973_v34, 0.0  ;;  %7311 = vtanh.f32 %v2643_v62  ;;  %v3482_v62 = vld [vmem:[#allocation11 + $0xa00] sm:$0xff]  ;;  %v3484_v54 = vld [vmem:[#allocation11 + $0xa10] sm:$0xff] }
 0x55e   :  { %2666 = vst [vmem:[#allocation2 + $0x8] sm:$0xff] %v2656_v63  ;;  %7313 = vtanh.f32 %v2642_v13  ;;  %v5745_v5 = vpop.f32.mrb[18].mxu1  ;;  %v3485_v13 = vld [vmem:[#allocation11 + $0xa18] sm:$0xff]  ;;  %v6784_v63 = vpack.c.bf16 %v2690_v43, %v2689_v2  ;;  %v3121_v2 = vld [vmem:[#allocation11 + $0x940] sm:$0xff]  ;;  %v3122_v43 = vld [vmem:[#allocation11 + $0x948] sm:$0xff] }
 0x55f   :  { %v7981_v6 = vpop.eup %7303  ;;  %v2645_v59 = vadd.f32 %v5745_v5, %v4295_v26  ;;  %v2609_v7 = vpop.f32.mrb[19].mxu1  ;;  %v6888_v5 = vpack.c.bf16 %v3483_v4, %v3482_v62  ;;  %v6840_v4 = vpack.c.bf16 %v3122_v43, %v3121_v2 }
 0x560   :  { %v7983_v41 = vpop.eup %7305  ;;  %v2659_v50 = vsel %vm7654_vm2, %v7981_v6, 0.0  ;;  %v2644_v9 = vadd.f32 %v4295_v26, %v2609_v7  ;;  %v2691_v7 = vld [vmem:[#allocation11 + $0x8f0] sm:$0xff] }
 0x561   :  { %2669 = vst [vmem:[#allocation2 + $0x20] sm:$0xff] %v2659_v50  ;;  %v2658_v10 = vsel %vm7659_vm3, %v7983_v41, 0.0  ;;  %7315 = vtanh.f32 %v2645_v59  ;;  %v6892_v59 = vpack.c.bf16 %v3485_v13, %v3484_v54  ;;  %v2692_v50 = vld [vmem:[#allocation11 + $0x8f8] sm:$0xff]  ;;  %6889 = vmatprep.subr.bf16.mxu1 %v6888_v5  ;;  %v3123_v13 = vld [vmem:[#allocation11 + $0x950] sm:$0xff] }
 0x562   :  { %2668 = vst [vmem:[#allocation2 + $0x18] sm:$0xff] %v2658_v10  ;;  %7317 = vtanh.f32 %v2644_v9  ;;  %6891 = vmatpush3.bf16.msra.mxu1 %v6888_v5  ;;  %v6788_v9 = vpack.c.bf16 %v2692_v50, %v2691_v7  ;;  %v2961_v10 = vld [vmem:[#allocation11 + $0x800] sm:$0xff] }
 0x563   :  { %v7991_v14 = vpop.eup %7307  ;;  %6893 = vmatprep.subr.bf16.mxu1 %v6892_v59  ;;  %v3125_v50 = vld [vmem:[#allocation11 + $0x960] sm:$0xff] }
 0x564   :  { %v7993_v15 = vpop.eup %7309  ;;  %v2661_v16 = vsel %vm7681_vm8, %v7991_v14, 0.0 }
 0x565   :  { %2671 = vst [vmem:[#allocation2 + $0x30] sm:$0xff] %v2661_v16  ;;  %v2660_v17 = vsel %vm7691_vm11, %v7993_v15, 0.0  ;;  %v2693_v23 = vld [vmem:[#allocation2 + $0x6] sm:$0xff]  ;;  %v2694_v25 = vld [vmem:[#allocation2 + $0xe] sm:$0xff] }
 0x566   :  { %2670 = vst [vmem:[#allocation2 + $0x28] sm:$0xff] %v2660_v17  ;;  %5778 = vmatprep.mubr.f32.mxu0 %v2693_v23  ;;  %6895 = vmatpush3.bf16.msra.mxu1 %v6892_v59  ;;  %v2964_v16 = vld [vmem:[#allocation11 + $0x818] sm:$0xff]  ;;  %v2965_v23 = vld [vmem:[#allocation11 + $0x820] sm:$0xff] }
 0x567   :  { %v8001_v32 = vpop.eup %7311  ;;  %5779 = vmatmul.mubr.f32.vlgmr.msra.gmra.mrb[30].mxu0 %v2694_v25  ;;  %v6796_v17 = vpack.c.bf16 %v2964_v16, %v2963_v11  ;;  %v2966_v25 = vld [vmem:[#allocation11 + $0x828] sm:$0xff]  ;;  %v3128_v11 = vld [vmem:[#allocation11 + $0x978] sm:$0xff] }
 0x568   :  { %v8003_v12 = vpop.eup %7313  ;;  %v2663_v35 = vsel %vm7712_vm13, %v8001_v32, 0.0  ;;  %6763 = vmatpush3.bf16.msra.mxu0 %v7968_v20 }
 0x569   :  { %2673 = vst [vmem:[#allocation2 + $0x40] sm:$0xff] %v2663_v35  ;;  %v2662_v38 = vsel %vm7702_vm12, %v8003_v12, 0.0  ;;  %v2695_v40 = vld [vmem:[#allocation2 + $0x16] sm:$0xff]  ;;  %6765 = vmatprep.subr.bf16.mxu0 %v6764_v22  ;;  %v2696_v42 = vld [vmem:[#allocation2 + $0x1e] sm:$0xff] }
 0x56a   :  { %2672 = vst [vmem:[#allocation2 + $0x38] sm:$0xff] %v2662_v38  ;;  %5781 = vmatprep.mubr.f32.mxu0 %v2695_v40  ;;  %v2969_v35 = vld [vmem:[#allocation11 + $0x840] sm:$0xff]  ;;  %v2970_v38 = vld [vmem:[#allocation11 + $0x848] sm:$0xff]  ;;  %v2972_v40 = vld [vmem:[#allocation11 + $0x858] sm:$0xff] }
 0x56b   :  { %v8012_v51 = vpop.eup %7315  ;;  %5782 = vmatmul.mubr.f32.gmra.mrb[32].mxu0 %v2696_v42  ;;  %v2974_v42 = vld [vmem:[#allocation11 + $0x868] sm:$0xff] }
 0x56c   :  { %v8014_v33 = vpop.eup %7317  ;;  %v2665_v53 = vsel %vm7734_vm6, %v8012_v51, 0.0  ;;  %6767 = vmatpush3.bf16.msra.mxu0 %v6764_v22  ;;  %v6800_v22 = vpack.c.bf16 %v2966_v25, %v2965_v23  ;;  %v3266_v23 = vld [vmem:[#allocation11 + $0x988] sm:$0xff] }
 0x56d   :  { %2675 = vst [vmem:[#allocation2 + $0x50] sm:$0xff] %v2665_v53  ;;  %v2664_v56 = vsel %vm7748_vm7, %v8014_v33, 0.0  ;;  %v2697_v20 = vld [vmem:[#allocation2 + $0x26] sm:$0xff]  ;;  %6769 = vmatprep.subr.bf16.mxu0 %v6768_v46  ;;  %v2698_v26 = vld [vmem:[#allocation2 + $0x2e] sm:$0xff]  ;;  %v3114_v53 = vld [vmem:[#allocation11 + $0x908] sm:$0xff] }
 0x56e   :  { %2674 = vst [vmem:[#allocation2 + $0x48] sm:$0xff] %v2664_v56  ;;  %5784 = vmatprep.mubr.f32.mxu0 %v2697_v20  ;;  %v3115_v20 = vld [vmem:[#allocation11 + $0x910] sm:$0xff]  ;;  %v3258_v2 = vld [vmem:[#allocation2 + $0x2a] sm:$0xff] }
 0x56f   :  { %5785 = vmatmul.mubr.f32.gmra.mrb[34].mxu0 %v2698_v26  ;;  %v3116_v26 = vld [vmem:[#allocation11 + $0x918] sm:$0xff] }
 0x570   :  { %6771 = vmatpush3.bf16.msra.mxu0 %v6768_v46 }
 0x571   :  { %v2699_v47 = vld [vmem:[#allocation2 + $0x36] sm:$0xff]  ;;  %6773 = vmatprep.subr.bf16.mxu0 %v6772_v57  ;;  %v2700_v28 = vld [vmem:[#allocation2 + $0x3e] sm:$0xff] }
 0x572   :  { %5787 = vmatprep.mubr.f32.mxu0 %v2699_v47  ;;  %v2952_v47 = vld [vmem:[#allocation2 + $0x17] sm:$0xff]  ;;  %v2957_v54 = vld [vmem:[#allocation2 + $0x3f] sm:$0xff] }
 0x573   :  { %5788 = vmatmul.mubr.f32.gmra.mrb[36].mxu0 %v2700_v28  ;;  %v6832_v28 = vpack.c.bf16 %v3118_v39, %v3117_v37  ;;  %v2956_v62 = vld [vmem:[#allocation2 + $0x37] sm:$0xff] }
 0x574   :  { %6775 = vmatpush3.bf16.msra.mxu0 %v6772_v57  ;;  %v2951_v57 = vld [vmem:[#allocation2 + $0xf] sm:$0xff]  ;;  %v3278_v39 = vld [vmem:[#allocation11 + $0x9e8] sm:$0xff] }
 0x575   :  { %v2701_v60 = vld [vmem:[#allocation2 + $0x46] sm:$0xff]  ;;  %6777 = vmatprep.subr.bf16.mxu0 %v6776_v58  ;;  %v2702_v24 = vld [vmem:[#allocation2 + $0x4e] sm:$0xff] }
 0x576   :  { %5790 = vmatprep.mubr.f32.mxu0 %v2701_v60  ;;  %v2954_v60 = vld [vmem:[#allocation2 + $0x27] sm:$0xff]  ;;  %v2959_v7 = vld [vmem:[#allocation2 + $0x4f] sm:$0xff] }
 0x577   :  { %5791 = vmatmul.mubr.f32.gmra.mrb[38].mxu0 %v2702_v24  ;;  %v6836_v24 = vpack.c.bf16 %v3120_v52, %v3119_v0  ;;  %v2958_v5 = vld [vmem:[#allocation2 + $0x47] sm:$0xff]  ;;  %v3277_v37 = vld [vmem:[#allocation11 + $0x9e0] sm:$0xff] }
 0x578   :  { %6779 = vmatpush3.bf16.msra.mxu0 %v6776_v58  ;;  %5825 = vmatprep.mubr.msk.f32.mxu0 %vm7636_vm1, %v7973_v34  ;;  %v6792_v34 = vpack.c.bf16 %v2962_v8, %v2961_v10  ;;  %v2953_v58 = vld [vmem:[#allocation2 + $0x1f] sm:$0xff]  ;;  %v3102_v10 = vld [vmem:[#allocation2 + $0x9] sm:$0xff]  ;;  %v3259_v43 = vld [vmem:[#allocation2 + $0x32] sm:$0xff] }
 0x579   :  { %6781 = vmatprep.subr.bf16.mxu0 %v6780_v18  ;;  %v3280_v0 = vld [vmem:[#allocation11 + $0x9f8] sm:$0xff] }
 0x57c   :  { %6783 = vmatpush3.bf16.msra.mxu0 %v6780_v18  ;;  %v2955_v18 = vld [vmem:[#allocation2 + $0x2f] sm:$0xff] }
 0x57d   :  { %6785 = vmatprep.subr.bf16.mxu0 %v6784_v63 }
 0x580   :  { %6787 = vmatpush3.bf16.msra.mxu0 %v6784_v63  ;;  %v3124_v63 = vld [vmem:[#allocation11 + $0x958] sm:$0xff] }
 0x581   :  { %6789 = vmatprep.subr.bf16.mxu0 %v6788_v9  ;;  %v6844_v59 = vpack.c.bf16 %v3124_v63, %v3123_v13  ;;  %v3263_v13 = vld [vmem:[#allocation2 + $0x52] sm:$0xff] }
 0x582   :  { %v3486_v63 = vld [vmem:[#allocation11 + $0xa20] sm:$0xff] }
 0x584   :  { %6791 = vmatpush3.bf16.msra.mxu0 %v6788_v9  ;;  %v3126_v9 = vld [vmem:[#allocation11 + $0x968] sm:$0xff] }
 0x585   :  { %6793 = vmatprep.subr.bf16.mxu0 %v6792_v34  ;;  %v6848_v8 = vpack.c.bf16 %v3126_v9, %v3125_v50  ;;  %v3489_v50 = vld [vmem:[#allocation11 + $0xa38] sm:$0xff] }
 0x587   :  { %5826 = vmatmul.mubr.msk.f32.vlgmr.msra.gmra.mrb[30].mxu0 %vm7628_vm0, %v7971_v48  ;;  %v6804_v48 = vpack.c.bf16 %v2968_v30, %v2967_v27  ;;  %v3268_v27 = vld [vmem:[#allocation11 + $0x998] sm:$0xff] }
 0x588   :  { %5828 = vmatprep.mubr.msk.f32.mxu0 %vm7659_vm3, %v7983_v41  ;;  %6795 = vmatpush3.bf16.msra.mxu0 %v6792_v34  ;;  %v2971_v41 = vld [vmem:[#allocation11 + $0x850] sm:$0xff] }
 0x589   :  { %6797 = vmatprep.subr.bf16.mxu0 %v6796_v17  ;;  %v3127_v34 = vld [vmem:[#allocation11 + $0x970] sm:$0xff] }
 0x58a   :  { %v6852_v16 = vpack.c.bf16 %v3128_v11, %v3127_v34  ;;  %v3492_v11 = vld [vmem:[#allocation11 + $0xa50] sm:$0xff] }
 0x58b   :  { %5829 = vmatmul.mubr.msk.f32.gmra.mrb[32].mxu0 %vm7654_vm2, %v7981_v6  ;;  %v6808_v6 = vpack.c.bf16 %v2970_v38, %v2969_v35  ;;  %v3269_v35 = vld [vmem:[#allocation11 + $0x9a0] sm:$0xff]  ;;  %v3270_v38 = vld [vmem:[#allocation11 + $0x9a8] sm:$0xff] }
 0x58c   :  { %5831 = vmatprep.mubr.msk.f32.mxu0 %vm7691_vm11, %v7993_v15  ;;  %6799 = vmatpush3.bf16.msra.mxu0 %v6796_v17  ;;  %v2973_v15 = vld [vmem:[#allocation11 + $0x860] sm:$0xff] }
 0x58d   :  { %6801 = vmatprep.subr.bf16.mxu0 %v6800_v22  ;;  %v6816_v46 = vpack.c.bf16 %v2974_v42, %v2973_v15  ;;  %v3265_v17 = vld [vmem:[#allocation11 + $0x980] sm:$0xff]  ;;  %v3272_v15 = vld [vmem:[#allocation11 + $0x9b8] sm:$0xff] }
 0x58e   :  { %v6856_v25 = vpack.c.bf16 %v3266_v23, %v3265_v17  ;;  %v3106_v42 = vld [vmem:[#allocation2 + $0x29] sm:$0xff]  ;;  %v3494_v23 = vld [vmem:[#allocation11 + $0xa60] sm:$0xff] }
 0x58f   :  { %5832 = vmatmul.mubr.msk.f32.gmra.mrb[34].mxu0 %vm7681_vm8, %v7991_v14  ;;  %v6812_v14 = vpack.c.bf16 %v2972_v40, %v2971_v41  ;;  %v6864_v41 = vpack.c.bf16 %v3270_v38, %v3269_v35  ;;  %v3105_v40 = vld [vmem:[#allocation2 + $0x21] sm:$0xff]  ;;  %v3455_v35 = vld [vmem:[#allocation11 + $0xb00] sm:$0xff] }
 0x590   :  { %5834 = vmatprep.mubr.msk.f32.mxu0 %vm7702_vm12, %v8003_v12  ;;  %6803 = vmatpush3.bf16.msra.mxu0 %v6800_v22  ;;  %v2950_v12 = vld [vmem:[#allocation2 + $0x7] sm:$0xff]  ;;  %v3456_v38 = vld [vmem:[#allocation11 + $0xb08] sm:$0xff] }
 0x591   :  { %6805 = vmatprep.subr.bf16.mxu0 %v6804_v48  ;;  %v3267_v22 = vld [vmem:[#allocation11 + $0x990] sm:$0xff] }
 0x592   :  { %v6860_v30 = vpack.c.bf16 %v3268_v27, %v3267_v22  ;;  %v3496_v27 = vld [vmem:[#allocation11 + $0xa70] sm:$0xff] }
 0x593   :  { %5835 = vmatmul.mubr.msk.f32.gmra.mrb[36].mxu0 %vm7712_vm13, %v8001_v32  ;;  %v2976_v32 = vld [vmem:[#allocation11 + $0x878] sm:$0xff] }
 0x594   :  { %5837 = vmatprep.mubr.msk.f32.mxu0 %vm7748_vm7, %v8014_v33  ;;  %6807 = vmatpush3.bf16.msra.mxu0 %v6804_v48  ;;  %v6820_v49 = vpack.c.bf16 %v2976_v32, %v2975_v29  ;;  %v3113_v33 = vld [vmem:[#allocation11 + $0x900] sm:$0xff]  ;;  %v3274_v32 = vld [vmem:[#allocation11 + $0x9c8] sm:$0xff] }
 0x595   :  { %6809 = vmatprep.subr.bf16.mxu0 %v6808_v6  ;;  %v6824_v56 = vpack.c.bf16 %v3114_v53, %v3113_v33  ;;  %v3103_v48 = vld [vmem:[#allocation2 + $0x11] sm:$0xff]  ;;  %v3109_v53 = vld [vmem:[#allocation2 + $0x41] sm:$0xff] }
 0x596   :  { %v3273_v29 = vld [vmem:[#allocation11 + $0x9c0] sm:$0xff] }
 0x597   :  { %5838 = vmatmul.mubr.msk.f32.gmra.mrb[38].mxu0 %vm7734_vm6, %v8012_v51  ;;  %v6828_v51 = vpack.c.bf16 %v3116_v26, %v3115_v20  ;;  %v6872_v33 = vpack.c.bf16 %v3274_v32, %v3273_v29  ;;  %v3276_v20 = vld [vmem:[#allocation11 + $0x9d8] sm:$0xff] }
 0x598   :  { %6811 = vmatpush3.bf16.msra.mxu0 %v6808_v6  ;;  %5872 = vmatprep.mubr.f32.mxu0 %v2950_v12  ;;  %v3104_v6 = vld [vmem:[#allocation2 + $0x19] sm:$0xff]  ;;  %v3110_v26 = vld [vmem:[#allocation2 + $0x49] sm:$0xff] }
 0x599   :  { %6813 = vmatprep.subr.bf16.mxu0 %v6812_v14 }
 0x59c   :  { %6815 = vmatpush3.bf16.msra.mxu0 %v6812_v14  ;;  %v3271_v14 = vld [vmem:[#allocation11 + $0x9b0] sm:$0xff] }
 0x59d   :  { %6817 = vmatprep.subr.bf16.mxu0 %v6816_v46  ;;  %v6868_v12 = vpack.c.bf16 %v3272_v15, %v3271_v14 }
 0x5a0   :  { %6819 = vmatpush3.bf16.msra.mxu0 %v6816_v46  ;;  %v3107_v46 = vld [vmem:[#allocation2 + $0x31] sm:$0xff] }
 0x5a1   :  { %6821 = vmatprep.subr.bf16.mxu0 %v6820_v49 }
 0x5a4   :  { %6823 = vmatpush3.bf16.msra.mxu0 %v6820_v49  ;;  %v3108_v49 = vld [vmem:[#allocation2 + $0x39] sm:$0xff] }
 0x5a5   :  { %6825 = vmatprep.subr.bf16.mxu0 %v6824_v56 }
 0x5a7   :  { %5873 = vmatmul.mubr.f32.vlgmr.msra.gmra.mrb[30].mxu0 %v2951_v57  ;;  %v3111_v57 = vld [vmem:[#allocation2 + $0x51] sm:$0xff] }
 0x5a8   :  { %5875 = vmatprep.mubr.f32.mxu0 %v2952_v47  ;;  %6827 = vmatpush3.bf16.msra.mxu0 %v6824_v56  ;;  %v3275_v56 = vld [vmem:[#allocation11 + $0x9d0] sm:$0xff]  ;;  %v3254_v47 = vld [vmem:[#allocation2 + $0xa] sm:$0xff] }
 0x5a9   :  { %6829 = vmatprep.subr.bf16.mxu0 %v6828_v51 }
 0x5ab   :  { %5876 = vmatmul.mubr.f32.gmra.mrb[32].mxu0 %v2953_v58  ;;  %v3279_v58 = vld [vmem:[#allocation11 + $0x9f0] sm:$0xff] }
 0x5ac   :  { %5878 = vmatprep.mubr.f32.mxu0 %v2954_v60  ;;  %6831 = vmatpush3.bf16.msra.mxu0 %v6828_v51  ;;  %v6876_v51 = vpack.c.bf16 %v3276_v20, %v3275_v56  ;;  %v6884_v52 = vpack.c.bf16 %v3280_v0, %v3279_v58  ;;  %v3255_v60 = vld [vmem:[#allocation2 + $0x12] sm:$0xff] }
 0x5ad   :  { %6833 = vmatprep.subr.bf16.mxu0 %v6832_v28 }
 0x5af   :  { %5879 = vmatmul.mubr.f32.gmra.mrb[34].mxu0 %v2955_v18  ;;  %v3257_v18 = vld [vmem:[#allocation2 + $0x22] sm:$0xff] }
 0x5b0   :  { %5881 = vmatprep.mubr.f32.mxu0 %v2956_v62  ;;  %6835 = vmatpush3.bf16.msra.mxu0 %v6832_v28  ;;  %v6880_v28 = vpack.c.bf16 %v3278_v39, %v3277_v37  ;;  %v3260_v62 = vld [vmem:[#allocation2 + $0x3a] sm:$0xff] }
 0x5b1   :  { %6837 = vmatprep.subr.bf16.mxu0 %v6836_v24 }
 0x5b3   :  { %5882 = vmatmul.mubr.f32.gmra.mrb[36].mxu0 %v2957_v54  ;;  %v3262_v54 = vld [vmem:[#allocation2 + $0x4a] sm:$0xff] }
 0x5b4   :  { %5884 = vmatprep.mubr.f32.mxu0 %v2958_v5  ;;  %6839 = vmatpush3.bf16.msra.mxu0 %v6836_v24  ;;  %v3256_v24 = vld [vmem:[#allocation2 + $0x1a] sm:$0xff] }
 0x5b5   :  { %6841 = vmatprep.subr.bf16.mxu0 %v6840_v4  ;;  %v3487_v5 = vld [vmem:[#allocation11 + $0xa28] sm:$0xff] }
 0x5b7   :  { %5885 = vmatmul.mubr.f32.gmra.mrb[38].mxu0 %v2959_v7  ;;  %v3488_v7 = vld [vmem:[#allocation11 + $0xa30] sm:$0xff] }
 0x5b8   :  { %6843 = vmatpush3.bf16.msra.mxu0 %v6840_v4  ;;  %5919 = vmatprep.mubr.f32.mxu0 %v3102_v10  ;;  %v3261_v4 = vld [vmem:[#allocation2 + $0x42] sm:$0xff]  ;;  %v6900_v9 = vpack.c.bf16 %v3489_v50, %v3488_v7  ;;  %v3490_v10 = vld [vmem:[#allocation11 + $0xa40] sm:$0xff] }
 0x5b9   :  { %6845 = vmatprep.subr.bf16.mxu0 %v6844_v59 }
 0x5bc   :  { %6847 = vmatpush3.bf16.msra.mxu0 %v6844_v59  ;;  %v6896_v59 = vpack.c.bf16 %v3487_v5, %v3486_v63 }
 0x5bd   :  { %6849 = vmatprep.subr.bf16.mxu0 %v6848_v8 }
 0x5be   :  { %6897 = vmatprep.subr.bf16.mxu1 %v6896_v59 }
 0x5bf   :  { %6899 = vmatpush3.bf16.msra.mxu1 %v6896_v59 }
 0x5c0   :  { %6851 = vmatpush3.bf16.msra.mxu0 %v6848_v8  ;;  %6901 = vmatprep.subr.bf16.mxu1 %v6900_v9  ;;  %v3491_v8 = vld [vmem:[#allocation11 + $0xa48] sm:$0xff] }
 0x5c1   :  { %6853 = vmatprep.subr.bf16.mxu0 %v6852_v16  ;;  %v6904_v34 = vpack.c.bf16 %v3491_v8, %v3490_v10  ;;  %v3460_v10 = vld [vmem:[#allocation11 + $0xb28] sm:$0xff] }
 0x5c3   :  { %6903 = vmatpush3.bf16.msra.mxu1 %v6900_v9  ;;  %v3459_v9 = vld [vmem:[#allocation11 + $0xb20] sm:$0xff] }
 0x5c4   :  { %6855 = vmatpush3.bf16.msra.mxu0 %v6852_v16  ;;  %6905 = vmatprep.subr.bf16.mxu1 %v6904_v34  ;;  %v3493_v16 = vld [vmem:[#allocation11 + $0xa58] sm:$0xff] }
 0x5c5   :  { %6857 = vmatprep.subr.bf16.mxu0 %v6856_v25  ;;  %v6908_v17 = vpack.c.bf16 %v3493_v16, %v3492_v11 }
 0x5c7   :  { %5920 = vmatmul.mubr.f32.vlgmr.msra.gmra.mrb[30].mxu0 %v3103_v48  ;;  %6907 = vmatpush3.bf16.msra.mxu1 %v6904_v34 }
 0x5c8   :  { %5922 = vmatprep.mubr.f32.mxu0 %v3104_v6  ;;  %6859 = vmatpush3.bf16.msra.mxu0 %v6856_v25  ;;  %v3495_v25 = vld [vmem:[#allocation11 + $0xa68] sm:$0xff]  ;;  %v8052_v6 = vpack.c.bf16 %v3456_v38, %v3455_v35 }
 0x5c9   :  { %6861 = vmatprep.subr.bf16.mxu0 %v6860_v30  ;;  %6909 = vmatprep.subr.bf16.mxu1 %v6908_v17  ;;  %v6912_v22 = vpack.c.bf16 %v3495_v25, %v3494_v23  ;;  %v6928_v25 = vpack.c.bf16 %v3460_v10, %v3459_v9 }
 0x5cb   :  { %5923 = vmatmul.mubr.f32.gmra.mrb[32].mxu0 %v3105_v40  ;;  %6911 = vmatpush3.bf16.msra.mxu1 %v6908_v17 }
 0x5cc   :  { %5925 = vmatprep.mubr.f32.mxu0 %v3106_v42  ;;  %6863 = vmatpush3.bf16.msra.mxu0 %v6860_v30  ;;  %v3497_v30 = vld [vmem:[#allocation11 + $0xa78] sm:$0xff] }
 0x5cd   :  { %6865 = vmatprep.subr.bf16.mxu0 %v6864_v41  ;;  %6913 = vmatprep.subr.bf16.mxu1 %v6912_v22  ;;  %v6916_v48 = vpack.c.bf16 %v3497_v30, %v3496_v27  ;;  %v3462_v27 = vld [vmem:[#allocation11 + $0xb38] sm:$0xff] }
 0x5cf   :  { %5926 = vmatmul.mubr.f32.gmra.mrb[34].mxu0 %v3107_v46  ;;  %6915 = vmatpush3.bf16.msra.mxu1 %v6912_v22  ;;  %v3461_v22 = vld [vmem:[#allocation11 + $0xb30] sm:$0xff] }
 0x5d0   :  { %5928 = vmatprep.mubr.f32.mxu0 %v3108_v49  ;;  %6867 = vmatpush3.bf16.msra.mxu0 %v6864_v41  ;;  %v4306_v41 = vld [vmem:[#allocation13 + $0x3] ss:$0 sm:$0xff] }
 0x5d1   :  { %6869 = vmatprep.subr.bf16.mxu0 %v6868_v12  ;;  %6917 = vmatprep.subr.bf16.mxu1 %v6916_v48 }
 0x5d3   :  { %5929 = vmatmul.mubr.f32.gmra.mrb[36].mxu0 %v3109_v53  ;;  %6919 = vmatpush3.bf16.msra.mxu1 %v6916_v48 }
 0x5d4   :  { %5931 = vmatprep.mubr.f32.mxu0 %v3110_v26  ;;  %6871 = vmatpush3.bf16.msra.mxu0 %v6868_v12 }
 0x5d5   :  { %6873 = vmatprep.subr.bf16.mxu0 %v6872_v33  ;;  %6921 = vmatprep.subr.bf16.mxu1 %v8052_v6 }
 0x5d7   :  { %5932 = vmatmul.mubr.f32.gmra.mrb[38].mxu0 %v3111_v57 }
 0x5d8   :  { %6875 = vmatpush3.bf16.msra.mxu0 %v6872_v33  ;;  %5966 = vmatprep.mubr.f32.mxu0 %v3254_v47 }
 0x5d9   :  { %6877 = vmatprep.subr.bf16.mxu0 %v6876_v51 }
 0x5dc   :  { %6879 = vmatpush3.bf16.msra.mxu0 %v6876_v51 }
 0x5dd   :  { %6881 = vmatprep.subr.bf16.mxu0 %v6880_v28 }
 0x5e0   :  { %6883 = vmatpush3.bf16.msra.mxu0 %v6880_v28 }
 0x5e1   :  { %6885 = vmatprep.subr.bf16.mxu0 %v6884_v52 }
 0x5e4   :  { %6887 = vmatpush3.bf16.msra.mxu0 %v6884_v52 }
 0x5e7   :  { %5967 = vmatmul.mubr.f32.vlgmr.msra.gmra.mrb[30].mxu0 %v3255_v60 }
 0x5e8   :  { %5969 = vmatprep.mubr.f32.mxu0 %v3256_v24 }
 0x5eb   :  { %5970 = vmatmul.mubr.f32.gmra.mrb[32].mxu0 %v3257_v18 }
 0x5ec   :  { %5972 = vmatprep.mubr.f32.mxu0 %v3258_v2 }
 0x5ef   :  { %5973 = vmatmul.mubr.f32.gmra.mrb[34].mxu0 %v3259_v43 }
 0x5f0   :  { %5975 = vmatprep.mubr.f32.mxu0 %v3260_v62  ;;  %v3457_v62 = vld [vmem:[#allocation11 + $0xb10] sm:$0xff] }
 0x5f3   :  { %5976 = vmatmul.mubr.f32.gmra.mrb[36].mxu0 %v3261_v4  ;;  %v3458_v4 = vld [vmem:[#allocation11 + $0xb18] sm:$0xff] }
 0x5f4   :  { %5978 = vmatprep.mubr.f32.mxu0 %v3262_v54  ;;  %v6924_v50 = vpack.c.bf16 %v3458_v4, %v3457_v62  ;;  %v3744_v62 = vld [vmem:[#allocation11 + $0xaa8] sm:$0xff]  ;;  %v3745_v4 = vld [vmem:[#allocation11 + $0xab0] sm:$0xff] }
 0x5f7   :  { %5979 = vmatmul.mubr.f32.gmra.mrb[38].mxu0 %v3263_v13 }
 0x6ba   :  { %v5968_v40 = vpop.f32.mrb[30].mxu0 }
 0x6bb   :  { %v3415_v14 = vadd.f32 %v5968_v40, %v4306_v41  ;;  %v3347_v15 = vpop.f32.mrb[31].mxu0  ;;  %v6932_v40 = vpack.c.bf16 %v3462_v27, %v3461_v22  ;;  %v3894_v22 = vld [vmem:[#allocation11 + $0xb98] sm:$0xff] }
 0x6bc   :  { %v3414_v42 = vadd.f32 %v4306_v41, %v3347_v15  ;;  %v3464_v15 = vld [vmem:[#allocation11 + $0xb48] sm:$0xff] }
 0x6bd   :  { %7319 = vtanh.f32 %v3415_v14  ;;  %v3463_v14 = vld [vmem:[#allocation11 + $0xb40] sm:$0xff] }
 0x6be   :  { %7321 = vtanh.f32 %v3414_v42  ;;  %v5971_v12 = vpop.f32.mrb[32].mxu0 }
 0x6bf   :  { %v3417_v46 = vadd.f32 %v5971_v12, %v4306_v41  ;;  %v3357_v29 = vpop.f32.mrb[33].mxu0 }
 0x6c0   :  { %v3416_v32 = vadd.f32 %v4306_v41, %v3357_v29  ;;  %v3465_v29 = vld [vmem:[#allocation11 + $0xb50] sm:$0xff] }
 0x6c1   :  { %7323 = vtanh.f32 %v3417_v46  ;;  %v6936_v46 = vpack.c.bf16 %v3464_v15, %v3463_v14  ;;  %v3898_v14 = vld [vmem:[#allocation11 + $0xbb8] sm:$0xff] }
 0x6c2   :  { %7325 = vtanh.f32 %v3416_v32  ;;  %v5974_v49 = vpop.f32.mrb[34].mxu0  ;;  %v3466_v32 = vld [vmem:[#allocation11 + $0xb58] sm:$0xff] }
 0x6c3   :  { %v3419_v33 = vadd.f32 %v5974_v49, %v4306_v41  ;;  %v3367_v53 = vpop.f32.mrb[35].mxu0 }
 0x6c4   :  { %v3418_v56 = vadd.f32 %v4306_v41, %v3367_v53  ;;  %v6940_v53 = vpack.c.bf16 %v3466_v32, %v3465_v29  ;;  %v3900_v29 = vld [vmem:[#allocation11 + $0xbc8] sm:$0xff] }
 0x6c5   :  { %7327 = vtanh.f32 %v3419_v33 }
 0x6c6   :  { %7329 = vtanh.f32 %v3418_v56  ;;  %v5977_v20 = vpop.f32.mrb[36].mxu0  ;;  %v3467_v56 = vld [vmem:[#allocation11 + $0xb60] sm:$0xff] }
 0x6c7   :  { %v8055_v26 = vpop.eup %7319  ;;  %v3421_v51 = vadd.f32 %v5977_v20, %v4306_v41  ;;  %v3377_v57 = vpop.f32.mrb[37].mxu0  ;;  %v3468_v20 = vld [vmem:[#allocation11 + $0xb68] sm:$0xff] }
 0x6c8   :  { %v8057_v37 = vpop.eup %7321  ;;  %v3435_v39 = vsel %vm7628_vm0, %v8055_v26, 0.0  ;;  %v3420_v47 = vadd.f32 %v4306_v41, %v3377_v57  ;;  %v3469_v57 = vld [vmem:[#allocation11 + $0xb70] sm:$0xff] }
 0x6c9   :  { %3445 = vst [vmem:[#allocation2 + $0x10] sm:$0xff] %v3435_v39  ;;  %v3434_v28 = vsel %vm7636_vm1, %v8057_v37, 0.0  ;;  %7331 = vtanh.f32 %v3421_v51  ;;  %v6944_v51 = vpack.c.bf16 %v3468_v20, %v3467_v56  ;;  %v3470_v39 = vld [vmem:[#allocation11 + $0xb78] sm:$0xff] }
 0x6ca   :  { %3444 = vst [vmem:[#allocation2 + $0x8] sm:$0xff] %v3434_v28  ;;  %7333 = vtanh.f32 %v3420_v47  ;;  %v5980_v58 = vpop.f32.mrb[38].mxu0  ;;  %v6948_v47 = vpack.c.bf16 %v3470_v39, %v3469_v57  ;;  %v3739_v28 = vld [vmem:[#allocation11 + $0xa80] sm:$0xff]  ;;  %v3902_v56 = vld [vmem:[#allocation11 + $0xbd8] sm:$0xff] }
 0x6cb   :  { %v8065_v0 = vpop.eup %7323  ;;  %v3423_v52 = vadd.f32 %v5980_v58, %v4306_v41  ;;  %v3387_v60 = vpop.f32.mrb[39].mxu0  ;;  %v3740_v58 = vld [vmem:[#allocation11 + $0xa88] sm:$0xff]  ;;  %v3903_v39 = vld [vmem:[#allocation11 + $0xbe0] sm:$0xff] }
 0x6cc   :  { %v8067_v24 = vpop.eup %7325  ;;  %v3437_v18 = vsel %vm7654_vm2, %v8065_v0, 0.0  ;;  %v3422_v2 = vadd.f32 %v4306_v41, %v3387_v60  ;;  %v3741_v60 = vld [vmem:[#allocation11 + $0xa90] sm:$0xff] }
 0x6cd   :  { %3447 = vst [vmem:[#allocation2 + $0x20] sm:$0xff] %v3437_v18  ;;  %v3436_v43 = vsel %vm7659_vm3, %v8067_v24, 0.0  ;;  %7335 = vtanh.f32 %v3423_v52  ;;  %v6952_v52 = vpack.c.bf16 %v3740_v58, %v3739_v28  ;;  %v3742_v18 = vld [vmem:[#allocation11 + $0xa98] sm:$0xff] }
 0x6ce   :  { %3446 = vst [vmem:[#allocation2 + $0x18] sm:$0xff] %v3436_v43  ;;  %7337 = vtanh.f32 %v3422_v2  ;;  %v6956_v2 = vpack.c.bf16 %v3742_v18, %v3741_v60  ;;  %v3743_v43 = vld [vmem:[#allocation11 + $0xaa0] sm:$0xff]  ;;  %v3906_v60 = vld [vmem:[#allocation11 + $0xbf8] sm:$0xff] }
 0x6cf   :  { %v8075_v54 = vpop.eup %7327 }
 0x6d0   :  { %v8077_v13 = vpop.eup %7329  ;;  %v3439_v63 = vsel %vm7681_vm8, %v8075_v54, 0.0 }
 0x6d1   :  { %3449 = vst [vmem:[#allocation2 + $0x30] sm:$0xff] %v3439_v63  ;;  %v3438_v5 = vsel %vm7691_vm11, %v8077_v13, 0.0  ;;  %v3471_v59 = vld [vmem:[#allocation2 + $0x6] sm:$0xff]  ;;  %v3472_v7 = vld [vmem:[#allocation2 + $0xe] sm:$0xff] }
 0x6d2   :  { %3448 = vst [vmem:[#allocation2 + $0x28] sm:$0xff] %v3438_v5  ;;  %6013 = vmatprep.mubr.f32.mxu1 %v3471_v59  ;;  %v3746_v63 = vld [vmem:[#allocation11 + $0xab8] sm:$0xff]  ;;  %v3747_v5 = vld [vmem:[#allocation11 + $0xac0] sm:$0xff]  ;;  %v3748_v59 = vld [vmem:[#allocation11 + $0xac8] sm:$0xff] }
 0x6d3   :  { %v8085_v8 = vpop.eup %7331  ;;  %6014 = vmatmul.mubr.f32.vlgmr.msra.gmra.mrb[20].mxu1 %v3472_v7  ;;  %v3750_v7 = vld [vmem:[#allocation11 + $0xad8] sm:$0xff] }
 0x6d4   :  { %v8087_v34 = vpop.eup %7333  ;;  %v3441_v11 = vsel %vm7712_vm13, %v8085_v8, 0.0  ;;  %6923 = vmatpush3.bf16.msra.mxu1 %v8052_v6  ;;  %v3728_v9 = vld [vmem:[#allocation2 + $0x7] sm:$0xff] }
 0x6d5   :  { %3451 = vst [vmem:[#allocation2 + $0x40] sm:$0xff] %v3441_v11  ;;  %v3440_v16 = vsel %vm7702_vm12, %v8087_v34, 0.0  ;;  %v3473_v17 = vld [vmem:[#allocation2 + $0x16] sm:$0xff]  ;;  %6925 = vmatprep.subr.bf16.mxu1 %v6924_v50  ;;  %v3474_v23 = vld [vmem:[#allocation2 + $0x1e] sm:$0xff]  ;;  %v3880_v28 = vld [vmem:[#allocation2 + $0x9] sm:$0xff] }
 0x6d6   :  { %3450 = vst [vmem:[#allocation2 + $0x38] sm:$0xff] %v3440_v16  ;;  %6016 = vmatprep.mubr.f32.mxu1 %v3473_v17  ;;  %v3891_v16 = vld [vmem:[#allocation11 + $0xb80] sm:$0xff]  ;;  %v3892_v17 = vld [vmem:[#allocation11 + $0xb88] sm:$0xff] }
 0x6d7   :  { %v8096_v30 = vpop.eup %7335  ;;  %6017 = vmatmul.mubr.f32.gmra.mrb[22].mxu1 %v3474_v23  ;;  %v6984_v23 = vpack.c.bf16 %v3892_v17, %v3891_v16 }
 0x6d8   :  { %v8098_v48 = vpop.eup %7337  ;;  %v3443_v35 = vsel %vm7734_vm6, %v8096_v30, 0.0  ;;  %6927 = vmatpush3.bf16.msra.mxu1 %v6924_v50  ;;  %v3752_v50 = vld [vmem:[#allocation11 + $0xae8] sm:$0xff] }
 0x6d9   :  { %3453 = vst [vmem:[#allocation2 + $0x50] sm:$0xff] %v3443_v35  ;;  %v3442_v38 = vsel %vm7748_vm7, %v8098_v48, 0.0  ;;  %v3475_v6 = vld [vmem:[#allocation2 + $0x26] sm:$0xff]  ;;  %6929 = vmatprep.subr.bf16.mxu1 %v6928_v25  ;;  %v3476_v41 = vld [vmem:[#allocation2 + $0x2e] sm:$0xff]  ;;  %v3896_v35 = vld [vmem:[#allocation11 + $0xba8] sm:$0xff] }
 0x6da   :  { %3452 = vst [vmem:[#allocation2 + $0x48] sm:$0xff] %v3442_v38  ;;  %6019 = vmatprep.mubr.f32.mxu1 %v3475_v6  ;;  %v3730_v38 = vld [vmem:[#allocation2 + $0x17] sm:$0xff]  ;;  %v3732_v15 = vld [vmem:[#allocation2 + $0x27] sm:$0xff] }
 0x6db   :  { %6020 = vmatmul.mubr.f32.gmra.mrb[24].mxu1 %v3476_v41  ;;  %v3731_v41 = vld [vmem:[#allocation2 + $0x1f] sm:$0xff] }
 0x6dc   :  { %6931 = vmatpush3.bf16.msra.mxu1 %v6928_v25  ;;  %v3893_v25 = vld [vmem:[#allocation11 + $0xb90] sm:$0xff] }
 0x6dd   :  { %v3477_v42 = vld [vmem:[#allocation2 + $0x36] sm:$0xff]  ;;  %6933 = vmatprep.subr.bf16.mxu1 %v6932_v40  ;;  %v3478_v12 = vld [vmem:[#allocation2 + $0x3e] sm:$0xff]  ;;  %v6988_v27 = vpack.c.bf16 %v3894_v22, %v3893_v25  ;;  %v4054_v25 = vld [vmem:[#allocation11 + $0xc58] sm:$0xff] }
 0x6de   :  { %6022 = vmatprep.mubr.f32.mxu1 %v3477_v42  ;;  %v3734_v32 = vld [vmem:[#allocation2 + $0x37] sm:$0xff] }
 0x6df   :  { %6023 = vmatmul.mubr.f32.gmra.mrb[26].mxu1 %v3478_v12  ;;  %v3733_v12 = vld [vmem:[#allocation2 + $0x2f] sm:$0xff] }
 0x6e0   :  { %6935 = vmatpush3.bf16.msra.mxu1 %v6932_v40  ;;  %v3897_v40 = vld [vmem:[#allocation11 + $0xbb0] sm:$0xff] }
 0x6e1   :  { %v3479_v49 = vld [vmem:[#allocation2 + $0x46] sm:$0xff]  ;;  %6937 = vmatprep.subr.bf16.mxu1 %v6936_v46  ;;  %v3480_v33 = vld [vmem:[#allocation2 + $0x4e] sm:$0xff]  ;;  %v6996_v42 = vpack.c.bf16 %v3898_v14, %v3897_v40 }
 0x6e2   :  { %6025 = vmatprep.mubr.f32.mxu1 %v3479_v49  ;;  %v3736_v20 = vld [vmem:[#allocation2 + $0x47] sm:$0xff]  ;;  %v3737_v57 = vld [vmem:[#allocation2 + $0x4f] sm:$0xff] }
 0x6e3   :  { %6026 = vmatmul.mubr.f32.gmra.mrb[28].mxu1 %v3480_v33  ;;  %v3735_v33 = vld [vmem:[#allocation2 + $0x3f] sm:$0xff]  ;;  %v3888_v22 = vld [vmem:[#allocation2 + $0x49] sm:$0xff] }
 0x6e4   :  { %6939 = vmatpush3.bf16.msra.mxu1 %v6936_v46  ;;  %6060 = vmatprep.mubr.msk.f32.mxu1 %vm7636_vm1, %v8057_v37  ;;  %v6960_v37 = vpack.c.bf16 %v3744_v62, %v3743_v43  ;;  %v3899_v46 = vld [vmem:[#allocation11 + $0xbc0] sm:$0xff]  ;;  %v4044_v43 = vld [vmem:[#allocation11 + $0xc08] sm:$0xff]  ;;  %v4058_v40 = vld [vmem:[#allocation11 + $0xc78] sm:$0xff] }
 0x6e5   :  { %6941 = vmatprep.subr.bf16.mxu1 %v6940_v53  ;;  %v7000_v49 = vpack.c.bf16 %v3900_v29, %v3899_v46  ;;  %v3887_v17 = vld [vmem:[#allocation2 + $0x41] sm:$0xff]  ;;  %v4036_v46 = vld [vmem:[#allocation2 + $0x2a] sm:$0xff]  ;;  %v4037_v29 = vld [vmem:[#allocation2 + $0x32] sm:$0xff] }
 0x6e8   :  { %6943 = vmatpush3.bf16.msra.mxu1 %v6940_v53  ;;  %v3901_v53 = vld [vmem:[#allocation11 + $0xbd0] sm:$0xff] }
 0x6e9   :  { %6945 = vmatprep.subr.bf16.mxu1 %v6944_v51 }
 0x6ec   :  { %6947 = vmatpush3.bf16.msra.mxu1 %v6944_v51  ;;  %v7004_v51 = vpack.c.bf16 %v3902_v56, %v3901_v53  ;;  %v4041_v53 = vld [vmem:[#allocation2 + $0x52] sm:$0xff] }
 0x6ed   :  { %6949 = vmatprep.subr.bf16.mxu1 %v6948_v47  ;;  %v4317_v56 = vld [vmem:[#allocation13 + $0x4] ss:$0 sm:$0xff] }
 0x6f0   :  { %6951 = vmatpush3.bf16.msra.mxu1 %v6948_v47  ;;  %v3904_v47 = vld [vmem:[#allocation11 + $0xbe8] sm:$0xff] }
 0x6f1   :  { %6953 = vmatprep.subr.bf16.mxu1 %v6952_v52  ;;  %v7008_v58 = vpack.c.bf16 %v3904_v47, %v3903_v39 }
 0x6f3   :  { %6061 = vmatmul.mubr.msk.f32.vlgmr.msra.gmra.mrb[20].mxu1 %vm7628_vm0, %v8055_v26  ;;  %v6964_v26 = vpack.c.bf16 %v3746_v63, %v3745_v4  ;;  %v4046_v4 = vld [vmem:[#allocation11 + $0xc18] sm:$0xff] }
 0x6f4   :  { %6063 = vmatprep.mubr.msk.f32.mxu1 %vm7659_vm3, %v8067_v24  ;;  %6955 = vmatpush3.bf16.msra.mxu1 %v6952_v52  ;;  %v3749_v24 = vld [vmem:[#allocation11 + $0xad0] sm:$0xff] }
 0x6f5   :  { %6957 = vmatprep.subr.bf16.mxu1 %v6956_v2  ;;  %v3905_v52 = vld [vmem:[#allocation11 + $0xbf0] sm:$0xff] }
 0x6f6   :  { %v7012_v18 = vpack.c.bf16 %v3906_v60, %v3905_v52 }
 0x6f7   :  { %6064 = vmatmul.mubr.msk.f32.gmra.mrb[22].mxu1 %vm7654_vm2, %v8065_v0  ;;  %v6968_v0 = vpack.c.bf16 %v3748_v59, %v3747_v5  ;;  %v4047_v5 = vld [vmem:[#allocation11 + $0xc20] sm:$0xff]  ;;  %v4048_v59 = vld [vmem:[#allocation11 + $0xc28] sm:$0xff] }
 0x6f8   :  { %6066 = vmatprep.mubr.msk.f32.mxu1 %vm7691_vm11, %v8077_v13  ;;  %6959 = vmatpush3.bf16.msra.mxu1 %v6956_v2  ;;  %v3751_v13 = vld [vmem:[#allocation11 + $0xae0] sm:$0xff] }
 0x6f9   :  { %6961 = vmatprep.subr.bf16.mxu1 %v6960_v37  ;;  %v6976_v10 = vpack.c.bf16 %v3752_v50, %v3751_v13  ;;  %v4043_v2 = vld [vmem:[#allocation11 + $0xc00] sm:$0xff]  ;;  %v4050_v13 = vld [vmem:[#allocation11 + $0xc38] sm:$0xff] }
 0x6fa   :  { %v7016_v62 = vpack.c.bf16 %v4044_v43, %v4043_v2  ;;  %v3884_v50 = vld [vmem:[#allocation2 + $0x29] sm:$0xff] }
 0x6fb   :  { %6067 = vmatmul.mubr.msk.f32.gmra.mrb[24].mxu1 %vm7681_vm8, %v8075_v54  ;;  %v6972_v54 = vpack.c.bf16 %v3750_v7, %v3749_v24  ;;  %v7024_v24 = vpack.c.bf16 %v4048_v59, %v4047_v5  ;;  %v3883_v7 = vld [vmem:[#allocation2 + $0x21] sm:$0xff] }
 0x6fc   :  { %6069 = vmatprep.mubr.msk.f32.mxu1 %vm7702_vm12, %v8087_v34  ;;  %6963 = vmatpush3.bf16.msra.mxu1 %v6960_v37  ;;  %v3753_v34 = vld [vmem:[#allocation11 + $0xaf0] sm:$0xff] }
 0x6fd   :  { %6965 = vmatprep.subr.bf16.mxu1 %v6964_v26  ;;  %v4045_v37 = vld [vmem:[#allocation11 + $0xc10] sm:$0xff] }
 0x6fe   :  { %v7020_v63 = vpack.c.bf16 %v4046_v4, %v4045_v37  ;;  %v7342_v59 = vld [vmem:[#allocation14 + $0x10] sm:$0xff] }
 0x6ff   :  { %6070 = vmatmul.mubr.msk.f32.gmra.mrb[26].mxu1 %vm7712_vm13, %v8085_v8  ;;  %v3754_v8 = vld [vmem:[#allocation11 + $0xaf8] sm:$0xff] }
 0x700   :  { %6072 = vmatprep.mubr.msk.f32.mxu1 %vm7748_vm7, %v8098_v48  ;;  %6967 = vmatpush3.bf16.msra.mxu1 %v6964_v26  ;;  %v6980_v11 = vpack.c.bf16 %v3754_v8, %v3753_v34  ;;  %v3895_v48 = vld [vmem:[#allocation11 + $0xba0] sm:$0xff]  ;;  %v4052_v8 = vld [vmem:[#allocation11 + $0xc48] sm:$0xff] }
 0x701   :  { %6969 = vmatprep.subr.bf16.mxu1 %v6968_v0  ;;  %v6992_v6 = vpack.c.bf16 %v3896_v35, %v3895_v48  ;;  %v3881_v26 = vld [vmem:[#allocation2 + $0x11] sm:$0xff]  ;;  %v4056_v35 = vld [vmem:[#allocation11 + $0xc68] sm:$0xff] }
 0x702   :  { %v4051_v34 = vld [vmem:[#allocation11 + $0xc40] sm:$0xff] }
 0x703   :  { %6073 = vmatmul.mubr.msk.f32.gmra.mrb[28].mxu1 %vm7734_vm6, %v8096_v30  ;;  %v3729_v30 = vld [vmem:[#allocation2 + $0xf] sm:$0xff]  ;;  %v7032_v16 = vpack.c.bf16 %v4052_v8, %v4051_v34 }
 0x704   :  { %6971 = vmatpush3.bf16.msra.mxu1 %v6968_v0  ;;  %6107 = vmatprep.mubr.f32.mxu1 %v3728_v9  ;;  %v3882_v0 = vld [vmem:[#allocation2 + $0x19] sm:$0xff] }
 0x705   :  { %6973 = vmatprep.subr.bf16.mxu1 %v6972_v54  ;;  %v4055_v48 = vld [vmem:[#allocation11 + $0xc60] sm:$0xff] }
 0x708   :  { %6975 = vmatpush3.bf16.msra.mxu1 %v6972_v54  ;;  %v4049_v54 = vld [vmem:[#allocation11 + $0xc30] sm:$0xff] }
 0x709   :  { %6977 = vmatprep.subr.bf16.mxu1 %v6976_v10  ;;  %v7028_v9 = vpack.c.bf16 %v4050_v13, %v4049_v54  ;;  %v7343_v13 = vld [vmem:[#allocation14 + $0x28] sm:$0xff] }
 0x70c   :  { %6979 = vmatpush3.bf16.msra.mxu1 %v6976_v10  ;;  %v3885_v10 = vld [vmem:[#allocation2 + $0x31] sm:$0xff] }
 0x70d   :  { %6981 = vmatprep.subr.bf16.mxu1 %v6980_v11 }
 0x710   :  { %6983 = vmatpush3.bf16.msra.mxu1 %v6980_v11  ;;  %v3886_v11 = vld [vmem:[#allocation2 + $0x39] sm:$0xff] }
 0x711   :  { %6985 = vmatprep.subr.bf16.mxu1 %v6984_v23 }
 0x713   :  { %6108 = vmatmul.mubr.f32.vlgmr.msra.gmra.mrb[20].mxu1 %v3729_v30  ;;  %v3889_v30 = vld [vmem:[#allocation2 + $0x51] sm:$0xff] }
 0x714   :  { %6110 = vmatprep.mubr.f32.mxu1 %v3730_v38  ;;  %6987 = vmatpush3.bf16.msra.mxu1 %v6984_v23  ;;  %v4053_v23 = vld [vmem:[#allocation11 + $0xc50] sm:$0xff]  ;;  %v4032_v38 = vld [vmem:[#allocation2 + $0xa] sm:$0xff] }
 0x715   :  { %6989 = vmatprep.subr.bf16.mxu1 %v6988_v27 }
 0x717   :  { %6111 = vmatmul.mubr.f32.gmra.mrb[22].mxu1 %v3731_v41  ;;  %v4057_v41 = vld [vmem:[#allocation11 + $0xc70] sm:$0xff] }
 0x718   :  { %6113 = vmatprep.mubr.f32.mxu1 %v3732_v15  ;;  %6991 = vmatpush3.bf16.msra.mxu1 %v6988_v27  ;;  %v7036_v27 = vpack.c.bf16 %v4054_v25, %v4053_v23  ;;  %v7044_v14 = vpack.c.bf16 %v4058_v40, %v4057_v41  ;;  %v4033_v15 = vld [vmem:[#allocation2 + $0x12] sm:$0xff] }
 0x719   :  { %6993 = vmatprep.subr.bf16.mxu1 %v6992_v6 }
 0x71b   :  { %6114 = vmatmul.mubr.f32.gmra.mrb[24].mxu1 %v3733_v12  ;;  %v4035_v12 = vld [vmem:[#allocation2 + $0x22] sm:$0xff] }
 0x71c   :  { %6116 = vmatprep.mubr.f32.mxu1 %v3734_v32  ;;  %6995 = vmatpush3.bf16.msra.mxu1 %v6992_v6  ;;  %v7040_v6 = vpack.c.bf16 %v4056_v35, %v4055_v48  ;;  %v4038_v32 = vld [vmem:[#allocation2 + $0x3a] sm:$0xff] }
 0x71d   :  { %6997 = vmatprep.subr.bf16.mxu1 %v6996_v42 }
 0x71f   :  { %6117 = vmatmul.mubr.f32.gmra.mrb[26].mxu1 %v3735_v33  ;;  %v4040_v33 = vld [vmem:[#allocation2 + $0x4a] sm:$0xff] }
 0x720   :  { %6119 = vmatprep.mubr.f32.mxu1 %v3736_v20  ;;  %6999 = vmatpush3.bf16.msra.mxu1 %v6996_v42  ;;  %v4034_v42 = vld [vmem:[#allocation2 + $0x1a] sm:$0xff] }
 0x721   :  { %7001 = vmatprep.subr.bf16.mxu1 %v7000_v49 }
 0x723   :  { %6120 = vmatmul.mubr.f32.gmra.mrb[28].mxu1 %v3737_v57 }
 0x724   :  { %7003 = vmatpush3.bf16.msra.mxu1 %v7000_v49  ;;  %6154 = vmatprep.mubr.f32.mxu1 %v3880_v28  ;;  %v4039_v49 = vld [vmem:[#allocation2 + $0x42] sm:$0xff] }
 0x725   :  { %7005 = vmatprep.subr.bf16.mxu1 %v7004_v51  ;;  %v7339_v28 = vld [vmem:[#allocation14 + $0x8] sm:$0xff] }
 0x728   :  { %7007 = vmatpush3.bf16.msra.mxu1 %v7004_v51 }
 0x729   :  { %7009 = vmatprep.subr.bf16.mxu1 %v7008_v58 }
 0x72c   :  { %7011 = vmatpush3.bf16.msra.mxu1 %v7008_v58 }
 0x72d   :  { %7013 = vmatprep.subr.bf16.mxu1 %v7012_v18 }
 0x730   :  { %7015 = vmatpush3.bf16.msra.mxu1 %v7012_v18  ;;  %v7340_v18 = vld [vmem:[#allocation14] sm:$0xff] }
 0x731   :  { %7017 = vmatprep.subr.bf16.mxu1 %v7016_v62 }
 0x733   :  { %6155 = vmatmul.mubr.f32.vlgmr.msra.gmra.mrb[20].mxu1 %v3881_v26 }
 0x734   :  { %6157 = vmatprep.mubr.f32.mxu1 %v3882_v0  ;;  %7019 = vmatpush3.bf16.msra.mxu1 %v7016_v62 }
 0x735   :  { %7021 = vmatprep.subr.bf16.mxu1 %v7020_v63 }
 0x737   :  { %6158 = vmatmul.mubr.f32.gmra.mrb[22].mxu1 %v3883_v7 }
 0x738   :  { %6160 = vmatprep.mubr.f32.mxu1 %v3884_v50  ;;  %7023 = vmatpush3.bf16.msra.mxu1 %v7020_v63  ;;  %v7341_v63 = vld [vmem:[#allocation14 + $0x18] sm:$0xff] }
 0x739   :  { %7025 = vmatprep.subr.bf16.mxu1 %v7024_v24 }
 0x73b   :  { %6161 = vmatmul.mubr.f32.gmra.mrb[24].mxu1 %v3885_v10  ;;  %v7344_v10 = vld [vmem:[#allocation14 + $0x20] sm:$0xff] }
 0x73c   :  { %6163 = vmatprep.mubr.f32.mxu1 %v3886_v11  ;;  %7027 = vmatpush3.bf16.msra.mxu1 %v7024_v24 }
 0x73d   :  { %7029 = vmatprep.subr.bf16.mxu1 %v7028_v9 }
 0x73f   :  { %6164 = vmatmul.mubr.f32.gmra.mrb[26].mxu1 %v3887_v17  ;;  %v7345_v17 = vld [vmem:[#allocation14 + $0x38] sm:$0xff] }
 0x740   :  { %6166 = vmatprep.mubr.f32.mxu1 %v3888_v22  ;;  %7031 = vmatpush3.bf16.msra.mxu1 %v7028_v9  ;;  %v7346_v22 = vld [vmem:[#allocation14 + $0x30] sm:$0xff] }
 0x741   :  { %7033 = vmatprep.subr.bf16.mxu1 %v7032_v16 }
 0x743   :  { %6167 = vmatmul.mubr.f32.gmra.mrb[28].mxu1 %v3889_v30 }
 0x744   :  { %7035 = vmatpush3.bf16.msra.mxu1 %v7032_v16  ;;  %6201 = vmatprep.mubr.f32.mxu1 %v4032_v38 }
 0x745   :  { %7037 = vmatprep.subr.bf16.mxu1 %v7036_v27 }
 0x748   :  { %7039 = vmatpush3.bf16.msra.mxu1 %v7036_v27 }
 0x749   :  { %7041 = vmatprep.subr.bf16.mxu1 %v7040_v6 }
 0x74c   :  { %7043 = vmatpush3.bf16.msra.mxu1 %v7040_v6 }
 0x74d   :  { %7045 = vmatprep.subr.bf16.mxu1 %v7044_v14 }
 0x750   :  { %7047 = vmatpush3.bf16.msra.mxu1 %v7044_v14 }
 0x753   :  { %6202 = vmatmul.mubr.f32.vlgmr.msra.gmra.mrb[20].mxu1 %v4033_v15 }
 0x754   :  { %6204 = vmatprep.mubr.f32.mxu1 %v4034_v42 }
 0x757   :  { %6205 = vmatmul.mubr.f32.gmra.mrb[22].mxu1 %v4035_v12 }
 0x758   :  { %6207 = vmatprep.mubr.f32.mxu1 %v4036_v46 }
 0x75b   :  { %6208 = vmatmul.mubr.f32.gmra.mrb[24].mxu1 %v4037_v29 }
 0x75c   :  { %6210 = vmatprep.mubr.f32.mxu1 %v4038_v32 }
 0x75f   :  { %6211 = vmatmul.mubr.f32.gmra.mrb[26].mxu1 %v4039_v49 }
 0x760   :  { %6213 = vmatprep.mubr.f32.mxu1 %v4040_v33 }
 0x763   :  { %6214 = vmatmul.mubr.f32.gmra.mrb[28].mxu1 %v4041_v53 }
 0x826   :  { %v6203_v20 = vpop.f32.mrb[20].mxu1 }
 0x827   :  { %v4193_v51 = vadd.f32 %v6203_v20, %v4317_v56  ;;  %v4125_v57 = vpop.f32.mrb[21].mxu1 }
 0x828   :  { %v4192_v39 = vadd.f32 %v4317_v56, %v4125_v57 }
 0x829   :  { %v4203_v47 = vsel %vm7628_vm0, %v4193_v51, 0.0 }
 0x82a   :  { %v4223_v58 = vadd.f32 %v7339_v28, %v4203_v47  ;;  %v4202_v52 = vsel %vm7636_vm1, %v4192_v39, 0.0  ;;  %v6206_v60 = vpop.f32.mrb[22].mxu1 }
 0x82b   :  { %v4222_v2 = vadd.f32 %v7340_v18, %v4202_v52  ;;  %v4195_v43 = vadd.f32 %v6206_v60, %v4317_v56  ;;  %v4135_v62 = vpop.f32.mrb[23].mxu1 }
 0x82c   :  { %4234 = vst [vmem:[#allocation14 + $0x58] sm:$0xff] %v4223_v58  ;;  %v4194_v37 = vadd.f32 %v4317_v56, %v4135_v62 }
 0x82d   :  { %4233 = vst [vmem:[#allocation14 + $0x50] sm:$0xff] %v4222_v2  ;;  %v4205_v4 = vsel %vm7654_vm2, %v4195_v43, 0.0 }
 0x82e   :  { %v4225_v26 = vadd.f32 %v7341_v63, %v4205_v4  ;;  %v4204_v31 = vsel %vm7659_vm3, %v4194_v37, 0.0  ;;  %v6209_v5 = vpop.f32.mrb[24].mxu1 }
 0x82f   :  { %v4224_v36 = vadd.f32 %v7342_v59, %v4204_v31  ;;  %v4197_v0 = vadd.f32 %v6209_v5, %v4317_v56  ;;  %v4145_v24 = vpop.f32.mrb[25].mxu1 }
 0x830   :  { %4236 = vst [vmem:[#allocation14 + $0x68] sm:$0xff] %v4225_v26  ;;  %v4196_v7 = vadd.f32 %v4317_v56, %v4145_v24 }
 0x831   :  { %4235 = vst [vmem:[#allocation14 + $0x60] sm:$0xff] %v4224_v36  ;;  %v4207_v54 = vsel %vm7681_vm8, %v4197_v0, 0.0 }
 0x832   :  { %v4227_v50 = vadd.f32 %v7343_v13, %v4207_v54  ;;  %v4206_v44 = vsel %vm7691_vm11, %v4196_v7, 0.0  ;;  %v6212_v9 = vpop.f32.mrb[26].mxu1 }
 0x833   :  { %v4226_v45 = vadd.f32 %v7344_v10, %v4206_v44  ;;  %v4199_v34 = vadd.f32 %v6212_v9, %v4317_v56  ;;  %v4155_v8 = vpop.f32.mrb[27].mxu1 }
 0x834   :  { %4238 = vst [vmem:[#allocation14 + $0x78] sm:$0xff] %v4227_v50  ;;  %v4198_v11 = vadd.f32 %v4317_v56, %v4155_v8 }
 0x835   :  { %4237 = vst [vmem:[#allocation14 + $0x70] sm:$0xff] %v4226_v45  ;;  %v4209_v16 = vsel %vm7712_vm13, %v4199_v34, 0.0 }
 0x836   :  { %v4229_v23 = vadd.f32 %v7345_v17, %v4209_v16  ;;  %v4208_v55 = vsel %vm7702_vm12, %v4198_v11, 0.0  ;;  %v6215_v25 = vpop.f32.mrb[28].mxu1 }
 0x837   :  { %v4228_v61 = vadd.f32 %v7346_v22, %v4208_v55  ;;  %v4201_v27 = vadd.f32 %v6215_v25, %v4317_v56  ;;  %v4165_v30 = vpop.f32.mrb[29].mxu1 }
 0x838   :  { %4240 = vst [vmem:[#allocation14 + $0x88] sm:$0xff] %v4229_v23  ;;  %v4200_v48 = vadd.f32 %v4317_v56, %v4165_v30 }
 0x839   :  { %4239 = vst [vmem:[#allocation14 + $0x80] sm:$0xff] %v4228_v61  ;;  %v4211_v35 = vsel %vm7734_vm6, %v4201_v27, 0.0 }
 0x83a   :  { %v4231_v38 = vadd.f32 %v7347_v3, %v4211_v35  ;;  %v4210_v6 = vsel %vm7748_vm7, %v4200_v48, 0.0 }
 0x83b   :  { %v4230_v41 = vadd.f32 %v7348_v1, %v4210_v6 }
 0x83c   :  { %4242 = vst [vmem:[#allocation14 + $0x98] sm:$0xff] %v4231_v38 }
 0x83d   :  { %4241 = vst [vmem:[#allocation14 + $0x90] sm:$0xff] %v4230_v41 }
 0x83e   :  { %7470 = shalt.err (!%p7467_p2)
}
 0x83f   :  { %s7471_s2 = scalar_lea.hbm %s8177_s6, 2560 }
 0x840   :  { %p7472_p3 = scmp.ne.s32.totalorder %s8177_s6, %s7471_s2  ;;  %p7475_p4 = scmp.lt.u32.totalorder %s7471_s2, %s8177_s6 }
 0x842   :  { %p7477_p5 = pnand %p7475_p4, %p7472_p3 }
 0x844   :  { %7480 = shalt.err (!%p7477_p5)
}
 0x845   :  { %4254 = dma.vmem_to_hbm [thread:$0]  %s4249_s17, 2560, %s8177_s6, [#allocation7], %s7491_s9, %s7491_s9, %s7492_s10  }
 0x846   :  { %7487 = dma.done.wait [#allocation7], 2560  }
 0x847   :  { %7488 = vsyncadd [#allocation7], 4294964736 }
 0x848   :  { %4258 = vsyncpa [#allocation6], 1 }
 0x849   :  { %4259 = vsyncpa [#allocation9], 1 }
 0x84a   :  { %4260 = vsyncpa [#allocation12], 1 }
 0x84b   :  { %4261 = vsyncpa [#allocation7], 1 }

</bundles_post_ra>
